<compile_context>
chip_gen: v7x
topology: tpu7x:2x2x1
jax: 0.10.0
libtpu: 0.0.40
codegen_flags: <defaults>
</compile_context>

<pallas_src>
import functools

import jax
import jax.numpy as jnp
from jax.experimental import pallas as pl
from jax.experimental.pallas import tpu as pltpu

EDGE_TYPES = 10
HDIM_EXTEND = 64
AGG_HID = 128
EPS = 1e-10


# ------------------------------ Pallas kernels ------------------------------

def _node2edge_kernel(x_ref, h_ref,
                      nw1_ref, nb1_ref, nw2_ref, nb2_ref,
                      aw1x_ref, ab1_ref, aw1e_ref, aw2_ref, ab2_ref,
                      o_ref):
    """Fused node2edge for one batch element.

    x_ref: (N, D) node features, h_ref: (E, N) hyper-adjacency.
    Output: (E, HDIM_EXTEND) edge features.
    """
    # node2edge_start_mlp : Linear(D,256) -> ReLU -> Linear(256,64)
    xh = jnp.dot(x_ref[...], nw1_ref[...],
                 preferred_element_type=jnp.float32) + nb1_ref[...]
    xh = jnp.maximum(xh, 0.0)
    xh = jnp.dot(xh, nw2_ref[...],
                 preferred_element_type=jnp.float32) + nb2_ref[...]          # (N, 64)

    H = h_ref[...]                                                           # (E, N)
    edge_init = jnp.dot(H, xh, preferred_element_type=jnp.float32)           # (E, 64)

    # attention first layer with split weights:
    #   relu([x_rep | edge_rep] @ W1 + b1) == relu(x@W1x + b1 + edge@W1e)
    a_x = jnp.dot(xh, aw1x_ref[...],
                  preferred_element_type=jnp.float32) + ab1_ref[...]         # (N, 32)
    a_e = jnp.dot(edge_init, aw1e_ref[...],
                  preferred_element_type=jnp.float32)                        # (E, 32)
    hcross = jnp.maximum(a_e[:, None, :] + a_x[None, :, :], 0.0)             # (E, N, 32)
    # second layer (out_dim == 1) as a VPU weighted reduce, not a 1-wide MXU dot
    score = jnp.sum(hcross * aw2_ref[...], axis=-1) + ab2_ref[...]           # (E, N)

    # softmax(score * H, dim=-1) * H, then @ xh
    w = score * H
    w = w - jnp.max(w, axis=-1, keepdims=True)
    p = jnp.exp(w)
    p = p / jnp.sum(p, axis=-1, keepdims=True)
    hw = p * H
    o_ref[...] = jnp.dot(hw, xh,
                         preferred_element_type=jnp.float32).astype(o_ref.dtype)


def _dict_softmax_kernel(e_ref, g_ref,
                         iw1_ref, ib1_ref, iw2_ref, ib2_ref,
                         hw1_ref, hb1_ref, dw2_ref, db2_ref, fw2_ref, fb2_ref,
                         out_ref, dist_ref, *, inv_tau):
    """Fused MLP_dict_softmax (init MLP + dist head + factor head) per batch."""
    # init_MLP : Linear(64,128) -> ReLU -> Linear(128,64)
    x = jnp.dot(e_ref[...], iw1_ref[...],
                preferred_element_type=jnp.float32) + ib1_ref[...]
    x = jnp.maximum(x, 0.0)
    x = jnp.dot(x, iw2_ref[...],
                preferred_element_type=jnp.float32) + ib2_ref[...]           # (E, 64)

    # dist / factor heads share one packed first-layer matmul (E,64)@(64,256)
    h = jnp.dot(x, hw1_ref[...],
                preferred_element_type=jnp.float32) + hb1_ref[...]
    h = jnp.maximum(h, 0.0)                                                  # (E, 256)
    logits = jnp.dot(h[:, :128], dw2_ref[...],
                     preferred_element_type=jnp.float32) + db2_ref[...]      # (E, 10)
    # factor head (out_dim == 1) as a VPU reduce
    fpre = jnp.sum(h[:, 128:] * fw2_ref[...], axis=-1,
                   keepdims=True) + fb2_ref[...]                             # (E, 1)

    # gumbel-softmax (soft), tau = 1 / inv_tau
    y = (logits + g_ref[...]) * inv_tau
    y = y - jnp.max(y, axis=-1, keepdims=True)
    p = jnp.exp(y)
    dist = p / jnp.sum(p, axis=-1, keepdims=True)
    factor = jax.nn.sigmoid(fpre)

    out_ref[...] = (factor * dist).astype(out_ref.dtype)
    dist_ref[...] = dist.astype(dist_ref.dtype)


def _edge2node_mlp_kernel(dist_ref, ori_ref, h_ref, ht_ref,
                          aw1_ref, ab1_ref, aw2_ref, ab2_ref,
                          mw1a_ref, mw1b_ref, mb1_ref, mw2_ref, mb2_ref,
                          o_ref, *, inv_n):
    """Fused edge_aggregation + /N + follow-up 2-layer MLP per batch."""
    ori = ori_ref[...]                                                       # (N, D)
    edges = jnp.dot(h_ref[...], ori, preferred_element_type=jnp.float32)     # (E, D)

    # ten per-edge-type first layers packed into one wide (D, 10*128) matmul
    h = jnp.dot(edges, aw1_ref[...],
                preferred_element_type=jnp.float32) + ab1_ref[...]
    h = jnp.maximum(h, 0.0)                                                  # (E, 1280)

    acc = jnp.zeros(edges.shape, jnp.float32)
    for t in range(EDGE_TYPES):                                              # static, unrolled
        yt = jnp.dot(h[:, t * AGG_HID:(t + 1) * AGG_HID], aw2_ref[t],
                     preferred_element_type=jnp.float32) + ab2_ref[t]        # (E, D)
        acc = acc + dist_ref[:, t:t + 1] * yt

    node_in = jnp.dot(ht_ref[...], acc, preferred_element_type=jnp.float32)  # (N, D)

    # concat-free follow-up MLP: relu(([node_in, ori] / N) @ W1 + b1) @ W2 + b2
    pre = (jnp.dot(node_in, mw1a_ref[...], preferred_element_type=jnp.float32)
           + jnp.dot(ori, mw1b_ref[...], preferred_element_type=jnp.float32)) * inv_n
    h1 = jnp.maximum(pre + mb1_ref[...], 0.0)
    o_ref[...] = (jnp.dot(h1, mw2_ref[...], preferred_element_type=jnp.float32)
                  + mb2_ref[...]).astype(o_ref.dtype)


# ------------------------------- call wrappers -------------------------------

def _weight_spec(shape):
    n = len(shape)
    return pl.BlockSpec(shape, lambda b, _n=n: (0,) * _n)


def node2edge(x, H, n2e_p, attn_p):
    B, N, D = x.shape
    E = H.shape[1]
    specs = [pl.BlockSpec((None, N, D), lambda b: (b, 0, 0)),
             pl.BlockSpec((None, E, N), lambda b: (b, 0, 0))]
    specs += [_weight_spec(w.shape) for w in (*n2e_p, *attn_p)]
    return pl.pallas_call(
        _node2edge_kernel,
        out_shape=jax.ShapeDtypeStruct((B, E, HDIM_EXTEND), x.dtype),
        grid=(B,),
        in_specs=specs,
        out_specs=pl.BlockSpec((None, E, HDIM_EXTEND), lambda b: (b, 0, 0)),
        compiler_params=pltpu.CompilerParams(dimension_semantics=("parallel",)),
    )(x, H, *n2e_p, *attn_p)


def mlp_dict_softmax(x3d, p, key, tau=0.5):
    B, E, D = x3d.shape
    init_p, head_p = p
    # gumbel noise sampling is host-side glue (matches sample_gumbel)
    U = jax.random.uniform(key, (B, E, EDGE_TYPES), jnp.float32)
    g = -jnp.log(EPS - jnp.log(U + EPS))
    specs = [pl.BlockSpec((None, E, D), lambda b: (b, 0, 0)),
             pl.BlockSpec((None, E, EDGE_TYPES), lambda b: (b, 0, 0))]
    specs += [_weight_spec(w.shape) for w in (*init_p, *head_p)]
    out, dist = pl.pallas_call(
        functools.partial(_dict_softmax_kernel, inv_tau=1.0 / tau),
        out_shape=(jax.ShapeDtypeStruct((B, E, EDGE_TYPES), x3d.dtype),
                   jax.ShapeDtypeStruct((B, E, EDGE_TYPES), x3d.dtype)),
        grid=(B,),
        in_specs=specs,
        out_specs=(pl.BlockSpec((None, E, EDGE_TYPES), lambda b: (b, 0, 0)),
                   pl.BlockSpec((None, E, EDGE_TYPES), lambda b: (b, 0, 0))),
        compiler_params=pltpu.CompilerParams(dimension_semantics=("parallel",)),
    )(x3d, g, *init_p, *head_p)
    return out, dist


def edge2node_mlp(edge_dist, ori, H, HT, agg_p, mlp_p):
    B, E, T = edge_dist.shape
    N, D = ori.shape[1], ori.shape[2]
    dout = mlp_p[3].shape[1]
    specs = [pl.BlockSpec((None, E, T), lambda b: (b, 0, 0)),
             pl.BlockSpec((None, N, D), lambda b: (b, 0, 0)),
             pl.BlockSpec((None, E, N), lambda b: (b, 0, 0)),
             pl.BlockSpec((None, N, E), lambda b: (b, 0, 0))]
    specs += [_weight_spec(w.shape) for w in (*agg_p, *mlp_p)]
    return pl.pallas_call(
        functools.partial(_edge2node_mlp_kernel, inv_n=1.0 / N),
        out_shape=jax.ShapeDtypeStruct((B, N, dout), ori.dtype),
        grid=(B,),
        in_specs=specs,
        out_specs=pl.BlockSpec((None, N, dout), lambda b: (b, 0, 0)),
        compiler_params=pltpu.CompilerParams(dimension_semantics=("parallel",)),
    )(edge_dist, ori, H, HT, *agg_p, *mlp_p)


# ------------------------- parameter initialization --------------------------

def _uniform(key, shape, bound):
    return jax.random.uniform(key, shape, jnp.float32, -bound, bound)


def init_mlp2(key, d_in, d_h, d_out):
    k1, k2, k3, k4 = jax.random.split(key, 4)
    s1 = 1.0 / (d_in ** 0.5)
    s2 = 1.0 / (d_h ** 0.5)
    return (_uniform(k1, (d_in, d_h), s1), _uniform(k2, (1, d_h), s1),
            _uniform(k3, (d_h, d_out), s2), _uniform(k4, (1, d_out), s2))


def init_attn(key):
    w1, b1, w2, b2 = init_mlp2(key, 2 * HDIM_EXTEND, 32, 1)
    # split first-layer weight: rows 0..63 act on x_rep, rows 64..127 on edge_rep
    return (w1[:HDIM_EXTEND], b1, w1[HDIM_EXTEND:],
            w2[:, 0].reshape(1, 1, 32), b2.reshape(1, 1))


def init_dict_softmax(key, d):
    k1, k2, k3 = jax.random.split(key, 3)
    init_p = init_mlp2(k1, d, 128, d)
    dw1, db1, dw2, db2 = init_mlp2(k2, d, 128, EDGE_TYPES)
    fw1, fb1, fw2, fb2 = init_mlp2(k3, d, 128, 1)
    head_p = (jnp.concatenate([dw1, fw1], axis=1),      # (d, 256)
              jnp.concatenate([db1, fb1], axis=1),      # (1, 256)
              dw2, db2,                                 # (128, 10), (1, 10)
              fw2.reshape(1, 128), fb2)                 # (1, 128), (1, 1)
    return (init_p, head_p)


def init_agg(key, d):
    keys = jax.random.split(key, EDGE_TYPES)
    ps = [init_mlp2(k, d, AGG_HID, d) for k in keys]
    return (jnp.concatenate([p[0] for p in ps], axis=1),   # (d, 10*128)
            jnp.concatenate([p[1] for p in ps], axis=1),   # (1, 10*128)
            jnp.stack([p[2] for p in ps]),                 # (10, 128, d)
            jnp.stack([p[3] for p in ps]))                 # (10, 1, d)


def init_node_mlp(key, d_in2, d_h, d_out):
    w1, b1, w2, b2 = init_mlp2(key, d_in2, d_h, d_out)
    half = d_in2 // 2
    return (w1[:half], w1[half:], b1, w2, b2)


def init_params(key, h_dim=64, bottleneck_dim=64, nmp_layers=2):
    ks = iter(jax.random.split(key, 8 * nmp_layers + 8))
    return {
        'n2e': [init_mlp2(next(ks), h_dim, 256, HDIM_EXTEND)
                for _ in range(nmp_layers)],
        'attn': [init_attn(next(ks)) for _ in range(nmp_layers)],
        'agg': [init_agg(next(ks), h_dim) for _ in range(nmp_layers)],
        'start': init_dict_softmax(next(ks), HDIM_EXTEND),
        'nmp': [{'mlp1': init_node_mlp(next(ks), 2 * h_dim, 128, h_dim),
                 'mlp2': init_dict_softmax(next(ks), HDIM_EXTEND)}
                for _ in range(nmp_layers - 1)],
        'end': init_node_mlp(next(ks), 2 * h_dim, 128, bottleneck_dim),
    }


# -------------------------------- forward glue --------------------------------

def init_adj_attention(feat, corr, scale):
    B, N = feat.shape[0], feat.shape[1]
    if scale == N:
        return jnp.ones((B, 1, N), feat.dtype)
    k = max(scale, 1)
    _, idx = jax.lax.top_k(corr, k)                       # (B, N, k)
    return jnp.sum(jax.nn.one_hot(idx, N, dtype=feat.dtype), axis=2)


def ms_hgnn_hyper_forward(h_states, corr, params, key, scale=2, nmp_layers=2):
    H = init_adj_attention(h_states, corr, scale)
    HT = jnp.swapaxes(H, 1, 2)
    keys = jax.random.split(key, nmp_layers)

    edge_hidden = node2edge(h_states, H, params['n2e'][0], params['attn'][0])
    edge_feat, factor = mlp_dict_softmax(edge_hidden, params['start'], keys[0])
    node_feat = h_states

    idx = 0
    for l in range(nmp_layers - 1):
        node_feat = edge2node_mlp(edge_feat, node_feat, H, HT,
                                  params['agg'][idx], params['nmp'][l]['mlp1'])
        idx += 1
        eh = node2edge(node_feat, H, params['n2e'][idx], params['attn'][idx])
        edge_feat, _ = mlp_dict_softmax(eh, params['nmp'][l]['mlp2'], keys[l + 1])

    out = edge2node_mlp(edge_feat, node_feat, H, HT,
                        params['agg'][idx], params['end'])
    return out, factor


# ------------------------------------ main ------------------------------------

if __name__ == "__main__":
    key = jax.random.PRNGKey(0)
    kp, kx, kc, kg = jax.random.split(key, 4)

    B, N, H_DIM = 2, 8, 64
    NMP_LAYERS, SCALE, BOTTLENECK = 2, 2, 64

    params = init_params(kp, h_dim=H_DIM, bottleneck_dim=BOTTLENECK,
                         nmp_layers=NMP_LAYERS)
    h_states = jax.random.normal(kx, (B, N, H_DIM), jnp.float32)
    corr = jax.random.normal(kc, (B, N, N), jnp.float32)

    fwd = jax.jit(functools.partial(ms_hgnn_hyper_forward,
                                    scale=SCALE, nmp_layers=NMP_LAYERS))
    node_feat, factor = fwd(h_states, corr, params, kg)
    jax.block_until_ready((node_feat, factor))

    assert node_feat.shape == (B, N, BOTTLENECK)
    assert factor.shape == (B, N, EDGE_TYPES)   # E == N when scale < actor_number
    assert jnp.all(jnp.isfinite(node_feat)) and jnp.all(jnp.isfinite(factor))
    print("KERNEL_OK")
</pallas_src>

<mosaic_0001>
module attributes {stable_mosaic.version = 11 : i64} {
  func.func @_node2edge_kernel(%arg0: i32, %arg1: memref<1x8x64xf32, #tpu.memory_space<vmem>>, %arg2: memref<1x8x8xf32, #tpu.memory_space<vmem>>, %arg3: memref<64x256xf32, #tpu.memory_space<vmem>>, %arg4: memref<1x256xf32, #tpu.memory_space<vmem>>, %arg5: memref<256x64xf32, #tpu.memory_space<vmem>>, %arg6: memref<1x64xf32, #tpu.memory_space<vmem>>, %arg7: memref<64x32xf32, #tpu.memory_space<vmem>>, %arg8: memref<1x32xf32, #tpu.memory_space<vmem>>, %arg9: memref<64x32xf32, #tpu.memory_space<vmem>>, %arg10: memref<1x1x32xf32, #tpu.memory_space<vmem>>, %arg11: memref<1x1xf32, #tpu.memory_space<vmem>>, %arg12: memref<1x8x64xf32, #tpu.memory_space<vmem>>) attributes {dimension_semantics = [#tpu.dimension_semantics<parallel>], iteration_bounds = array<i64: 2>, scalar_prefetch = 0 : i64, scratch_operands = 0 : i64, tpu.core_type = #tpu.core_type<tc>, window_params = [{transform_indices = @transform_0, window_bounds = array<i64: 1, 8, 64>}, {transform_indices = @transform_1, window_bounds = array<i64: 1, 8, 8>}, {pipeline_mode = #tpu.pipeline_mode<synchronous>, transform_indices = @transform_2, window_bounds = array<i64: 64, 256>}, {pipeline_mode = #tpu.pipeline_mode<synchronous>, transform_indices = @transform_3, window_bounds = array<i64: 1, 256>}, {pipeline_mode = #tpu.pipeline_mode<synchronous>, transform_indices = @transform_4, window_bounds = array<i64: 256, 64>}, {pipeline_mode = #tpu.pipeline_mode<synchronous>, transform_indices = @transform_5, window_bounds = array<i64: 1, 64>}, {pipeline_mode = #tpu.pipeline_mode<synchronous>, transform_indices = @transform_6, window_bounds = array<i64: 64, 32>}, {pipeline_mode = #tpu.pipeline_mode<synchronous>, transform_indices = @transform_7, window_bounds = array<i64: 1, 32>}, {pipeline_mode = #tpu.pipeline_mode<synchronous>, transform_indices = @transform_8, window_bounds = array<i64: 64, 32>}, {pipeline_mode = #tpu.pipeline_mode<synchronous>, transform_indices = @transform_9, window_bounds = array<i64: 1, 1, 32>}, {pipeline_mode = #tpu.pipeline_mode<synchronous>, transform_indices = @transform_10, window_bounds = array<i64: 1, 1>}, {transform_indices = @transform_11, window_bounds = array<i64: 1, 8, 64>}]} {
    %c0 = arith.constant 0 : index
    %c0_0 = arith.constant 0 : index
    %c0_1 = arith.constant 0 : index
    %0 = vector.load %arg1[%c0, %c0_0, %c0_1] : memref<1x8x64xf32, #tpu.memory_space<vmem>>, vector<1x8x64xf32>
    %1 = vector.shape_cast %0 : vector<1x8x64xf32> to vector<8x64xf32>
    %c0_2 = arith.constant 0 : index
    %c0_3 = arith.constant 0 : index
    %2 = vector.load %arg3[%c0_2, %c0_3] : memref<64x256xf32, #tpu.memory_space<vmem>>, vector<64x256xf32>
    %cst = arith.constant dense<0.000000e+00> : vector<8x256xf32>
    %3 = tpu.matmul %1, %2, %cst {dimension_numbers = #tpu.dot_dimension_numbers<[1], [0], [0], [1], [0, 0, 1, 1], [], []>} : vector<8x64xf32>, vector<64x256xf32>, vector<8x256xf32> -> vector<8x256xf32>
    %c0_4 = arith.constant 0 : index
    %c0_5 = arith.constant 0 : index
    %4 = vector.load %arg4[%c0_4, %c0_5] : memref<1x256xf32, #tpu.memory_space<vmem>>, vector<1x256xf32>
    %5 = vector.broadcast %4 : vector<1x256xf32> to vector<8x256xf32>
    %6 = arith.addf %3, %5 : vector<8x256xf32>
    %cst_6 = arith.constant 0.000000e+00 : f32
    %7 = vector.broadcast %cst_6 : f32 to vector<8x256xf32>
    %8 = arith.maximumf %6, %7 : vector<8x256xf32>
    %c0_7 = arith.constant 0 : index
    %c0_8 = arith.constant 0 : index
    %9 = vector.load %arg5[%c0_7, %c0_8] : memref<256x64xf32, #tpu.memory_space<vmem>>, vector<256x64xf32>
    %cst_9 = arith.constant dense<0.000000e+00> : vector<8x64xf32>
    %10 = tpu.matmul %8, %9, %cst_9 {dimension_numbers = #tpu.dot_dimension_numbers<[1], [0], [0], [1], [0, 0, 1, 1], [], []>} : vector<8x256xf32>, vector<256x64xf32>, vector<8x64xf32> -> vector<8x64xf32>
    %c0_10 = arith.constant 0 : index
    %c0_11 = arith.constant 0 : index
    %11 = vector.load %arg6[%c0_10, %c0_11] : memref<1x64xf32, #tpu.memory_space<vmem>>, vector<1x64xf32>
    %12 = vector.broadcast %11 : vector<1x64xf32> to vector<8x64xf32>
    %13 = arith.addf %10, %12 : vector<8x64xf32>
    %c0_12 = arith.constant 0 : index
    %c0_13 = arith.constant 0 : index
    %c0_14 = arith.constant 0 : index
    %14 = vector.load %arg2[%c0_12, %c0_13, %c0_14] : memref<1x8x8xf32, #tpu.memory_space<vmem>>, vector<1x8x8xf32>
    %15 = vector.shape_cast %14 : vector<1x8x8xf32> to vector<8x8xf32>
    %cst_15 = arith.constant dense<0.000000e+00> : vector<8x64xf32>
    %16 = tpu.matmul %15, %13, %cst_15 {dimension_numbers = #tpu.dot_dimension_numbers<[1], [0], [0], [1], [0, 0, 1, 1], [], []>} : vector<8x8xf32>, vector<8x64xf32>, vector<8x64xf32> -> vector<8x64xf32>
    %c0_16 = arith.constant 0 : index
    %c0_17 = arith.constant 0 : index
    %17 = vector.load %arg7[%c0_16, %c0_17] : memref<64x32xf32, #tpu.memory_space<vmem>>, vector<64x32xf32>
    %cst_18 = arith.constant dense<0.000000e+00> : vector<8x32xf32>
    %18 = tpu.matmul %13, %17, %cst_18 {dimension_numbers = #tpu.dot_dimension_numbers<[1], [0], [0], [1], [0, 0, 1, 1], [], []>} : vector<8x64xf32>, vector<64x32xf32>, vector<8x32xf32> -> vector<8x32xf32>
    %c0_19 = arith.constant 0 : index
    %c0_20 = arith.constant 0 : index
    %19 = vector.load %arg8[%c0_19, %c0_20] : memref<1x32xf32, #tpu.memory_space<vmem>>, vector<1x32xf32>
    %20 = vector.broadcast %19 : vector<1x32xf32> to vector<8x32xf32>
    %21 = arith.addf %18, %20 : vector<8x32xf32>
    %c0_21 = arith.constant 0 : index
    %c0_22 = arith.constant 0 : index
    %22 = vector.load %arg9[%c0_21, %c0_22] : memref<64x32xf32, #tpu.memory_space<vmem>>, vector<64x32xf32>
    %cst_23 = arith.constant dense<0.000000e+00> : vector<8x32xf32>
    %23 = tpu.matmul %16, %22, %cst_23 {dimension_numbers = #tpu.dot_dimension_numbers<[1], [0], [0], [1], [0, 0, 1, 1], [], []>} : vector<8x64xf32>, vector<64x32xf32>, vector<8x32xf32> -> vector<8x32xf32>
    %24 = vector.shape_cast %23 : vector<8x32xf32> to vector<8x1x32xf32>
    %25 = vector.shape_cast %21 : vector<8x32xf32> to vector<1x8x32xf32>
    %26 = vector.broadcast %24 : vector<8x1x32xf32> to vector<8x8x32xf32>
    %27 = vector.broadcast %25 : vector<1x8x32xf32> to vector<8x8x32xf32>
    %28 = arith.addf %26, %27 : vector<8x8x32xf32>
    %cst_24 = arith.constant 0.000000e+00 : f32
    %29 = vector.broadcast %cst_24 : f32 to vector<8x8x32xf32>
    %30 = arith.maximumf %28, %29 : vector<8x8x32xf32>
    %c0_25 = arith.constant 0 : index
    %c0_26 = arith.constant 0 : index
    %c0_27 = arith.constant 0 : index
    %31 = vector.load %arg10[%c0_25, %c0_26, %c0_27] : memref<1x1x32xf32, #tpu.memory_space<vmem>>, vector<1x1x32xf32>
    %32 = vector.broadcast %31 : vector<1x1x32xf32> to vector<8x8x32xf32>
    %33 = arith.mulf %30, %32 : vector<8x8x32xf32>
    %cst_28 = arith.constant dense<0.000000e+00> : vector<8x8xf32>
    %34 = vector.multi_reduction <add>, %33, %cst_28 [2] : vector<8x8x32xf32> to vector<8x8xf32>
    %c0_29 = arith.constant 0 : index
    %c0_30 = arith.constant 0 : index
    %35 = vector.load %arg11[%c0_29, %c0_30] : memref<1x1xf32, #tpu.memory_space<vmem>>, vector<1x1xf32>
    %36 = vector.broadcast %35 : vector<1x1xf32> to vector<8x8xf32>
    %37 = arith.addf %34, %36 : vector<8x8xf32>
    %38 = arith.mulf %37, %15 : vector<8x8xf32>
    %cst_31 = arith.constant dense<0xFF800000> : vector<8xf32>
    %39 = vector.multi_reduction <maximumf>, %38, %cst_31 [1] : vector<8x8xf32> to vector<8xf32>
    %40 = vector.shape_cast %39 : vector<8xf32> to vector<8x1xf32>
    %41 = vector.broadcast %40 : vector<8x1xf32> to vector<8x8xf32>
    %42 = arith.subf %38, %41 : vector<8x8xf32>
    %43 = math.exp %42 : vector<8x8xf32>
    %cst_32 = arith.constant dense<0.000000e+00> : vector<8xf32>
    %44 = vector.multi_reduction <add>, %43, %cst_32 [1] : vector<8x8xf32> to vector<8xf32>
    %45 = vector.shape_cast %44 : vector<8xf32> to vector<8x1xf32>
    %46 = vector.broadcast %45 : vector<8x1xf32> to vector<8x8xf32>
    %47 = arith.divf %43, %46 : vector<8x8xf32>
    %48 = arith.mulf %47, %15 : vector<8x8xf32>
    %cst_33 = arith.constant dense<0.000000e+00> : vector<8x64xf32>
    %49 = tpu.matmul %48, %13, %cst_33 {dimension_numbers = #tpu.dot_dimension_numbers<[1], [0], [0], [1], [0, 0, 1, 1], [], []>} : vector<8x8xf32>, vector<8x64xf32>, vector<8x64xf32> -> vector<8x64xf32>
    %c0_34 = arith.constant 0 : index
    %c0_35 = arith.constant 0 : index
    %c0_36 = arith.constant 0 : index
    %50 = vector.load %arg12[%c0_34, %c0_35, %c0_36] : memref<1x8x64xf32, #tpu.memory_space<vmem>>, vector<1x8x64xf32>
    %51 = vector.shape_cast %50 : vector<1x8x64xf32> to vector<8x64xf32>
    %52 = vector.shape_cast %49 : vector<8x64xf32> to vector<1x8x64xf32>
    tpu.vector_store %arg12[%c0_34, %c0_35, %c0_36], %52 {strides = array<i32>} : memref<1x8x64xf32, #tpu.memory_space<vmem>>, vector<1x8x64xf32>,
    return
  }
  func.func @transform_0(%arg0: i32) -> (i32, i32, i32) {
    %c0_i32 = arith.constant 0 : i32
    %c0_i32_0 = arith.constant 0 : i32
    %c0_i32_1 = arith.constant 0 : i32
    return %arg0, %c0_i32, %c0_i32_0 : i32, i32, i32
  }
  func.func @transform_1(%arg0: i32) -> (i32, i32, i32) {
    %c0_i32 = arith.constant 0 : i32
    %c0_i32_0 = arith.constant 0 : i32
    %c0_i32_1 = arith.constant 0 : i32
    return %arg0, %c0_i32, %c0_i32_0 : i32, i32, i32
  }
  func.func @transform_2(%arg0: i32) -> (i32, i32) {
    %c0_i32 = arith.constant 0 : i32
    %c0_i32_0 = arith.constant 0 : i32
    %c0_i32_1 = arith.constant 0 : i32
    return %c0_i32, %c0_i32_0 : i32, i32
  }
  func.func @transform_3(%arg0: i32) -> (i32, i32) {
    %c0_i32 = arith.constant 0 : i32
    %c0_i32_0 = arith.constant 0 : i32
    %c0_i32_1 = arith.constant 0 : i32
    return %c0_i32, %c0_i32_0 : i32, i32
  }
  func.func @transform_4(%arg0: i32) -> (i32, i32) {
    %c0_i32 = arith.constant 0 : i32
    %c0_i32_0 = arith.constant 0 : i32
    %c0_i32_1 = arith.constant 0 : i32
    return %c0_i32, %c0_i32_0 : i32, i32
  }
  func.func @transform_5(%arg0: i32) -> (i32, i32) {
    %c0_i32 = arith.constant 0 : i32
    %c0_i32_0 = arith.constant 0 : i32
    %c0_i32_1 = arith.constant 0 : i32
    return %c0_i32, %c0_i32_0 : i32, i32
  }
  func.func @transform_6(%arg0: i32) -> (i32, i32) {
    %c0_i32 = arith.constant 0 : i32
    %c0_i32_0 = arith.constant 0 : i32
    %c0_i32_1 = arith.constant 0 : i32
    return %c0_i32, %c0_i32_0 : i32, i32
  }
  func.func @transform_7(%arg0: i32) -> (i32, i32) {
    %c0_i32 = arith.constant 0 : i32
    %c0_i32_0 = arith.constant 0 : i32
    %c0_i32_1 = arith.constant 0 : i32
    return %c0_i32, %c0_i32_0 : i32, i32
  }
  func.func @transform_8(%arg0: i32) -> (i32, i32) {
    %c0_i32 = arith.constant 0 : i32
    %c0_i32_0 = arith.constant 0 : i32
    %c0_i32_1 = arith.constant 0 : i32
    return %c0_i32, %c0_i32_0 : i32, i32
  }
  func.func @transform_9(%arg0: i32) -> (i32, i32, i32) {
    %c0_i32 = arith.constant 0 : i32
    %c0_i32_0 = arith.constant 0 : i32
    %c0_i32_1 = arith.constant 0 : i32
    %c0_i32_2 = arith.constant 0 : i32
    return %c0_i32, %c0_i32_0, %c0_i32_1 : i32, i32, i32
  }
  func.func @transform_10(%arg0: i32) -> (i32, i32) {
    %c0_i32 = arith.constant 0 : i32
    %c0_i32_0 = arith.constant 0 : i32
    %c0_i32_1 = arith.constant 0 : i32
    return %c0_i32, %c0_i32_0 : i32, i32
  }
  func.func @transform_11(%arg0: i32) -> (i32, i32, i32) {
    %c0_i32 = arith.constant 0 : i32
    %c0_i32_0 = arith.constant 0 : i32
    %c0_i32_1 = arith.constant 0 : i32
    return %arg0, %c0_i32, %c0_i32_0 : i32, i32, i32
  }
}

module attributes {stable_mosaic.version = 11 : i64} {
  func.func @_dict_softmax_kernel(%arg0: i32, %arg1: memref<1x8x64xf32, #tpu.memory_space<vmem>>, %arg2: memref<1x8x10xf32, #tpu.memory_space<vmem>>, %arg3: memref<64x128xf32, #tpu.memory_space<vmem>>, %arg4: memref<1x128xf32, #tpu.memory_space<vmem>>, %arg5: memref<128x64xf32, #tpu.memory_space<vmem>>, %arg6: memref<1x64xf32, #tpu.memory_space<vmem>>, %arg7: memref<64x256xf32, #tpu.memory_space<vmem>>, %arg8: memref<1x256xf32, #tpu.memory_space<vmem>>, %arg9: memref<128x10xf32, #tpu.memory_space<vmem>>, %arg10: memref<1x10xf32, #tpu.memory_space<vmem>>, %arg11: memref<1x128xf32, #tpu.memory_space<vmem>>, %arg12: memref<1x1xf32, #tpu.memory_space<vmem>>, %arg13: memref<1x8x10xf32, #tpu.memory_space<vmem>>, %arg14: memref<1x8x10xf32, #tpu.memory_space<vmem>>) attributes {dimension_semantics = [#tpu.dimension_semantics<parallel>], iteration_bounds = array<i64: 2>, scalar_prefetch = 0 : i64, scratch_operands = 0 : i64, tpu.core_type = #tpu.core_type<tc>, window_params = [{transform_indices = @transform_0, window_bounds = array<i64: 1, 8, 64>}, {transform_indices = @transform_1, window_bounds = array<i64: 1, 8, 10>}, {pipeline_mode = #tpu.pipeline_mode<synchronous>, transform_indices = @transform_2, window_bounds = array<i64: 64, 128>}, {pipeline_mode = #tpu.pipeline_mode<synchronous>, transform_indices = @transform_3, window_bounds = array<i64: 1, 128>}, {pipeline_mode = #tpu.pipeline_mode<synchronous>, transform_indices = @transform_4, window_bounds = array<i64: 128, 64>}, {pipeline_mode = #tpu.pipeline_mode<synchronous>, transform_indices = @transform_5, window_bounds = array<i64: 1, 64>}, {pipeline_mode = #tpu.pipeline_mode<synchronous>, transform_indices = @transform_6, window_bounds = array<i64: 64, 256>}, {pipeline_mode = #tpu.pipeline_mode<synchronous>, transform_indices = @transform_7, window_bounds = array<i64: 1, 256>}, {pipeline_mode = #tpu.pipeline_mode<synchronous>, transform_indices = @transform_8, window_bounds = array<i64: 128, 10>}, {pipeline_mode = #tpu.pipeline_mode<synchronous>, transform_indices = @transform_9, window_bounds = array<i64: 1, 10>}, {pipeline_mode = #tpu.pipeline_mode<synchronous>, transform_indices = @transform_10, window_bounds = array<i64: 1, 128>}, {pipeline_mode = #tpu.pipeline_mode<synchronous>, transform_indices = @transform_11, window_bounds = array<i64: 1, 1>}, {transform_indices = @transform_12, window_bounds = array<i64: 1, 8, 10>}, {transform_indices = @transform_13, window_bounds = array<i64: 1, 8, 10>}]} {
    %c0 = arith.constant 0 : index
    %c0_0 = arith.constant 0 : index
    %c0_1 = arith.constant 0 : index
    %0 = vector.load %arg1[%c0, %c0_0, %c0_1] : memref<1x8x64xf32, #tpu.memory_space<vmem>>, vector<1x8x64xf32>
    %1 = vector.shape_cast %0 : vector<1x8x64xf32> to vector<8x64xf32>
    %c0_2 = arith.constant 0 : index
    %c0_3 = arith.constant 0 : index
    %2 = vector.load %arg3[%c0_2, %c0_3] : memref<64x128xf32, #tpu.memory_space<vmem>>, vector<64x128xf32>
    %cst = arith.constant dense<0.000000e+00> : vector<8x128xf32>
    %3 = tpu.matmul %1, %2, %cst {dimension_numbers = #tpu.dot_dimension_numbers<[1], [0], [0], [1], [0, 0, 1, 1], [], []>} : vector<8x64xf32>, vector<64x128xf32>, vector<8x128xf32> -> vector<8x128xf32>
    %c0_4 = arith.constant 0 : index
    %c0_5 = arith.constant 0 : index
    %4 = vector.load %arg4[%c0_4, %c0_5] : memref<1x128xf32, #tpu.memory_space<vmem>>, vector<1x128xf32>
    %5 = vector.broadcast %4 : vector<1x128xf32> to vector<8x128xf32>
    %6 = arith.addf %3, %5 : vector<8x128xf32>
    %cst_6 = arith.constant 0.000000e+00 : f32
    %7 = vector.broadcast %cst_6 : f32 to vector<8x128xf32>
    %8 = arith.maximumf %6, %7 : vector<8x128xf32>
    %c0_7 = arith.constant 0 : index
    %c0_8 = arith.constant 0 : index
    %9 = vector.load %arg5[%c0_7, %c0_8] : memref<128x64xf32, #tpu.memory_space<vmem>>, vector<128x64xf32>
    %cst_9 = arith.constant dense<0.000000e+00> : vector<8x64xf32>
    %10 = tpu.matmul %8, %9, %cst_9 {dimension_numbers = #tpu.dot_dimension_numbers<[1], [0], [0], [1], [0, 0, 1, 1], [], []>} : vector<8x128xf32>, vector<128x64xf32>, vector<8x64xf32> -> vector<8x64xf32>
    %c0_10 = arith.constant 0 : index
    %c0_11 = arith.constant 0 : index
    %11 = vector.load %arg6[%c0_10, %c0_11] : memref<1x64xf32, #tpu.memory_space<vmem>>, vector<1x64xf32>
    %12 = vector.broadcast %11 : vector<1x64xf32> to vector<8x64xf32>
    %13 = arith.addf %10, %12 : vector<8x64xf32>
    %c0_12 = arith.constant 0 : index
    %c0_13 = arith.constant 0 : index
    %14 = vector.load %arg7[%c0_12, %c0_13] : memref<64x256xf32, #tpu.memory_space<vmem>>, vector<64x256xf32>
    %cst_14 = arith.constant dense<0.000000e+00> : vector<8x256xf32>
    %15 = tpu.matmul %13, %14, %cst_14 {dimension_numbers = #tpu.dot_dimension_numbers<[1], [0], [0], [1], [0, 0, 1, 1], [], []>} : vector<8x64xf32>, vector<64x256xf32>, vector<8x256xf32> -> vector<8x256xf32>
    %c0_15 = arith.constant 0 : index
    %c0_16 = arith.constant 0 : index
    %16 = vector.load %arg8[%c0_15, %c0_16] : memref<1x256xf32, #tpu.memory_space<vmem>>, vector<1x256xf32>
    %17 = vector.broadcast %16 : vector<1x256xf32> to vector<8x256xf32>
    %18 = arith.addf %15, %17 : vector<8x256xf32>
    %cst_17 = arith.constant 0.000000e+00 : f32
    %19 = vector.broadcast %cst_17 : f32 to vector<8x256xf32>
    %20 = arith.maximumf %18, %19 : vector<8x256xf32>
    %21 = vector.extract_strided_slice %20 {offsets = [0, 0], sizes = [8, 128], strides = [1, 1]} : vector<8x256xf32> to vector<8x128xf32>
    %c0_18 = arith.constant 0 : index
    %c0_19 = arith.constant 0 : index
    %22 = vector.load %arg9[%c0_18, %c0_19] : memref<128x10xf32, #tpu.memory_space<vmem>>, vector<128x10xf32>
    %cst_20 = arith.constant dense<0.000000e+00> : vector<8x10xf32>
    %23 = tpu.matmul %21, %22, %cst_20 {dimension_numbers = #tpu.dot_dimension_numbers<[1], [0], [0], [1], [0, 0, 1, 1], [], []>} : vector<8x128xf32>, vector<128x10xf32>, vector<8x10xf32> -> vector<8x10xf32>
    %c0_21 = arith.constant 0 : index
    %c0_22 = arith.constant 0 : index
    %24 = vector.load %arg10[%c0_21, %c0_22] : memref<1x10xf32, #tpu.memory_space<vmem>>, vector<1x10xf32>
    %25 = vector.broadcast %24 : vector<1x10xf32> to vector<8x10xf32>
    %26 = arith.addf %23, %25 : vector<8x10xf32>
    %27 = vector.extract_strided_slice %20 {offsets = [0, 128], sizes = [8, 128], strides = [1, 1]} : vector<8x256xf32> to vector<8x128xf32>
    %c0_23 = arith.constant 0 : index
    %c0_24 = arith.constant 0 : index
    %28 = vector.load %arg11[%c0_23, %c0_24] : memref<1x128xf32, #tpu.memory_space<vmem>>, vector<1x128xf32>
    %29 = vector.broadcast %28 : vector<1x128xf32> to vector<8x128xf32>
    %30 = arith.mulf %27, %29 : vector<8x128xf32>
    %cst_25 = arith.constant dense<0.000000e+00> : vector<8xf32>
    %31 = vector.multi_reduction <add>, %30, %cst_25 [1] : vector<8x128xf32> to vector<8xf32>
    %32 = vector.shape_cast %31 : vector<8xf32> to vector<8x1xf32>
    %c0_26 = arith.constant 0 : index
    %c0_27 = arith.constant 0 : index
    %33 = vector.load %arg12[%c0_26, %c0_27] : memref<1x1xf32, #tpu.memory_space<vmem>>, vector<1x1xf32>
    %34 = vector.broadcast %33 : vector<1x1xf32> to vector<8x1xf32>
    %35 = arith.addf %32, %34 : vector<8x1xf32>
    %c0_28 = arith.constant 0 : index
    %c0_29 = arith.constant 0 : index
    %c0_30 = arith.constant 0 : index
    %36 = vector.load %arg2[%c0_28, %c0_29, %c0_30] : memref<1x8x10xf32, #tpu.memory_space<vmem>>, vector<1x8x10xf32>
    %37 = vector.shape_cast %36 : vector<1x8x10xf32> to vector<8x10xf32>
    %38 = arith.addf %26, %37 : vector<8x10xf32>
    %cst_31 = arith.constant 2.000000e+00 : f32
    %39 = vector.broadcast %cst_31 : f32 to vector<8x10xf32>
    %40 = arith.mulf %38, %39 : vector<8x10xf32>
    %cst_32 = arith.constant dense<0xFF800000> : vector<8xf32>
    %41 = vector.multi_reduction <maximumf>, %40, %cst_32 [1] : vector<8x10xf32> to vector<8xf32>
    %42 = vector.shape_cast %41 : vector<8xf32> to vector<8x1xf32>
    %43 = vector.broadcast %42 : vector<8x1xf32> to vector<8x10xf32>
    %44 = arith.subf %40, %43 : vector<8x10xf32>
    %45 = math.exp %44 : vector<8x10xf32>
    %cst_33 = arith.constant dense<0.000000e+00> : vector<8xf32>
    %46 = vector.multi_reduction <add>, %45, %cst_33 [1] : vector<8x10xf32> to vector<8xf32>
    %47 = vector.shape_cast %46 : vector<8xf32> to vector<8x1xf32>
    %48 = vector.broadcast %47 : vector<8x1xf32> to vector<8x10xf32>
    %49 = arith.divf %45, %48 : vector<8x10xf32>
    %50 = arith.negf %35 : vector<8x1xf32>
    %51 = math.exp %50 : vector<8x1xf32>
    %cst_34 = arith.constant 1.000000e+00 : f32
    %52 = vector.broadcast %cst_34 : f32 to vector<8x1xf32>
    %53 = arith.addf %52, %51 : vector<8x1xf32>
    %54 = arith.divf %52, %53 : vector<8x1xf32>
    %55 = vector.broadcast %54 : vector<8x1xf32> to vector<8x10xf32>
    %56 = arith.mulf %55, %49 : vector<8x10xf32>
    %c0_35 = arith.constant 0 : index
    %c0_36 = arith.constant 0 : index
    %c0_37 = arith.constant 0 : index
    %57 = vector.load %arg13[%c0_35, %c0_36, %c0_37] : memref<1x8x10xf32, #tpu.memory_space<vmem>>, vector<1x8x10xf32>
    %58 = vector.shape_cast %57 : vector<1x8x10xf32> to vector<8x10xf32>
    %59 = vector.shape_cast %56 : vector<8x10xf32> to vector<1x8x10xf32>
    tpu.vector_store %arg13[%c0_35, %c0_36, %c0_37], %59 {strides = array<i32>} : memref<1x8x10xf32, #tpu.memory_space<vmem>>, vector<1x8x10xf32>,
    %c0_38 = arith.constant 0 : index
    %c0_39 = arith.constant 0 : index
    %c0_40 = arith.constant 0 : index
    %60 = vector.load %arg14[%c0_38, %c0_39, %c0_40] : memref<1x8x10xf32, #tpu.memory_space<vmem>>, vector<1x8x10xf32>
    %61 = vector.shape_cast %60 : vector<1x8x10xf32> to vector<8x10xf32>
    %62 = vector.shape_cast %49 : vector<8x10xf32> to vector<1x8x10xf32>
    tpu.vector_store %arg14[%c0_38, %c0_39, %c0_40], %62 {strides = array<i32>} : memref<1x8x10xf32, #tpu.memory_space<vmem>>, vector<1x8x10xf32>,
    return
  }
  func.func @transform_0(%arg0: i32) -> (i32, i32, i32) {
    %c0_i32 = arith.constant 0 : i32
    %c0_i32_0 = arith.constant 0 : i32
    %c0_i32_1 = arith.constant 0 : i32
    return %arg0, %c0_i32, %c0_i32_0 : i32, i32, i32
  }
  func.func @transform_1(%arg0: i32) -> (i32, i32, i32) {
    %c0_i32 = arith.constant 0 : i32
    %c0_i32_0 = arith.constant 0 : i32
    %c0_i32_1 = arith.constant 0 : i32
    return %arg0, %c0_i32, %c0_i32_0 : i32, i32, i32
  }
  func.func @transform_2(%arg0: i32) -> (i32, i32) {
    %c0_i32 = arith.constant 0 : i32
    %c0_i32_0 = arith.constant 0 : i32
    %c0_i32_1 = arith.constant 0 : i32
    return %c0_i32, %c0_i32_0 : i32, i32
  }
  func.func @transform_3(%arg0: i32) -> (i32, i32) {
    %c0_i32 = arith.constant 0 : i32
    %c0_i32_0 = arith.constant 0 : i32
    %c0_i32_1 = arith.constant 0 : i32
    return %c0_i32, %c0_i32_0 : i32, i32
  }
  func.func @transform_4(%arg0: i32) -> (i32, i32) {
    %c0_i32 = arith.constant 0 : i32
    %c0_i32_0 = arith.constant 0 : i32
    %c0_i32_1 = arith.constant 0 : i32
    return %c0_i32, %c0_i32_0 : i32, i32
  }
  func.func @transform_5(%arg0: i32) -> (i32, i32) {
    %c0_i32 = arith.constant 0 : i32
    %c0_i32_0 = arith.constant 0 : i32
    %c0_i32_1 = arith.constant 0 : i32
    return %c0_i32, %c0_i32_0 : i32, i32
  }
  func.func @transform_6(%arg0: i32) -> (i32, i32) {
    %c0_i32 = arith.constant 0 : i32
    %c0_i32_0 = arith.constant 0 : i32
    %c0_i32_1 = arith.constant 0 : i32
    return %c0_i32, %c0_i32_0 : i32, i32
  }
  func.func @transform_7(%arg0: i32) -> (i32, i32) {
    %c0_i32 = arith.constant 0 : i32
    %c0_i32_0 = arith.constant 0 : i32
    %c0_i32_1 = arith.constant 0 : i32
    return %c0_i32, %c0_i32_0 : i32, i32
  }
  func.func @transform_8(%arg0: i32) -> (i32, i32) {
    %c0_i32 = arith.constant 0 : i32
    %c0_i32_0 = arith.constant 0 : i32
    %c0_i32_1 = arith.constant 0 : i32
    return %c0_i32, %c0_i32_0 : i32, i32
  }
  func.func @transform_9(%arg0: i32) -> (i32, i32) {
    %c0_i32 = arith.constant 0 : i32
    %c0_i32_0 = arith.constant 0 : i32
    %c0_i32_1 = arith.constant 0 : i32
    return %c0_i32, %c0_i32_0 : i32, i32
  }
  func.func @transform_10(%arg0: i32) -> (i32, i32) {
    %c0_i32 = arith.constant 0 : i32
    %c0_i32_0 = arith.constant 0 : i32
    %c0_i32_1 = arith.constant 0 : i32
    return %c0_i32, %c0_i32_0 : i32, i32
  }
  func.func @transform_11(%arg0: i32) -> (i32, i32) {
    %c0_i32 = arith.constant 0 : i32
    %c0_i32_0 = arith.constant 0 : i32
    %c0_i32_1 = arith.constant 0 : i32
    return %c0_i32, %c0_i32_0 : i32, i32
  }
  func.func @transform_12(%arg0: i32) -> (i32, i32, i32) {
    %c0_i32 = arith.constant 0 : i32
    %c0_i32_0 = arith.constant 0 : i32
    %c0_i32_1 = arith.constant 0 : i32
    return %arg0, %c0_i32, %c0_i32_0 : i32, i32, i32
  }
  func.func @transform_13(%arg0: i32) -> (i32, i32, i32) {
    %c0_i32 = arith.constant 0 : i32
    %c0_i32_0 = arith.constant 0 : i32
    %c0_i32_1 = arith.constant 0 : i32
    return %arg0, %c0_i32, %c0_i32_0 : i32, i32, i32
  }
}

module attributes {stable_mosaic.version = 11 : i64} {
  func.func @_edge2node_mlp_kernel(%arg0: i32, %arg1: memref<1x8x10xf32, #tpu.memory_space<vmem>>, %arg2: memref<1x8x64xf32, #tpu.memory_space<vmem>>, %arg3: memref<1x8x8xf32, #tpu.memory_space<vmem>>, %arg4: memref<1x8x8xf32, #tpu.memory_space<vmem>>, %arg5: memref<64x1280xf32, #tpu.memory_space<vmem>>, %arg6: memref<1x1280xf32, #tpu.memory_space<vmem>>, %arg7: memref<10x128x64xf32, #tpu.memory_space<vmem>>, %arg8: memref<10x1x64xf32, #tpu.memory_space<vmem>>, %arg9: memref<64x128xf32, #tpu.memory_space<vmem>>, %arg10: memref<64x128xf32, #tpu.memory_space<vmem>>, %arg11: memref<1x128xf32, #tpu.memory_space<vmem>>, %arg12: memref<128x64xf32, #tpu.memory_space<vmem>>, %arg13: memref<1x64xf32, #tpu.memory_space<vmem>>, %arg14: memref<1x8x64xf32, #tpu.memory_space<vmem>>) attributes {dimension_semantics = [#tpu.dimension_semantics<parallel>], iteration_bounds = array<i64: 2>, scalar_prefetch = 0 : i64, scratch_operands = 0 : i64, tpu.core_type = #tpu.core_type<tc>, window_params = [{transform_indices = @transform_0, window_bounds = array<i64: 1, 8, 10>}, {transform_indices = @transform_1, window_bounds = array<i64: 1, 8, 64>}, {transform_indices = @transform_2, window_bounds = array<i64: 1, 8, 8>}, {transform_indices = @transform_3, window_bounds = array<i64: 1, 8, 8>}, {pipeline_mode = #tpu.pipeline_mode<synchronous>, transform_indices = @transform_4, window_bounds = array<i64: 64, 1280>}, {pipeline_mode = #tpu.pipeline_mode<synchronous>, transform_indices = @transform_5, window_bounds = array<i64: 1, 1280>}, {pipeline_mode = #tpu.pipeline_mode<synchronous>, transform_indices = @transform_6, window_bounds = array<i64: 10, 128, 64>}, {pipeline_mode = #tpu.pipeline_mode<synchronous>, transform_indices = @transform_7, window_bounds = array<i64: 10, 1, 64>}, {pipeline_mode = #tpu.pipeline_mode<synchronous>, transform_indices = @transform_8, window_bounds = array<i64: 64, 128>}, {pipeline_mode = #tpu.pipeline_mode<synchronous>, transform_indices = @transform_9, window_bounds = array<i64: 64, 128>}, {pipeline_mode = #tpu.pipeline_mode<synchronous>, transform_indices = @transform_10, window_bounds = array<i64: 1, 128>}, {pipeline_mode = #tpu.pipeline_mode<synchronous>, transform_indices = @transform_11, window_bounds = array<i64: 128, 64>}, {pipeline_mode = #tpu.pipeline_mode<synchronous>, transform_indices = @transform_12, window_bounds = array<i64: 1, 64>}, {transform_indices = @transform_13, window_bounds = array<i64: 1, 8, 64>}]} {
    %c0 = arith.constant 0 : index
    %c0_0 = arith.constant 0 : index
    %c0_1 = arith.constant 0 : index
    %0 = vector.load %arg2[%c0, %c0_0, %c0_1] : memref<1x8x64xf32, #tpu.memory_space<vmem>>, vector<1x8x64xf32>
    %1 = vector.shape_cast %0 : vector<1x8x64xf32> to vector<8x64xf32>
    %c0_2 = arith.constant 0 : index
    %c0_3 = arith.constant 0 : index
    %c0_4 = arith.constant 0 : index
    %2 = vector.load %arg3[%c0_2, %c0_3, %c0_4] : memref<1x8x8xf32, #tpu.memory_space<vmem>>, vector<1x8x8xf32>
    %3 = vector.shape_cast %2 : vector<1x8x8xf32> to vector<8x8xf32>
    %cst = arith.constant dense<0.000000e+00> : vector<8x64xf32>
    %4 = tpu.matmul %3, %1, %cst {dimension_numbers = #tpu.dot_dimension_numbers<[1], [0], [0], [1], [0, 0, 1, 1], [], []>} : vector<8x8xf32>, vector<8x64xf32>, vector<8x64xf32> -> vector<8x64xf32>
    %c0_5 = arith.constant 0 : index
    %c0_6 = arith.constant 0 : index
    %5 = vector.load %arg5[%c0_5, %c0_6] : memref<64x1280xf32, #tpu.memory_space<vmem>>, vector<64x1280xf32>
    %cst_7 = arith.constant dense<0.000000e+00> : vector<8x1280xf32>
    %6 = tpu.matmul %4, %5, %cst_7 {dimension_numbers = #tpu.dot_dimension_numbers<[1], [0], [0], [1], [0, 0, 1, 1], [], []>} : vector<8x64xf32>, vector<64x1280xf32>, vector<8x1280xf32> -> vector<8x1280xf32>
    %c0_8 = arith.constant 0 : index
    %c0_9 = arith.constant 0 : index
    %7 = vector.load %arg6[%c0_8, %c0_9] : memref<1x1280xf32, #tpu.memory_space<vmem>>, vector<1x1280xf32>
    %8 = vector.broadcast %7 : vector<1x1280xf32> to vector<8x1280xf32>
    %9 = arith.addf %6, %8 : vector<8x1280xf32>
    %cst_10 = arith.constant 0.000000e+00 : f32
    %10 = vector.broadcast %cst_10 : f32 to vector<8x1280xf32>
    %11 = arith.maximumf %9, %10 : vector<8x1280xf32>
    %cst_11 = arith.constant 0.000000e+00 : f32
    %12 = vector.broadcast %cst_11 : f32 to vector<8x64xf32>
    %13 = vector.extract_strided_slice %11 {offsets = [0, 0], sizes = [8, 128], strides = [1, 1]} : vector<8x1280xf32> to vector<8x128xf32>
    %c0_12 = arith.constant 0 : index
    %c0_13 = arith.constant 0 : index
    %c0_14 = arith.constant 0 : index
    %14 = vector.load %arg7[%c0_12, %c0_13, %c0_14] : memref<10x128x64xf32, #tpu.memory_space<vmem>>, vector<1x128x64xf32>
    %15 = vector.shape_cast %14 : vector<1x128x64xf32> to vector<128x64xf32>
    %cst_15 = arith.constant dense<0.000000e+00> : vector<8x64xf32>
    %16 = tpu.matmul %13, %15, %cst_15 {dimension_numbers = #tpu.dot_dimension_numbers<[1], [0], [0], [1], [0, 0, 1, 1], [], []>} : vector<8x128xf32>, vector<128x64xf32>, vector<8x64xf32> -> vector<8x64xf32>
    %c0_16 = arith.constant 0 : index
    %c0_17 = arith.constant 0 : index
    %c0_18 = arith.constant 0 : index
    %17 = vector.load %arg8[%c0_16, %c0_17, %c0_18] : memref<10x1x64xf32, #tpu.memory_space<vmem>>, vector<1x1x64xf32>
    %18 = vector.shape_cast %17 : vector<1x1x64xf32> to vector<1x64xf32>
    %19 = vector.broadcast %18 : vector<1x64xf32> to vector<8x64xf32>
    %20 = arith.addf %16, %19 : vector<8x64xf32>
    %c0_19 = arith.constant 0 : index
    %c0_20 = arith.constant 0 : index
    %c0_21 = arith.constant 0 : index
    %21 = vector.load %arg1[%c0_19, %c0_20, %c0_21] : memref<1x8x10xf32, #tpu.memory_space<vmem>>, vector<1x8x1xf32>
    %22 = vector.shape_cast %21 : vector<1x8x1xf32> to vector<8x1xf32>
    %23 = vector.broadcast %22 : vector<8x1xf32> to vector<8x64xf32>
    %24 = arith.mulf %23, %20 : vector<8x64xf32>
    %25 = arith.addf %12, %24 : vector<8x64xf32>
    %26 = vector.extract_strided_slice %11 {offsets = [0, 128], sizes = [8, 128], strides = [1, 1]} : vector<8x1280xf32> to vector<8x128xf32>
    %c1 = arith.constant 1 : index
    %c0_22 = arith.constant 0 : index
    %c0_23 = arith.constant 0 : index
    %27 = vector.load %arg7[%c1, %c0_22, %c0_23] : memref<10x128x64xf32, #tpu.memory_space<vmem>>, vector<1x128x64xf32>
    %28 = vector.shape_cast %27 : vector<1x128x64xf32> to vector<128x64xf32>
    %cst_24 = arith.constant dense<0.000000e+00> : vector<8x64xf32>
    %29 = tpu.matmul %26, %28, %cst_24 {dimension_numbers = #tpu.dot_dimension_numbers<[1], [0], [0], [1], [0, 0, 1, 1], [], []>} : vector<8x128xf32>, vector<128x64xf32>, vector<8x64xf32> -> vector<8x64xf32>
    %c1_25 = arith.constant 1 : index
    %c0_26 = arith.constant 0 : index
    %c0_27 = arith.constant 0 : index
    %30 = vector.load %arg8[%c1_25, %c0_26, %c0_27] : memref<10x1x64xf32, #tpu.memory_space<vmem>>, vector<1x1x64xf32>
    %31 = vector.shape_cast %30 : vector<1x1x64xf32> to vector<1x64xf32>
    %32 = vector.broadcast %31 : vector<1x64xf32> to vector<8x64xf32>
    %33 = arith.addf %29, %32 : vector<8x64xf32>
    %c0_28 = arith.constant 0 : index
    %c0_29 = arith.constant 0 : index
    %c1_30 = arith.constant 1 : index
    %34 = vector.load %arg1[%c0_28, %c0_29, %c1_30] : memref<1x8x10xf32, #tpu.memory_space<vmem>>, vector<1x8x1xf32>
    %35 = vector.shape_cast %34 : vector<1x8x1xf32> to vector<8x1xf32>
    %36 = vector.broadcast %35 : vector<8x1xf32> to vector<8x64xf32>
    %37 = arith.mulf %36, %33 : vector<8x64xf32>
    %38 = arith.addf %25, %37 : vector<8x64xf32>
    %39 = vector.extract_strided_slice %11 {offsets = [0, 256], sizes = [8, 128], strides = [1, 1]} : vector<8x1280xf32> to vector<8x128xf32>
    %c2 = arith.constant 2 : index
    %c0_31 = arith.constant 0 : index
    %c0_32 = arith.constant 0 : index
    %40 = vector.load %arg7[%c2, %c0_31, %c0_32] : memref<10x128x64xf32, #tpu.memory_space<vmem>>, vector<1x128x64xf32>
    %41 = vector.shape_cast %40 : vector<1x128x64xf32> to vector<128x64xf32>
    %cst_33 = arith.constant dense<0.000000e+00> : vector<8x64xf32>
    %42 = tpu.matmul %39, %41, %cst_33 {dimension_numbers = #tpu.dot_dimension_numbers<[1], [0], [0], [1], [0, 0, 1, 1], [], []>} : vector<8x128xf32>, vector<128x64xf32>, vector<8x64xf32> -> vector<8x64xf32>
    %c2_34 = arith.constant 2 : index
    %c0_35 = arith.constant 0 : index
    %c0_36 = arith.constant 0 : index
    %43 = vector.load %arg8[%c2_34, %c0_35, %c0_36] : memref<10x1x64xf32, #tpu.memory_space<vmem>>, vector<1x1x64xf32>
    %44 = vector.shape_cast %43 : vector<1x1x64xf32> to vector<1x64xf32>
    %45 = vector.broadcast %44 : vector<1x64xf32> to vector<8x64xf32>
    %46 = arith.addf %42, %45 : vector<8x64xf32>
    %c0_37 = arith.constant 0 : index
    %c0_38 = arith.constant 0 : index
    %c2_39 = arith.constant 2 : index
    %47 = vector.load %arg1[%c0_37, %c0_38, %c2_39] : memref<1x8x10xf32, #tpu.memory_space<vmem>>, vector<1x8x1xf32>
    %48 = vector.shape_cast %47 : vector<1x8x1xf32> to vector<8x1xf32>
    %49 = vector.broadcast %48 : vector<8x1xf32> to vector<8x64xf32>
    %50 = arith.mulf %49, %46 : vector<8x64xf32>
    %51 = arith.addf %38, %50 : vector<8x64xf32>
    %52 = vector.extract_strided_slice %11 {offsets = [0, 384], sizes = [8, 128], strides = [1, 1]} : vector<8x1280xf32> to vector<8x128xf32>
    %c3 = arith.constant 3 : index
    %c0_40 = arith.constant 0 : index
    %c0_41 = arith.constant 0 : index
    %53 = vector.load %arg7[%c3, %c0_40, %c0_41] : memref<10x128x64xf32, #tpu.memory_space<vmem>>, vector<1x128x64xf32>
    %54 = vector.shape_cast %53 : vector<1x128x64xf32> to vector<128x64xf32>
    %cst_42 = arith.constant dense<0.000000e+00> : vector<8x64xf32>
    %55 = tpu.matmul %52, %54, %cst_42 {dimension_numbers = #tpu.dot_dimension_numbers<[1], [0], [0], [1], [0, 0, 1, 1], [], []>} : vector<8x128xf32>, vector<128x64xf32>, vector<8x64xf32> -> vector<8x64xf32>
    %c3_43 = arith.constant 3 : index
    %c0_44 = arith.constant 0 : index
    %c0_45 = arith.constant 0 : index
    %56 = vector.load %arg8[%c3_43, %c0_44, %c0_45] : memref<10x1x64xf32, #tpu.memory_space<vmem>>, vector<1x1x64xf32>
    %57 = vector.shape_cast %56 : vector<1x1x64xf32> to vector<1x64xf32>
    %58 = vector.broadcast %57 : vector<1x64xf32> to vector<8x64xf32>
    %59 = arith.addf %55, %58 : vector<8x64xf32>
    %c0_46 = arith.constant 0 : index
    %c0_47 = arith.constant 0 : index
    %c3_48 = arith.constant 3 : index
    %60 = vector.load %arg1[%c0_46, %c0_47, %c3_48] : memref<1x8x10xf32, #tpu.memory_space<vmem>>, vector<1x8x1xf32>
    %61 = vector.shape_cast %60 : vector<1x8x1xf32> to vector<8x1xf32>
    %62 = vector.broadcast %61 : vector<8x1xf32> to vector<8x64xf32>
    %63 = arith.mulf %62, %59 : vector<8x64xf32>
    %64 = arith.addf %51, %63 : vector<8x64xf32>
    %65 = vector.extract_strided_slice %11 {offsets = [0, 512], sizes = [8, 128], strides = [1, 1]} : vector<8x1280xf32> to vector<8x128xf32>
    %c4 = arith.constant 4 : index
    %c0_49 = arith.constant 0 : index
    %c0_50 = arith.constant 0 : index
    %66 = vector.load %arg7[%c4, %c0_49, %c0_50] : memref<10x128x64xf32, #tpu.memory_space<vmem>>, vector<1x128x64xf32>
    %67 = vector.shape_cast %66 : vector<1x128x64xf32> to vector<128x64xf32>
    %cst_51 = arith.constant dense<0.000000e+00> : vector<8x64xf32>
    %68 = tpu.matmul %65, %67, %cst_51 {dimension_numbers = #tpu.dot_dimension_numbers<[1], [0], [0], [1], [0, 0, 1, 1], [], []>} : vector<8x128xf32>, vector<128x64xf32>, vector<8x64xf32> -> vector<8x64xf32>
    %c4_52 = arith.constant 4 : index
    %c0_53 = arith.constant 0 : index
    %c0_54 = arith.constant 0 : index
    %69 = vector.load %arg8[%c4_52, %c0_53, %c0_54] : memref<10x1x64xf32, #tpu.memory_space<vmem>>, vector<1x1x64xf32>
    %70 = vector.shape_cast %69 : vector<1x1x64xf32> to vector<1x64xf32>
    %71 = vector.broadcast %70 : vector<1x64xf32> to vector<8x64xf32>
    %72 = arith.addf %68, %71 : vector<8x64xf32>
    %c0_55 = arith.constant 0 : index
    %c0_56 = arith.constant 0 : index
    %c4_57 = arith.constant 4 : index
    %73 = vector.load %arg1[%c0_55, %c0_56, %c4_57] : memref<1x8x10xf32, #tpu.memory_space<vmem>>, vector<1x8x1xf32>
    %74 = vector.shape_cast %73 : vector<1x8x1xf32> to vector<8x1xf32>
    %75 = vector.broadcast %74 : vector<8x1xf32> to vector<8x64xf32>
    %76 = arith.mulf %75, %72 : vector<8x64xf32>
    %77 = arith.addf %64, %76 : vector<8x64xf32>
    %78 = vector.extract_strided_slice %11 {offsets = [0, 640], sizes = [8, 128], strides = [1, 1]} : vector<8x1280xf32> to vector<8x128xf32>
    %c5 = arith.constant 5 : index
    %c0_58 = arith.constant 0 : index
    %c0_59 = arith.constant 0 : index
    %79 = vector.load %arg7[%c5, %c0_58, %c0_59] : memref<10x128x64xf32, #tpu.memory_space<vmem>>, vector<1x128x64xf32>
    %80 = vector.shape_cast %79 : vector<1x128x64xf32> to vector<128x64xf32>
    %cst_60 = arith.constant dense<0.000000e+00> : vector<8x64xf32>
    %81 = tpu.matmul %78, %80, %cst_60 {dimension_numbers = #tpu.dot_dimension_numbers<[1], [0], [0], [1], [0, 0, 1, 1], [], []>} : vector<8x128xf32>, vector<128x64xf32>, vector<8x64xf32> -> vector<8x64xf32>
    %c5_61 = arith.constant 5 : index
    %c0_62 = arith.constant 0 : index
    %c0_63 = arith.constant 0 : index
    %82 = vector.load %arg8[%c5_61, %c0_62, %c0_63] : memref<10x1x64xf32, #tpu.memory_space<vmem>>, vector<1x1x64xf32>
    %83 = vector.shape_cast %82 : vector<1x1x64xf32> to vector<1x64xf32>
    %84 = vector.broadcast %83 : vector<1x64xf32> to vector<8x64xf32>
    %85 = arith.addf %81, %84 : vector<8x64xf32>
    %c0_64 = arith.constant 0 : index
    %c0_65 = arith.constant 0 : index
    %c5_66 = arith.constant 5 : index
    %86 = vector.load %arg1[%c0_64, %c0_65, %c5_66] : memref<1x8x10xf32, #tpu.memory_space<vmem>>, vector<1x8x1xf32>
    %87 = vector.shape_cast %86 : vector<1x8x1xf32> to vector<8x1xf32>
    %88 = vector.broadcast %87 : vector<8x1xf32> to vector<8x64xf32>
    %89 = arith.mulf %88, %85 : vector<8x64xf32>
    %90 = arith.addf %77, %89 : vector<8x64xf32>
    %91 = vector.extract_strided_slice %11 {offsets = [0, 768], sizes = [8, 128], strides = [1, 1]} : vector<8x1280xf32> to vector<8x128xf32>
    %c6 = arith.constant 6 : index
    %c0_67 = arith.constant 0 : index
    %c0_68 = arith.constant 0 : index
    %92 = vector.load %arg7[%c6, %c0_67, %c0_68] : memref<10x128x64xf32, #tpu.memory_space<vmem>>, vector<1x128x64xf32>
    %93 = vector.shape_cast %92 : vector<1x128x64xf32> to vector<128x64xf32>
    %cst_69 = arith.constant dense<0.000000e+00> : vector<8x64xf32>
    %94 = tpu.matmul %91, %93, %cst_69 {dimension_numbers = #tpu.dot_dimension_numbers<[1], [0], [0], [1], [0, 0, 1, 1], [], []>} : vector<8x128xf32>, vector<128x64xf32>, vector<8x64xf32> -> vector<8x64xf32>
    %c6_70 = arith.constant 6 : index
    %c0_71 = arith.constant 0 : index
    %c0_72 = arith.constant 0 : index
    %95 = vector.load %arg8[%c6_70, %c0_71, %c0_72] : memref<10x1x64xf32, #tpu.memory_space<vmem>>, vector<1x1x64xf32>
    %96 = vector.shape_cast %95 : vector<1x1x64xf32> to vector<1x64xf32>
    %97 = vector.broadcast %96 : vector<1x64xf32> to vector<8x64xf32>
    %98 = arith.addf %94, %97 : vector<8x64xf32>
    %c0_73 = arith.constant 0 : index
    %c0_74 = arith.constant 0 : index
    %c6_75 = arith.constant 6 : index
    %99 = vector.load %arg1[%c0_73, %c0_74, %c6_75] : memref<1x8x10xf32, #tpu.memory_space<vmem>>, vector<1x8x1xf32>
    %100 = vector.shape_cast %99 : vector<1x8x1xf32> to vector<8x1xf32>
    %101 = vector.broadcast %100 : vector<8x1xf32> to vector<8x64xf32>
    %102 = arith.mulf %101, %98 : vector<8x64xf32>
    %103 = arith.addf %90, %102 : vector<8x64xf32>
    %104 = vector.extract_strided_slice %11 {offsets = [0, 896], sizes = [8, 128], strides = [1, 1]} : vector<8x1280xf32> to vector<8x128xf32>
    %c7 = arith.constant 7 : index
    %c0_76 = arith.constant 0 : index
    %c0_77 = arith.constant 0 : index
    %105 = vector.load %arg7[%c7, %c0_76, %c0_77] : memref<10x128x64xf32, #tpu.memory_space<vmem>>, vector<1x128x64xf32>
    %106 = vector.shape_cast %105 : vector<1x128x64xf32> to vector<128x64xf32>
    %cst_78 = arith.constant dense<0.000000e+00> : vector<8x64xf32>
    %107 = tpu.matmul %104, %106, %cst_78 {dimension_numbers = #tpu.dot_dimension_numbers<[1], [0], [0], [1], [0, 0, 1, 1], [], []>} : vector<8x128xf32>, vector<128x64xf32>, vector<8x64xf32> -> vector<8x64xf32>
    %c7_79 = arith.constant 7 : index
    %c0_80 = arith.constant 0 : index
    %c0_81 = arith.constant 0 : index
    %108 = vector.load %arg8[%c7_79, %c0_80, %c0_81] : memref<10x1x64xf32, #tpu.memory_space<vmem>>, vector<1x1x64xf32>
    %109 = vector.shape_cast %108 : vector<1x1x64xf32> to vector<1x64xf32>
    %110 = vector.broadcast %109 : vector<1x64xf32> to vector<8x64xf32>
    %111 = arith.addf %107, %110 : vector<8x64xf32>
    %c0_82 = arith.constant 0 : index
    %c0_83 = arith.constant 0 : index
    %c7_84 = arith.constant 7 : index
    %112 = vector.load %arg1[%c0_82, %c0_83, %c7_84] : memref<1x8x10xf32, #tpu.memory_space<vmem>>, vector<1x8x1xf32>
    %113 = vector.shape_cast %112 : vector<1x8x1xf32> to vector<8x1xf32>
    %114 = vector.broadcast %113 : vector<8x1xf32> to vector<8x64xf32>
    %115 = arith.mulf %114, %111 : vector<8x64xf32>
    %116 = arith.addf %103, %115 : vector<8x64xf32>
    %117 = vector.extract_strided_slice %11 {offsets = [0, 1024], sizes = [8, 128], strides = [1, 1]} : vector<8x1280xf32> to vector<8x128xf32>
    %c8 = arith.constant 8 : index
    %c0_85 = arith.constant 0 : index
    %c0_86 = arith.constant 0 : index
    %118 = vector.load %arg7[%c8, %c0_85, %c0_86] : memref<10x128x64xf32, #tpu.memory_space<vmem>>, vector<1x128x64xf32>
    %119 = vector.shape_cast %118 : vector<1x128x64xf32> to vector<128x64xf32>
    %cst_87 = arith.constant dense<0.000000e+00> : vector<8x64xf32>
    %120 = tpu.matmul %117, %119, %cst_87 {dimension_numbers = #tpu.dot_dimension_numbers<[1], [0], [0], [1], [0, 0, 1, 1], [], []>} : vector<8x128xf32>, vector<128x64xf32>, vector<8x64xf32> -> vector<8x64xf32>
    %c8_88 = arith.constant 8 : index
    %c0_89 = arith.constant 0 : index
    %c0_90 = arith.constant 0 : index
    %121 = vector.load %arg8[%c8_88, %c0_89, %c0_90] : memref<10x1x64xf32, #tpu.memory_space<vmem>>, vector<1x1x64xf32>
    %122 = vector.shape_cast %121 : vector<1x1x64xf32> to vector<1x64xf32>
    %123 = vector.broadcast %122 : vector<1x64xf32> to vector<8x64xf32>
    %124 = arith.addf %120, %123 : vector<8x64xf32>
    %c0_91 = arith.constant 0 : index
    %c0_92 = arith.constant 0 : index
    %c8_93 = arith.constant 8 : index
    %125 = vector.load %arg1[%c0_91, %c0_92, %c8_93] : memref<1x8x10xf32, #tpu.memory_space<vmem>>, vector<1x8x1xf32>
    %126 = vector.shape_cast %125 : vector<1x8x1xf32> to vector<8x1xf32>
    %127 = vector.broadcast %126 : vector<8x1xf32> to vector<8x64xf32>
    %128 = arith.mulf %127, %124 : vector<8x64xf32>
    %129 = arith.addf %116, %128 : vector<8x64xf32>
    %130 = vector.extract_strided_slice %11 {offsets = [0, 1152], sizes = [8, 128], strides = [1, 1]} : vector<8x1280xf32> to vector<8x128xf32>
    %c9 = arith.constant 9 : index
    %c0_94 = arith.constant 0 : index
    %c0_95 = arith.constant 0 : index
    %131 = vector.load %arg7[%c9, %c0_94, %c0_95] : memref<10x128x64xf32, #tpu.memory_space<vmem>>, vector<1x128x64xf32>
    %132 = vector.shape_cast %131 : vector<1x128x64xf32> to vector<128x64xf32>
    %cst_96 = arith.constant dense<0.000000e+00> : vector<8x64xf32>
    %133 = tpu.matmul %130, %132, %cst_96 {dimension_numbers = #tpu.dot_dimension_numbers<[1], [0], [0], [1], [0, 0, 1, 1], [], []>} : vector<8x128xf32>, vector<128x64xf32>, vector<8x64xf32> -> vector<8x64xf32>
    %c9_97 = arith.constant 9 : index
    %c0_98 = arith.constant 0 : index
    %c0_99 = arith.constant 0 : index
    %134 = vector.load %arg8[%c9_97, %c0_98, %c0_99] : memref<10x1x64xf32, #tpu.memory_space<vmem>>, vector<1x1x64xf32>
    %135 = vector.shape_cast %134 : vector<1x1x64xf32> to vector<1x64xf32>
    %136 = vector.broadcast %135 : vector<1x64xf32> to vector<8x64xf32>
    %137 = arith.addf %133, %136 : vector<8x64xf32>
    %c0_100 = arith.constant 0 : index
    %c0_101 = arith.constant 0 : index
    %c9_102 = arith.constant 9 : index
    %138 = vector.load %arg1[%c0_100, %c0_101, %c9_102] : memref<1x8x10xf32, #tpu.memory_space<vmem>>, vector<1x8x1xf32>
    %139 = vector.shape_cast %138 : vector<1x8x1xf32> to vector<8x1xf32>
    %140 = vector.broadcast %139 : vector<8x1xf32> to vector<8x64xf32>
    %141 = arith.mulf %140, %137 : vector<8x64xf32>
    %142 = arith.addf %129, %141 : vector<8x64xf32>
    %c0_103 = arith.constant 0 : index
    %c0_104 = arith.constant 0 : index
    %c0_105 = arith.constant 0 : index
    %143 = vector.load %arg4[%c0_103, %c0_104, %c0_105] : memref<1x8x8xf32, #tpu.memory_space<vmem>>, vector<1x8x8xf32>
    %144 = vector.shape_cast %143 : vector<1x8x8xf32> to vector<8x8xf32>
    %cst_106 = arith.constant dense<0.000000e+00> : vector<8x64xf32>
    %145 = tpu.matmul %144, %142, %cst_106 {dimension_numbers = #tpu.dot_dimension_numbers<[1], [0], [0], [1], [0, 0, 1, 1], [], []>} : vector<8x8xf32>, vector<8x64xf32>, vector<8x64xf32> -> vector<8x64xf32>
    %c0_107 = arith.constant 0 : index
    %c0_108 = arith.constant 0 : index
    %146 = vector.load %arg9[%c0_107, %c0_108] : memref<64x128xf32, #tpu.memory_space<vmem>>, vector<64x128xf32>
    %cst_109 = arith.constant dense<0.000000e+00> : vector<8x128xf32>
    %147 = tpu.matmul %145, %146, %cst_109 {dimension_numbers = #tpu.dot_dimension_numbers<[1], [0], [0], [1], [0, 0, 1, 1], [], []>} : vector<8x64xf32>, vector<64x128xf32>, vector<8x128xf32> -> vector<8x128xf32>
    %c0_110 = arith.constant 0 : index
    %c0_111 = arith.constant 0 : index
    %148 = vector.load %arg10[%c0_110, %c0_111] : memref<64x128xf32, #tpu.memory_space<vmem>>, vector<64x128xf32>
    %cst_112 = arith.constant dense<0.000000e+00> : vector<8x128xf32>
    %149 = tpu.matmul %1, %148, %cst_112 {dimension_numbers = #tpu.dot_dimension_numbers<[1], [0], [0], [1], [0, 0, 1, 1], [], []>} : vector<8x64xf32>, vector<64x128xf32>, vector<8x128xf32> -> vector<8x128xf32>
    %150 = arith.addf %147, %149 : vector<8x128xf32>
    %cst_113 = arith.constant 1.250000e-01 : f32
    %151 = vector.broadcast %cst_113 : f32 to vector<8x128xf32>
    %152 = arith.mulf %150, %151 : vector<8x128xf32>
    %c0_114 = arith.constant 0 : index
    %c0_115 = arith.constant 0 : index
    %153 = vector.load %arg11[%c0_114, %c0_115] : memref<1x128xf32, #tpu.memory_space<vmem>>, vector<1x128xf32>
    %154 = vector.broadcast %153 : vector<1x128xf32> to vector<8x128xf32>
    %155 = arith.addf %152, %154 : vector<8x128xf32>
    %cst_116 = arith.constant 0.000000e+00 : f32
    %156 = vector.broadcast %cst_116 : f32 to vector<8x128xf32>
    %157 = arith.maximumf %155, %156 : vector<8x128xf32>
    %c0_117 = arith.constant 0 : index
    %c0_118 = arith.constant 0 : index
    %158 = vector.load %arg12[%c0_117, %c0_118] : memref<128x64xf32, #tpu.memory_space<vmem>>, vector<128x64xf32>
    %cst_119 = arith.constant dense<0.000000e+00> : vector<8x64xf32>
    %159 = tpu.matmul %157, %158, %cst_119 {dimension_numbers = #tpu.dot_dimension_numbers<[1], [0], [0], [1], [0, 0, 1, 1], [], []>} : vector<8x128xf32>, vector<128x64xf32>, vector<8x64xf32> -> vector<8x64xf32>
    %c0_120 = arith.constant 0 : index
    %c0_121 = arith.constant 0 : index
    %160 = vector.load %arg13[%c0_120, %c0_121] : memref<1x64xf32, #tpu.memory_space<vmem>>, vector<1x64xf32>
    %161 = vector.broadcast %160 : vector<1x64xf32> to vector<8x64xf32>
    %162 = arith.addf %159, %161 : vector<8x64xf32>
    %c0_122 = arith.constant 0 : index
    %c0_123 = arith.constant 0 : index
    %c0_124 = arith.constant 0 : index
    %163 = vector.load %arg14[%c0_122, %c0_123, %c0_124] : memref<1x8x64xf32, #tpu.memory_space<vmem>>, vector<1x8x64xf32>
    %164 = vector.shape_cast %163 : vector<1x8x64xf32> to vector<8x64xf32>
    %165 = vector.shape_cast %162 : vector<8x64xf32> to vector<1x8x64xf32>
    tpu.vector_store %arg14[%c0_122, %c0_123, %c0_124], %165 {strides = array<i32>} : memref<1x8x64xf32, #tpu.memory_space<vmem>>, vector<1x8x64xf32>,
    return
  }
  func.func @transform_0(%arg0: i32) -> (i32, i32, i32) {
    %c0_i32 = arith.constant 0 : i32
    %c0_i32_0 = arith.constant 0 : i32
    %c0_i32_1 = arith.constant 0 : i32
    return %arg0, %c0_i32, %c0_i32_0 : i32, i32, i32
  }
  func.func @transform_1(%arg0: i32) -> (i32, i32, i32) {
    %c0_i32 = arith.constant 0 : i32
    %c0_i32_0 = arith.constant 0 : i32
    %c0_i32_1 = arith.constant 0 : i32
    return %arg0, %c0_i32, %c0_i32_0 : i32, i32, i32
  }
  func.func @transform_2(%arg0: i32) -> (i32, i32, i32) {
    %c0_i32 = arith.constant 0 : i32
    %c0_i32_0 = arith.constant 0 : i32
    %c0_i32_1 = arith.constant 0 : i32
    return %arg0, %c0_i32, %c0_i32_0 : i32, i32, i32
  }
  func.func @transform_3(%arg0: i32) -> (i32, i32, i32) {
    %c0_i32 = arith.constant 0 : i32
    %c0_i32_0 = arith.constant 0 : i32
    %c0_i32_1 = arith.constant 0 : i32
    return %arg0, %c0_i32, %c0_i32_0 : i32, i32, i32
  }
  func.func @transform_4(%arg0: i32) -> (i32, i32) {
    %c0_i32 = arith.constant 0 : i32
    %c0_i32_0 = arith.constant 0 : i32
    %c0_i32_1 = arith.constant 0 : i32
    return %c0_i32, %c0_i32_0 : i32, i32
  }
  func.func @transform_5(%arg0: i32) -> (i32, i32) {
    %c0_i32 = arith.constant 0 : i32
    %c0_i32_0 = arith.constant 0 : i32
    %c0_i32_1 = arith.constant 0 : i32
    return %c0_i32, %c0_i32_0 : i32, i32
  }
  func.func @transform_6(%arg0: i32) -> (i32, i32, i32) {
    %c0_i32 = arith.constant 0 : i32
    %c0_i32_0 = arith.constant 0 : i32
    %c0_i32_1 = arith.constant 0 : i32
    %c0_i32_2 = arith.constant 0 : i32
    return %c0_i32, %c0_i32_0, %c0_i32_1 : i32, i32, i32
  }
  func.func @transform_7(%arg0: i32) -> (i32, i32, i32) {
    %c0_i32 = arith.constant 0 : i32
    %c0_i32_0 = arith.constant 0 : i32
    %c0_i32_1 = arith.constant 0 : i32
    %c0_i32_2 = arith.constant 0 : i32
    return %c0_i32, %c0_i32_0, %c0_i32_1 : i32, i32, i32
  }
  func.func @transform_8(%arg0: i32) -> (i32, i32) {
    %c0_i32 = arith.constant 0 : i32
    %c0_i32_0 = arith.constant 0 : i32
    %c0_i32_1 = arith.constant 0 : i32
    return %c0_i32, %c0_i32_0 : i32, i32
  }
  func.func @transform_9(%arg0: i32) -> (i32, i32) {
    %c0_i32 = arith.constant 0 : i32
    %c0_i32_0 = arith.constant 0 : i32
    %c0_i32_1 = arith.constant 0 : i32
    return %c0_i32, %c0_i32_0 : i32, i32
  }
  func.func @transform_10(%arg0: i32) -> (i32, i32) {
    %c0_i32 = arith.constant 0 : i32
    %c0_i32_0 = arith.constant 0 : i32
    %c0_i32_1 = arith.constant 0 : i32
    return %c0_i32, %c0_i32_0 : i32, i32
  }
  func.func @transform_11(%arg0: i32) -> (i32, i32) {
    %c0_i32 = arith.constant 0 : i32
    %c0_i32_0 = arith.constant 0 : i32
    %c0_i32_1 = arith.constant 0 : i32
    return %c0_i32, %c0_i32_0 : i32, i32
  }
  func.func @transform_12(%arg0: i32) -> (i32, i32) {
    %c0_i32 = arith.constant 0 : i32
    %c0_i32_0 = arith.constant 0 : i32
    %c0_i32_1 = arith.constant 0 : i32
    return %c0_i32, %c0_i32_0 : i32, i32
  }
  func.func @transform_13(%arg0: i32) -> (i32, i32, i32) {
    %c0_i32 = arith.constant 0 : i32
    %c0_i32_0 = arith.constant 0 : i32
    %c0_i32_1 = arith.constant 0 : i32
    return %arg0, %c0_i32, %c0_i32_0 : i32, i32, i32
  }
}

module attributes {stable_mosaic.version = 11 : i64} {
  func.func @_edge2node_mlp_kernel(%arg0: i32, %arg1: memref<1x8x10xf32, #tpu.memory_space<vmem>>, %arg2: memref<1x8x64xf32, #tpu.memory_space<vmem>>, %arg3: memref<1x8x8xf32, #tpu.memory_space<vmem>>, %arg4: memref<1x8x8xf32, #tpu.memory_space<vmem>>, %arg5: memref<64x1280xf32, #tpu.memory_space<vmem>>, %arg6: memref<1x1280xf32, #tpu.memory_space<vmem>>, %arg7: memref<10x128x64xf32, #tpu.memory_space<vmem>>, %arg8: memref<10x1x64xf32, #tpu.memory_space<vmem>>, %arg9: memref<64x128xf32, #tpu.memory_space<vmem>>, %arg10: memref<64x128xf32, #tpu.memory_space<vmem>>, %arg11: memref<1x128xf32, #tpu.memory_space<vmem>>, %arg12: memref<128x64xf32, #tpu.memory_space<vmem>>, %arg13: memref<1x64xf32, #tpu.memory_space<vmem>>, %arg14: memref<1x8x64xf32, #tpu.memory_space<vmem>>) attributes {dimension_semantics = [#tpu.dimension_semantics<parallel>], iteration_bounds = array<i64: 2>, scalar_prefetch = 0 : i64, scratch_operands = 0 : i64, tpu.core_type = #tpu.core_type<tc>, window_params = [{transform_indices = @transform_0, window_bounds = array<i64: 1, 8, 10>}, {transform_indices = @transform_1, window_bounds = array<i64: 1, 8, 64>}, {transform_indices = @transform_2, window_bounds = array<i64: 1, 8, 8>}, {transform_indices = @transform_3, window_bounds = array<i64: 1, 8, 8>}, {pipeline_mode = #tpu.pipeline_mode<synchronous>, transform_indices = @transform_4, window_bounds = array<i64: 64, 1280>}, {pipeline_mode = #tpu.pipeline_mode<synchronous>, transform_indices = @transform_5, window_bounds = array<i64: 1, 1280>}, {pipeline_mode = #tpu.pipeline_mode<synchronous>, transform_indices = @transform_6, window_bounds = array<i64: 10, 128, 64>}, {pipeline_mode = #tpu.pipeline_mode<synchronous>, transform_indices = @transform_7, window_bounds = array<i64: 10, 1, 64>}, {pipeline_mode = #tpu.pipeline_mode<synchronous>, transform_indices = @transform_8, window_bounds = array<i64: 64, 128>}, {pipeline_mode = #tpu.pipeline_mode<synchronous>, transform_indices = @transform_9, window_bounds = array<i64: 64, 128>}, {pipeline_mode = #tpu.pipeline_mode<synchronous>, transform_indices = @transform_10, window_bounds = array<i64: 1, 128>}, {pipeline_mode = #tpu.pipeline_mode<synchronous>, transform_indices = @transform_11, window_bounds = array<i64: 128, 64>}, {pipeline_mode = #tpu.pipeline_mode<synchronous>, transform_indices = @transform_12, window_bounds = array<i64: 1, 64>}, {transform_indices = @transform_13, window_bounds = array<i64: 1, 8, 64>}]} {
    %c0 = arith.constant 0 : index
    %c0_0 = arith.constant 0 : index
    %c0_1 = arith.constant 0 : index
    %0 = vector.load %arg2[%c0, %c0_0, %c0_1] : memref<1x8x64xf32, #tpu.memory_space<vmem>>, vector<1x8x64xf32>
    %1 = vector.shape_cast %0 : vector<1x8x64xf32> to vector<8x64xf32>
    %c0_2 = arith.constant 0 : index
    %c0_3 = arith.constant 0 : index
    %c0_4 = arith.constant 0 : index
    %2 = vector.load %arg3[%c0_2, %c0_3, %c0_4] : memref<1x8x8xf32, #tpu.memory_space<vmem>>, vector<1x8x8xf32>
    %3 = vector.shape_cast %2 : vector<1x8x8xf32> to vector<8x8xf32>
    %cst = arith.constant dense<0.000000e+00> : vector<8x64xf32>
    %4 = tpu.matmul %3, %1, %cst {dimension_numbers = #tpu.dot_dimension_numbers<[1], [0], [0], [1], [0, 0, 1, 1], [], []>} : vector<8x8xf32>, vector<8x64xf32>, vector<8x64xf32> -> vector<8x64xf32>
    %c0_5 = arith.constant 0 : index
    %c0_6 = arith.constant 0 : index
    %5 = vector.load %arg5[%c0_5, %c0_6] : memref<64x1280xf32, #tpu.memory_space<vmem>>, vector<64x1280xf32>
    %cst_7 = arith.constant dense<0.000000e+00> : vector<8x1280xf32>
    %6 = tpu.matmul %4, %5, %cst_7 {dimension_numbers = #tpu.dot_dimension_numbers<[1], [0], [0], [1], [0, 0, 1, 1], [], []>} : vector<8x64xf32>, vector<64x1280xf32>, vector<8x1280xf32> -> vector<8x1280xf32>
    %c0_8 = arith.constant 0 : index
    %c0_9 = arith.constant 0 : index
    %7 = vector.load %arg6[%c0_8, %c0_9] : memref<1x1280xf32, #tpu.memory_space<vmem>>, vector<1x1280xf32>
    %8 = vector.broadcast %7 : vector<1x1280xf32> to vector<8x1280xf32>
    %9 = arith.addf %6, %8 : vector<8x1280xf32>
    %cst_10 = arith.constant 0.000000e+00 : f32
    %10 = vector.broadcast %cst_10 : f32 to vector<8x1280xf32>
    %11 = arith.maximumf %9, %10 : vector<8x1280xf32>
    %cst_11 = arith.constant 0.000000e+00 : f32
    %12 = vector.broadcast %cst_11 : f32 to vector<8x64xf32>
    %13 = vector.extract_strided_slice %11 {offsets = [0, 0], sizes = [8, 128], strides = [1, 1]} : vector<8x1280xf32> to vector<8x128xf32>
    %c0_12 = arith.constant 0 : index
    %c0_13 = arith.constant 0 : index
    %c0_14 = arith.constant 0 : index
    %14 = vector.load %arg7[%c0_12, %c0_13, %c0_14] : memref<10x128x64xf32, #tpu.memory_space<vmem>>, vector<1x128x64xf32>
    %15 = vector.shape_cast %14 : vector<1x128x64xf32> to vector<128x64xf32>
    %cst_15 = arith.constant dense<0.000000e+00> : vector<8x64xf32>
    %16 = tpu.matmul %13, %15, %cst_15 {dimension_numbers = #tpu.dot_dimension_numbers<[1], [0], [0], [1], [0, 0, 1, 1], [], []>} : vector<8x128xf32>, vector<128x64xf32>, vector<8x64xf32> -> vector<8x64xf32>
    %c0_16 = arith.constant 0 : index
    %c0_17 = arith.constant 0 : index
    %c0_18 = arith.constant 0 : index
    %17 = vector.load %arg8[%c0_16, %c0_17, %c0_18] : memref<10x1x64xf32, #tpu.memory_space<vmem>>, vector<1x1x64xf32>
    %18 = vector.shape_cast %17 : vector<1x1x64xf32> to vector<1x64xf32>
    %19 = vector.broadcast %18 : vector<1x64xf32> to vector<8x64xf32>
    %20 = arith.addf %16, %19 : vector<8x64xf32>
    %c0_19 = arith.constant 0 : index
    %c0_20 = arith.constant 0 : index
    %c0_21 = arith.constant 0 : index
    %21 = vector.load %arg1[%c0_19, %c0_20, %c0_21] : memref<1x8x10xf32, #tpu.memory_space<vmem>>, vector<1x8x1xf32>
    %22 = vector.shape_cast %21 : vector<1x8x1xf32> to vector<8x1xf32>
    %23 = vector.broadcast %22 : vector<8x1xf32> to vector<8x64xf32>
    %24 = arith.mulf %23, %20 : vector<8x64xf32>
    %25 = arith.addf %12, %24 : vector<8x64xf32>
    %26 = vector.extract_strided_slice %11 {offsets = [0, 128], sizes = [8, 128], strides = [1, 1]} : vector<8x1280xf32> to vector<8x128xf32>
    %c1 = arith.constant 1 : index
    %c0_22 = arith.constant 0 : index
    %c0_23 = arith.constant 0 : index
    %27 = vector.load %arg7[%c1, %c0_22, %c0_23] : memref<10x128x64xf32, #tpu.memory_space<vmem>>, vector<1x128x64xf32>
    %28 = vector.shape_cast %27 : vector<1x128x64xf32> to vector<128x64xf32>
    %cst_24 = arith.constant dense<0.000000e+00> : vector<8x64xf32>
    %29 = tpu.matmul %26, %28, %cst_24 {dimension_numbers = #tpu.dot_dimension_numbers<[1], [0], [0], [1], [0, 0, 1, 1], [], []>} : vector<8x128xf32>, vector<128x64xf32>, vector<8x64xf32> -> vector<8x64xf32>
    %c1_25 = arith.constant 1 : index
    %c0_26 = arith.constant 0 : index
    %c0_27 = arith.constant 0 : index
    %30 = vector.load %arg8[%c1_25, %c0_26, %c0_27] : memref<10x1x64xf32, #tpu.memory_space<vmem>>, vector<1x1x64xf32>
    %31 = vector.shape_cast %30 : vector<1x1x64xf32> to vector<1x64xf32>
    %32 = vector.broadcast %31 : vector<1x64xf32> to vector<8x64xf32>
    %33 = arith.addf %29, %32 : vector<8x64xf32>
    %c0_28 = arith.constant 0 : index
    %c0_29 = arith.constant 0 : index
    %c1_30 = arith.constant 1 : index
    %34 = vector.load %arg1[%c0_28, %c0_29, %c1_30] : memref<1x8x10xf32, #tpu.memory_space<vmem>>, vector<1x8x1xf32>
    %35 = vector.shape_cast %34 : vector<1x8x1xf32> to vector<8x1xf32>
    %36 = vector.broadcast %35 : vector<8x1xf32> to vector<8x64xf32>
    %37 = arith.mulf %36, %33 : vector<8x64xf32>
    %38 = arith.addf %25, %37 : vector<8x64xf32>
    %39 = vector.extract_strided_slice %11 {offsets = [0, 256], sizes = [8, 128], strides = [1, 1]} : vector<8x1280xf32> to vector<8x128xf32>
    %c2 = arith.constant 2 : index
    %c0_31 = arith.constant 0 : index
    %c0_32 = arith.constant 0 : index
    %40 = vector.load %arg7[%c2, %c0_31, %c0_32] : memref<10x128x64xf32, #tpu.memory_space<vmem>>, vector<1x128x64xf32>
    %41 = vector.shape_cast %40 : vector<1x128x64xf32> to vector<128x64xf32>
    %cst_33 = arith.constant dense<0.000000e+00> : vector<8x64xf32>
    %42 = tpu.matmul %39, %41, %cst_33 {dimension_numbers = #tpu.dot_dimension_numbers<[1], [0], [0], [1], [0, 0, 1, 1], [], []>} : vector<8x128xf32>, vector<128x64xf32>, vector<8x64xf32> -> vector<8x64xf32>
    %c2_34 = arith.constant 2 : index
    %c0_35 = arith.constant 0 : index
    %c0_36 = arith.constant 0 : index
    %43 = vector.load %arg8[%c2_34, %c0_35, %c0_36] : memref<10x1x64xf32, #tpu.memory_space<vmem>>, vector<1x1x64xf32>
    %44 = vector.shape_cast %43 : vector<1x1x64xf32> to vector<1x64xf32>
    %45 = vector.broadcast %44 : vector<1x64xf32> to vector<8x64xf32>
    %46 = arith.addf %42, %45 : vector<8x64xf32>
    %c0_37 = arith.constant 0 : index
    %c0_38 = arith.constant 0 : index
    %c2_39 = arith.constant 2 : index
    %47 = vector.load %arg1[%c0_37, %c0_38, %c2_39] : memref<1x8x10xf32, #tpu.memory_space<vmem>>, vector<1x8x1xf32>
    %48 = vector.shape_cast %47 : vector<1x8x1xf32> to vector<8x1xf32>
    %49 = vector.broadcast %48 : vector<8x1xf32> to vector<8x64xf32>
    %50 = arith.mulf %49, %46 : vector<8x64xf32>
    %51 = arith.addf %38, %50 : vector<8x64xf32>
    %52 = vector.extract_strided_slice %11 {offsets = [0, 384], sizes = [8, 128], strides = [1, 1]} : vector<8x1280xf32> to vector<8x128xf32>
    %c3 = arith.constant 3 : index
    %c0_40 = arith.constant 0 : index
    %c0_41 = arith.constant 0 : index
    %53 = vector.load %arg7[%c3, %c0_40, %c0_41] : memref<10x128x64xf32, #tpu.memory_space<vmem>>, vector<1x128x64xf32>
    %54 = vector.shape_cast %53 : vector<1x128x64xf32> to vector<128x64xf32>
    %cst_42 = arith.constant dense<0.000000e+00> : vector<8x64xf32>
    %55 = tpu.matmul %52, %54, %cst_42 {dimension_numbers = #tpu.dot_dimension_numbers<[1], [0], [0], [1], [0, 0, 1, 1], [], []>} : vector<8x128xf32>, vector<128x64xf32>, vector<8x64xf32> -> vector<8x64xf32>
    %c3_43 = arith.constant 3 : index
    %c0_44 = arith.constant 0 : index
    %c0_45 = arith.constant 0 : index
    %56 = vector.load %arg8[%c3_43, %c0_44, %c0_45] : memref<10x1x64xf32, #tpu.memory_space<vmem>>, vector<1x1x64xf32>
    %57 = vector.shape_cast %56 : vector<1x1x64xf32> to vector<1x64xf32>
    %58 = vector.broadcast %57 : vector<1x64xf32> to vector<8x64xf32>
    %59 = arith.addf %55, %58 : vector<8x64xf32>
    %c0_46 = arith.constant 0 : index
    %c0_47 = arith.constant 0 : index
    %c3_48 = arith.constant 3 : index
    %60 = vector.load %arg1[%c0_46, %c0_47, %c3_48] : memref<1x8x10xf32, #tpu.memory_space<vmem>>, vector<1x8x1xf32>
    %61 = vector.shape_cast %60 : vector<1x8x1xf32> to vector<8x1xf32>
    %62 = vector.broadcast %61 : vector<8x1xf32> to vector<8x64xf32>
    %63 = arith.mulf %62, %59 : vector<8x64xf32>
    %64 = arith.addf %51, %63 : vector<8x64xf32>
    %65 = vector.extract_strided_slice %11 {offsets = [0, 512], sizes = [8, 128], strides = [1, 1]} : vector<8x1280xf32> to vector<8x128xf32>
    %c4 = arith.constant 4 : index
    %c0_49 = arith.constant 0 : index
    %c0_50 = arith.constant 0 : index
    %66 = vector.load %arg7[%c4, %c0_49, %c0_50] : memref<10x128x64xf32, #tpu.memory_space<vmem>>, vector<1x128x64xf32>
    %67 = vector.shape_cast %66 : vector<1x128x64xf32> to vector<128x64xf32>
    %cst_51 = arith.constant dense<0.000000e+00> : vector<8x64xf32>
    %68 = tpu.matmul %65, %67, %cst_51 {dimension_numbers = #tpu.dot_dimension_numbers<[1], [0], [0], [1], [0, 0, 1, 1], [], []>} : vector<8x128xf32>, vector<128x64xf32>, vector<8x64xf32> -> vector<8x64xf32>
    %c4_52 = arith.constant 4 : index
    %c0_53 = arith.constant 0 : index
    %c0_54 = arith.constant 0 : index
    %69 = vector.load %arg8[%c4_52, %c0_53, %c0_54] : memref<10x1x64xf32, #tpu.memory_space<vmem>>, vector<1x1x64xf32>
    %70 = vector.shape_cast %69 : vector<1x1x64xf32> to vector<1x64xf32>
    %71 = vector.broadcast %70 : vector<1x64xf32> to vector<8x64xf32>
    %72 = arith.addf %68, %71 : vector<8x64xf32>
    %c0_55 = arith.constant 0 : index
    %c0_56 = arith.constant 0 : index
    %c4_57 = arith.constant 4 : index
    %73 = vector.load %arg1[%c0_55, %c0_56, %c4_57] : memref<1x8x10xf32, #tpu.memory_space<vmem>>, vector<1x8x1xf32>
    %74 = vector.shape_cast %73 : vector<1x8x1xf32> to vector<8x1xf32>
    %75 = vector.broadcast %74 : vector<8x1xf32> to vector<8x64xf32>
    %76 = arith.mulf %75, %72 : vector<8x64xf32>
    %77 = arith.addf %64, %76 : vector<8x64xf32>
    %78 = vector.extract_strided_slice %11 {offsets = [0, 640], sizes = [8, 128], strides = [1, 1]} : vector<8x1280xf32> to vector<8x128xf32>
    %c5 = arith.constant 5 : index
    %c0_58 = arith.constant 0 : index
    %c0_59 = arith.constant 0 : index
    %79 = vector.load %arg7[%c5, %c0_58, %c0_59] : memref<10x128x64xf32, #tpu.memory_space<vmem>>, vector<1x128x64xf32>
    %80 = vector.shape_cast %79 : vector<1x128x64xf32> to vector<128x64xf32>
    %cst_60 = arith.constant dense<0.000000e+00> : vector<8x64xf32>
    %81 = tpu.matmul %78, %80, %cst_60 {dimension_numbers = #tpu.dot_dimension_numbers<[1], [0], [0], [1], [0, 0, 1, 1], [], []>} : vector<8x128xf32>, vector<128x64xf32>, vector<8x64xf32> -> vector<8x64xf32>
    %c5_61 = arith.constant 5 : index
    %c0_62 = arith.constant 0 : index
    %c0_63 = arith.constant 0 : index
    %82 = vector.load %arg8[%c5_61, %c0_62, %c0_63] : memref<10x1x64xf32, #tpu.memory_space<vmem>>, vector<1x1x64xf32>
    %83 = vector.shape_cast %82 : vector<1x1x64xf32> to vector<1x64xf32>
    %84 = vector.broadcast %83 : vector<1x64xf32> to vector<8x64xf32>
    %85 = arith.addf %81, %84 : vector<8x64xf32>
    %c0_64 = arith.constant 0 : index
    %c0_65 = arith.constant 0 : index
    %c5_66 = arith.constant 5 : index
    %86 = vector.load %arg1[%c0_64, %c0_65, %c5_66] : memref<1x8x10xf32, #tpu.memory_space<vmem>>, vector<1x8x1xf32>
    %87 = vector.shape_cast %86 : vector<1x8x1xf32> to vector<8x1xf32>
    %88 = vector.broadcast %87 : vector<8x1xf32> to vector<8x64xf32>
    %89 = arith.mulf %88, %85 : vector<8x64xf32>
    %90 = arith.addf %77, %89 : vector<8x64xf32>
    %91 = vector.extract_strided_slice %11 {offsets = [0, 768], sizes = [8, 128], strides = [1, 1]} : vector<8x1280xf32> to vector<8x128xf32>
    %c6 = arith.constant 6 : index
    %c0_67 = arith.constant 0 : index
    %c0_68 = arith.constant 0 : index
    %92 = vector.load %arg7[%c6, %c0_67, %c0_68] : memref<10x128x64xf32, #tpu.memory_space<vmem>>, vector<1x128x64xf32>
    %93 = vector.shape_cast %92 : vector<1x128x64xf32> to vector<128x64xf32>
    %cst_69 = arith.constant dense<0.000000e+00> : vector<8x64xf32>
    %94 = tpu.matmul %91, %93, %cst_69 {dimension_numbers = #tpu.dot_dimension_numbers<[1], [0], [0], [1], [0, 0, 1, 1], [], []>} : vector<8x128xf32>, vector<128x64xf32>, vector<8x64xf32> -> vector<8x64xf32>
    %c6_70 = arith.constant 6 : index
    %c0_71 = arith.constant 0 : index
    %c0_72 = arith.constant 0 : index
    %95 = vector.load %arg8[%c6_70, %c0_71, %c0_72] : memref<10x1x64xf32, #tpu.memory_space<vmem>>, vector<1x1x64xf32>
    %96 = vector.shape_cast %95 : vector<1x1x64xf32> to vector<1x64xf32>
    %97 = vector.broadcast %96 : vector<1x64xf32> to vector<8x64xf32>
    %98 = arith.addf %94, %97 : vector<8x64xf32>
    %c0_73 = arith.constant 0 : index
    %c0_74 = arith.constant 0 : index
    %c6_75 = arith.constant 6 : index
    %99 = vector.load %arg1[%c0_73, %c0_74, %c6_75] : memref<1x8x10xf32, #tpu.memory_space<vmem>>, vector<1x8x1xf32>
    %100 = vector.shape_cast %99 : vector<1x8x1xf32> to vector<8x1xf32>
    %101 = vector.broadcast %100 : vector<8x1xf32> to vector<8x64xf32>
    %102 = arith.mulf %101, %98 : vector<8x64xf32>
    %103 = arith.addf %90, %102 : vector<8x64xf32>
    %104 = vector.extract_strided_slice %11 {offsets = [0, 896], sizes = [8, 128], strides = [1, 1]} : vector<8x1280xf32> to vector<8x128xf32>
    %c7 = arith.constant 7 : index
    %c0_76 = arith.constant 0 : index
    %c0_77 = arith.constant 0 : index
    %105 = vector.load %arg7[%c7, %c0_76, %c0_77] : memref<10x128x64xf32, #tpu.memory_space<vmem>>, vector<1x128x64xf32>
    %106 = vector.shape_cast %105 : vector<1x128x64xf32> to vector<128x64xf32>
    %cst_78 = arith.constant dense<0.000000e+00> : vector<8x64xf32>
    %107 = tpu.matmul %104, %106, %cst_78 {dimension_numbers = #tpu.dot_dimension_numbers<[1], [0], [0], [1], [0, 0, 1, 1], [], []>} : vector<8x128xf32>, vector<128x64xf32>, vector<8x64xf32> -> vector<8x64xf32>
    %c7_79 = arith.constant 7 : index
    %c0_80 = arith.constant 0 : index
    %c0_81 = arith.constant 0 : index
    %108 = vector.load %arg8[%c7_79, %c0_80, %c0_81] : memref<10x1x64xf32, #tpu.memory_space<vmem>>, vector<1x1x64xf32>
    %109 = vector.shape_cast %108 : vector<1x1x64xf32> to vector<1x64xf32>
    %110 = vector.broadcast %109 : vector<1x64xf32> to vector<8x64xf32>
    %111 = arith.addf %107, %110 : vector<8x64xf32>
    %c0_82 = arith.constant 0 : index
    %c0_83 = arith.constant 0 : index
    %c7_84 = arith.constant 7 : index
    %112 = vector.load %arg1[%c0_82, %c0_83, %c7_84] : memref<1x8x10xf32, #tpu.memory_space<vmem>>, vector<1x8x1xf32>
    %113 = vector.shape_cast %112 : vector<1x8x1xf32> to vector<8x1xf32>
    %114 = vector.broadcast %113 : vector<8x1xf32> to vector<8x64xf32>
    %115 = arith.mulf %114, %111 : vector<8x64xf32>
    %116 = arith.addf %103, %115 : vector<8x64xf32>
    %117 = vector.extract_strided_slice %11 {offsets = [0, 1024], sizes = [8, 128], strides = [1, 1]} : vector<8x1280xf32> to vector<8x128xf32>
    %c8 = arith.constant 8 : index
    %c0_85 = arith.constant 0 : index
    %c0_86 = arith.constant 0 : index
    %118 = vector.load %arg7[%c8, %c0_85, %c0_86] : memref<10x128x64xf32, #tpu.memory_space<vmem>>, vector<1x128x64xf32>
    %119 = vector.shape_cast %118 : vector<1x128x64xf32> to vector<128x64xf32>
    %cst_87 = arith.constant dense<0.000000e+00> : vector<8x64xf32>
    %120 = tpu.matmul %117, %119, %cst_87 {dimension_numbers = #tpu.dot_dimension_numbers<[1], [0], [0], [1], [0, 0, 1, 1], [], []>} : vector<8x128xf32>, vector<128x64xf32>, vector<8x64xf32> -> vector<8x64xf32>
    %c8_88 = arith.constant 8 : index
    %c0_89 = arith.constant 0 : index
    %c0_90 = arith.constant 0 : index
    %121 = vector.load %arg8[%c8_88, %c0_89, %c0_90] : memref<10x1x64xf32, #tpu.memory_space<vmem>>, vector<1x1x64xf32>
    %122 = vector.shape_cast %121 : vector<1x1x64xf32> to vector<1x64xf32>
    %123 = vector.broadcast %122 : vector<1x64xf32> to vector<8x64xf32>
    %124 = arith.addf %120, %123 : vector<8x64xf32>
    %c0_91 = arith.constant 0 : index
    %c0_92 = arith.constant 0 : index
    %c8_93 = arith.constant 8 : index
    %125 = vector.load %arg1[%c0_91, %c0_92, %c8_93] : memref<1x8x10xf32, #tpu.memory_space<vmem>>, vector<1x8x1xf32>
    %126 = vector.shape_cast %125 : vector<1x8x1xf32> to vector<8x1xf32>
    %127 = vector.broadcast %126 : vector<8x1xf32> to vector<8x64xf32>
    %128 = arith.mulf %127, %124 : vector<8x64xf32>
    %129 = arith.addf %116, %128 : vector<8x64xf32>
    %130 = vector.extract_strided_slice %11 {offsets = [0, 1152], sizes = [8, 128], strides = [1, 1]} : vector<8x1280xf32> to vector<8x128xf32>
    %c9 = arith.constant 9 : index
    %c0_94 = arith.constant 0 : index
    %c0_95 = arith.constant 0 : index
    %131 = vector.load %arg7[%c9, %c0_94, %c0_95] : memref<10x128x64xf32, #tpu.memory_space<vmem>>, vector<1x128x64xf32>
    %132 = vector.shape_cast %131 : vector<1x128x64xf32> to vector<128x64xf32>
    %cst_96 = arith.constant dense<0.000000e+00> : vector<8x64xf32>
    %133 = tpu.matmul %130, %132, %cst_96 {dimension_numbers = #tpu.dot_dimension_numbers<[1], [0], [0], [1], [0, 0, 1, 1], [], []>} : vector<8x128xf32>, vector<128x64xf32>, vector<8x64xf32> -> vector<8x64xf32>
    %c9_97 = arith.constant 9 : index
    %c0_98 = arith.constant 0 : index
    %c0_99 = arith.constant 0 : index
    %134 = vector.load %arg8[%c9_97, %c0_98, %c0_99] : memref<10x1x64xf32, #tpu.memory_space<vmem>>, vector<1x1x64xf32>
    %135 = vector.shape_cast %134 : vector<1x1x64xf32> to vector<1x64xf32>
    %136 = vector.broadcast %135 : vector<1x64xf32> to vector<8x64xf32>
    %137 = arith.addf %133, %136 : vector<8x64xf32>
    %c0_100 = arith.constant 0 : index
    %c0_101 = arith.constant 0 : index
    %c9_102 = arith.constant 9 : index
    %138 = vector.load %arg1[%c0_100, %c0_101, %c9_102] : memref<1x8x10xf32, #tpu.memory_space<vmem>>, vector<1x8x1xf32>
    %139 = vector.shape_cast %138 : vector<1x8x1xf32> to vector<8x1xf32>
    %140 = vector.broadcast %139 : vector<8x1xf32> to vector<8x64xf32>
    %141 = arith.mulf %140, %137 : vector<8x64xf32>
    %142 = arith.addf %129, %141 : vector<8x64xf32>
    %c0_103 = arith.constant 0 : index
    %c0_104 = arith.constant 0 : index
    %c0_105 = arith.constant 0 : index
    %143 = vector.load %arg4[%c0_103, %c0_104, %c0_105] : memref<1x8x8xf32, #tpu.memory_space<vmem>>, vector<1x8x8xf32>
    %144 = vector.shape_cast %143 : vector<1x8x8xf32> to vector<8x8xf32>
    %cst_106 = arith.constant dense<0.000000e+00> : vector<8x64xf32>
    %145 = tpu.matmul %144, %142, %cst_106 {dimension_numbers = #tpu.dot_dimension_numbers<[1], [0], [0], [1], [0, 0, 1, 1], [], []>} : vector<8x8xf32>, vector<8x64xf32>, vector<8x64xf32> -> vector<8x64xf32>
    %c0_107 = arith.constant 0 : index
    %c0_108 = arith.constant 0 : index
    %146 = vector.load %arg9[%c0_107, %c0_108] : memref<64x128xf32, #tpu.memory_space<vmem>>, vector<64x128xf32>
    %cst_109 = arith.constant dense<0.000000e+00> : vector<8x128xf32>
    %147 = tpu.matmul %145, %146, %cst_109 {dimension_numbers = #tpu.dot_dimension_numbers<[1], [0], [0], [1], [0, 0, 1, 1], [], []>} : vector<8x64xf32>, vector<64x128xf32>, vector<8x128xf32> -> vector<8x128xf32>
    %c0_110 = arith.constant 0 : index
    %c0_111 = arith.constant 0 : index
    %148 = vector.load %arg10[%c0_110, %c0_111] : memref<64x128xf32, #tpu.memory_space<vmem>>, vector<64x128xf32>
    %cst_112 = arith.constant dense<0.000000e+00> : vector<8x128xf32>
    %149 = tpu.matmul %1, %148, %cst_112 {dimension_numbers = #tpu.dot_dimension_numbers<[1], [0], [0], [1], [0, 0, 1, 1], [], []>} : vector<8x64xf32>, vector<64x128xf32>, vector<8x128xf32> -> vector<8x128xf32>
    %150 = arith.addf %147, %149 : vector<8x128xf32>
    %cst_113 = arith.constant 1.250000e-01 : f32
    %151 = vector.broadcast %cst_113 : f32 to vector<8x128xf32>
    %152 = arith.mulf %150, %151 : vector<8x128xf32>
    %c0_114 = arith.constant 0 : index
    %c0_115 = arith.constant 0 : index
    %153 = vector.load %arg11[%c0_114, %c0_115] : memref<1x128xf32, #tpu.memory_space<vmem>>, vector<1x128xf32>
    %154 = vector.broadcast %153 : vector<1x128xf32> to vector<8x128xf32>
    %155 = arith.addf %152, %154 : vector<8x128xf32>
    %cst_116 = arith.constant 0.000000e+00 : f32
    %156 = vector.broadcast %cst_116 : f32 to vector<8x128xf32>
    %157 = arith.maximumf %155, %156 : vector<8x128xf32>
    %c0_117 = arith.constant 0 : index
    %c0_118 = arith.constant 0 : index
    %158 = vector.load %arg12[%c0_117, %c0_118] : memref<128x64xf32, #tpu.memory_space<vmem>>, vector<128x64xf32>
    %cst_119 = arith.constant dense<0.000000e+00> : vector<8x64xf32>
    %159 = tpu.matmul %157, %158, %cst_119 {dimension_numbers = #tpu.dot_dimension_numbers<[1], [0], [0], [1], [0, 0, 1, 1], [], []>} : vector<8x128xf32>, vector<128x64xf32>, vector<8x64xf32> -> vector<8x64xf32>
    %c0_120 = arith.constant 0 : index
    %c0_121 = arith.constant 0 : index
    %160 = vector.load %arg13[%c0_120, %c0_121] : memref<1x64xf32, #tpu.memory_space<vmem>>, vector<1x64xf32>
    %161 = vector.broadcast %160 : vector<1x64xf32> to vector<8x64xf32>
    %162 = arith.addf %159, %161 : vector<8x64xf32>
    %c0_122 = arith.constant 0 : index
    %c0_123 = arith.constant 0 : index
    %c0_124 = arith.constant 0 : index
    %163 = vector.load %arg14[%c0_122, %c0_123, %c0_124] : memref<1x8x64xf32, #tpu.memory_space<vmem>>, vector<1x8x64xf32>
    %164 = vector.shape_cast %163 : vector<1x8x64xf32> to vector<8x64xf32>
    %165 = vector.shape_cast %162 : vector<8x64xf32> to vector<1x8x64xf32>
    tpu.vector_store %arg14[%c0_122, %c0_123, %c0_124], %165 {strides = array<i32>} : memref<1x8x64xf32, #tpu.memory_space<vmem>>, vector<1x8x64xf32>,
    return
  }
  func.func @transform_0(%arg0: i32) -> (i32, i32, i32) {
    %c0_i32 = arith.constant 0 : i32
    %c0_i32_0 = arith.constant 0 : i32
    %c0_i32_1 = arith.constant 0 : i32
    return %arg0, %c0_i32, %c0_i32_0 : i32, i32, i32
  }
  func.func @transform_1(%arg0: i32) -> (i32, i32, i32) {
    %c0_i32 = arith.constant 0 : i32
    %c0_i32_0 = arith.constant 0 : i32
    %c0_i32_1 = arith.constant 0 : i32
    return %arg0, %c0_i32, %c0_i32_0 : i32, i32, i32
  }
  func.func @transform_2(%arg0: i32) -> (i32, i32, i32) {
    %c0_i32 = arith.constant 0 : i32
    %c0_i32_0 = arith.constant 0 : i32
    %c0_i32_1 = arith.constant 0 : i32
    return %arg0, %c0_i32, %c0_i32_0 : i32, i32, i32
  }
  func.func @transform_3(%arg0: i32) -> (i32, i32, i32) {
    %c0_i32 = arith.constant 0 : i32
    %c0_i32_0 = arith.constant 0 : i32
    %c0_i32_1 = arith.constant 0 : i32
    return %arg0, %c0_i32, %c0_i32_0 : i32, i32, i32
  }
  func.func @transform_4(%arg0: i32) -> (i32, i32) {
    %c0_i32 = arith.constant 0 : i32
    %c0_i32_0 = arith.constant 0 : i32
    %c0_i32_1 = arith.constant 0 : i32
    return %c0_i32, %c0_i32_0 : i32, i32
  }
  func.func @transform_5(%arg0: i32) -> (i32, i32) {
    %c0_i32 = arith.constant 0 : i32
    %c0_i32_0 = arith.constant 0 : i32
    %c0_i32_1 = arith.constant 0 : i32
    return %c0_i32, %c0_i32_0 : i32, i32
  }
  func.func @transform_6(%arg0: i32) -> (i32, i32, i32) {
    %c0_i32 = arith.constant 0 : i32
    %c0_i32_0 = arith.constant 0 : i32
    %c0_i32_1 = arith.constant 0 : i32
    %c0_i32_2 = arith.constant 0 : i32
    return %c0_i32, %c0_i32_0, %c0_i32_1 : i32, i32, i32
  }
  func.func @transform_7(%arg0: i32) -> (i32, i32, i32) {
    %c0_i32 = arith.constant 0 : i32
    %c0_i32_0 = arith.constant 0 : i32
    %c0_i32_1 = arith.constant 0 : i32
    %c0_i32_2 = arith.constant 0 : i32
    return %c0_i32, %c0_i32_0, %c0_i32_1 : i32, i32, i32
  }
  func.func @transform_8(%arg0: i32) -> (i32, i32) {
    %c0_i32 = arith.constant 0 : i32
    %c0_i32_0 = arith.constant 0 : i32
    %c0_i32_1 = arith.constant 0 : i32
    return %c0_i32, %c0_i32_0 : i32, i32
  }
  func.func @transform_9(%arg0: i32) -> (i32, i32) {
    %c0_i32 = arith.constant 0 : i32
    %c0_i32_0 = arith.constant 0 : i32
    %c0_i32_1 = arith.constant 0 : i32
    return %c0_i32, %c0_i32_0 : i32, i32
  }
  func.func @transform_10(%arg0: i32) -> (i32, i32) {
    %c0_i32 = arith.constant 0 : i32
    %c0_i32_0 = arith.constant 0 : i32
    %c0_i32_1 = arith.constant 0 : i32
    return %c0_i32, %c0_i32_0 : i32, i32
  }
  func.func @transform_11(%arg0: i32) -> (i32, i32) {
    %c0_i32 = arith.constant 0 : i32
    %c0_i32_0 = arith.constant 0 : i32
    %c0_i32_1 = arith.constant 0 : i32
    return %c0_i32, %c0_i32_0 : i32, i32
  }
  func.func @transform_12(%arg0: i32) -> (i32, i32) {
    %c0_i32 = arith.constant 0 : i32
    %c0_i32_0 = arith.constant 0 : i32
    %c0_i32_1 = arith.constant 0 : i32
    return %c0_i32, %c0_i32_0 : i32, i32
  }
  func.func @transform_13(%arg0: i32) -> (i32, i32, i32) {
    %c0_i32 = arith.constant 0 : i32
    %c0_i32_0 = arith.constant 0 : i32
    %c0_i32_1 = arith.constant 0 : i32
    return %arg0, %c0_i32, %c0_i32_0 : i32, i32, i32
  }
}

</mosaic_0001>

<bundles_post_ra>
// kernel: ms_hgnn_hyper_forward.9
= control target key start
LH: loop header
LB: loop body
LE: loop exit
PB: predicated region body
PF: predicated region fallthrough
CT: control target
= control target key end

     0   :  { %s1765_s0 = inlined_call_operand.vmem [shape: f32[2,8,64], index: 0, kind: input, shape index: {}]   ;;  %s1766_s1 = inlined_call_operand.vmem [shape: f32[2,8,10], index: 1, kind: input, shape index: {}]   ;;  %s1767_s2 = inlined_call_operand.vmem [shape: f32[64,128], index: 2, kind: input, shape index: {}]   ;;  %s1768_s3 = inlined_call_operand.vmem [shape: f32[1,128], index: 3, kind: input, shape index: {}]   ;;  %s1769_s4 = inlined_call_operand.vmem [shape: f32[128,64], index: 4, kind: input, shape index: {}]   ;;  %s1770_s5 = inlined_call_operand.vmem [shape: f32[1,64], index: 5, kind: input, shape index: {}]   ;;  %s1771_s6 = inlined_call_operand.vmem [shape: f32[64,256], index: 6, kind: input, shape index: {}]   ;;  %s1772_s7 = inlined_call_operand.vmem [shape: f32[1,256], index: 7, kind: input, shape index: {}]   ;;  %s1773_s8 = inlined_call_operand.vmem [shape: f32[128,10], index: 8, kind: input, shape index: {}]   ;;  %s1774_s9 = inlined_call_operand.vmem [shape: f32[1,10], index: 9, kind: input, shape index: {}]   ;;  %s1775_s10 = inlined_call_operand.vmem [shape: f32[1,128], index: 10, kind: input, shape index: {}]   ;;  %s1776_s11 = inlined_call_operand.<no memory space> [shape: f32[1,1], index: 11, kind: input, shape index: {}]   ;;  %s1777_s12 = inlined_call_operand.vmem [shape: f32[2,8,10], index: 12, kind: output, shape index: {0}]   ;;  %s1778_s13 = inlined_call_operand.hbm [shape: f32[2,8,10], index: 13, kind: output, shape index: {1}]  }
   0x1   :  { %1780 = sst [smem:[#allocation8_spill]] %s1765_s0  ;;  %v19_v0 = vstv %s1776_s11 }
   0x2   :  { %20 = vst [vmem:[#allocation2] sm:$0x1] %v19_v0 }
   0x3   :  { %21 = vsyncpa [#allocation4], 0 }
   0x4   :  { %23 = vsyncpa [#allocation4 + $0x1], 0  ;;  %s1433_s27 = smov 0   ;;  %s1435_s28 = smov 0  }
   0x5   :  { %s1437_s29 = smov 0   ;;  %s1439_s30 = smov 0  }
   0x6 LB: > { %1781 = sst [smem:[#allocation6_spill]] %s1349_s29  ;;  %s1454_s11 = sadd.s32 4294967295, %s1353_s30   ;;  %s1353_s30 = sphi %s1439_s30, %s1790_s30   ;;  %s1349_s29 = sphi %s1437_s29, %s1787_s29   ;;  %s1345_s28 = sphi %s1435_s28, %s1789_s28   ;;  %s1341_s27 = sphi %s1433_s27, %s1788_s27  }
   0x7   : > { %s1010_s14 = sadd.s32 4294967294, %s1353_s30   ;;  %s1458_s15 = sadd.s32 1, %s1353_s30  }
   0x8   : > { %s324_s16 = sadd.s32 1, %s1349_s29  ;;  %s321_s17 = ssub.s32 %s1353_s30, %s1458_s15 }
   0x9   : > { %p334_p0 = scmp.ne.s32.totalorder %s1349_s29, %s1345_s28  ;;  %p322_p1 = scmp.eq.s32.totalorder %s321_s17, 0 }
   0xa   : > { %p335_p2 = scmp.eq.s32.totalorder %s1454_s11, 1  ;;  %p340_p3 = scmp.ne.s32.totalorder %s1345_s28, %s1341_s27 }
   0xb   : > { %p341_p4 = scmp.eq.s32.totalorder %s1010_s14, 1  ;;  %p1013_p7 = scmp.ge.s32.totalorder %s1353_s30, 1 }
   0xc   : > { %s1469_s18 = scalar_select %p322_p1, %s1349_s29, %s324_s16  }
   0xd   : > { %p1471_p5 = por %p335_p2, %p334_p0  ;;  %p1475_p6 = por %p341_p4, %p340_p3 }
   0xe   : > { %1782 = sst [smem:[#allocation7_spill]] %s1469_s18  ;;  %p403_p8 = scmp.lt.s32.totalorder %s1353_s30, 3 }
  0x10   : > { %p404_p9 = pnand %p1013_p7, %p403_p8 }
  0x11   : > { %v467_v1 = vld [vmem:[%s1767_s2] sm:$0xff] (!%p404_p9)  ;;  %v468_v2 = vld [vmem:[%s1767_s2 + $0x8] sm:$0xff] (!%p404_p9)  ;;  %v469_v3 = vld [vmem:[%s1767_s2 + $0x10] sm:$0xff] (!%p404_p9)  ;;  %v1355_v4 = vmov (!%p404_p9), 0.0|0.0   ;;  %vm1356_vm0 = vmmov (!%p404_p9), 0   ;;  %v1357_v7 = vmov (!%p404_p9), 0.0  }
  0x12   : > { %407 = sbr.rel (%p404_p9) target bundleno = 1227 (0x4cb), region = 68  ;;  %1162 = vmatprep.subr.bf16.mxu1 (!%p404_p9), %v1355_v4  ;;  %v1163_v5 = vpack.c.bf16 (!%p404_p9), %v468_v2, %v467_v1  ;;  %v470_v6 = vld [vmem:[%s1767_s2 + $0x18] sm:$0xff] (!%p404_p9)  ;;  %1089 = vmatprep.mubr.msk.f32.mxu1 (!%p404_p9), %vm1356_vm0, %v1357_v7  ;;  %p454_p10 = scmp.lt.s32.totalorder (!%p404_p9), %s1454_s11, 1  ;;  %v471_v9 = vld [vmem:[%s1767_s2 + $0x20] sm:$0xff] (!%p404_p9)  ;;  %v472_v10 = vld [vmem:[%s1767_s2 + $0x28] sm:$0xff] (!%p404_p9)  ;;  %vm482_vm1 = vcmask (!%p404_p9), 523264  }
  0x13   : > { %745 = vmatprep.mubr.f32.mxu0 (!%p404_p9), %v1357_v7  ;;  %v1166_v8 = vpack.c.bf16 (!%p404_p9), %v470_v6, %v469_v3  ;;  %v1169_v11 = vpack.c.bf16 (!%p404_p9), %v472_v10, %v471_v9  ;;  %v473_v12 = vld [vmem:[%s1767_s2 + $0x30] sm:$0xff] (!%p404_p9)  ;;  %v474_v13 = vld [vmem:[%s1767_s2 + $0x38] sm:$0xff] (!%p404_p9)  ;;  %s1785_s0 = sld [smem:[#allocation8_spill]] (!%p404_p9)  ;;  %v557_v15 = vld [vmem:[%s1769_s4] sm:$0xff] (!%p404_p9)  ;;  %vm868_vm2 = vcmask (!%p404_p9), 80896   ;;  %s451_s25 = sand.u32 (!%p404_p9), 1, %s1345_s28  }
  0x14   : > { %1164 = vmatpush3.bf16.msra.mxu1 (!%p404_p9), %v1163_v5  ;;  %v1172_v14 = vpack.c.bf16 (!%p404_p9), %v474_v13, %v473_v12  ;;  %v558_v16 = vld [vmem:[%s1769_s4 + $0x8] sm:$0xff] (!%p404_p9)  ;;  %v559_v19 = vld [vmem:[%s1769_s4 + $0x10] sm:$0xff] (!%p404_p9)  ;;  %v560_v20 = vld [vmem:[%s1769_s4 + $0x18] sm:$0xff] (!%p404_p9)  ;;  %s1014_s26 = sshll.u32 (!%p404_p9), %s451_s25, 3 }
  0x15   : > { %1165 = vmatprep.subr.bf16.mxu1 (!%p404_p9), %v1355_v4  ;;  %v1175_v18 = vpack.c.bf16 (!%p404_p9), %v558_v16, %v557_v15  ;;  %v1178_v21 = vpack.c.bf16 (!%p404_p9), %v560_v20, %v559_v19  ;;  %v561_v22 = vld [vmem:[%s1769_s4 + $0x20] sm:$0xff] (!%p404_p9)  ;;  %v562_v23 = vld [vmem:[%s1769_s4 + $0x28] sm:$0xff] (!%p404_p9)  ;;  %v563_v25 = vld [vmem:[%s1769_s4 + $0x30] sm:$0xff] (!%p404_p9)  ;;  %s453_s14 = scalar_lea.vmem (!%p404_p9), [#allocation3], %s1014_s26 }
  0x16   : > { %v1181_v24 = vpack.c.bf16 (!%p404_p9), %v562_v23, %v561_v22  ;;  %v564_v26 = vld [vmem:[%s1769_s4 + $0x38] sm:$0xff] (!%p404_p9)  ;;  %v565_v28 = vld [vmem:[%s1769_s4 + $0x40] sm:$0xff] (!%p404_p9)  ;;  %v566_v29 = vld [vmem:[%s1769_s4 + $0x48] sm:$0xff] (!%p404_p9)  ;;  %s915_s16 = sshll.u32 (!%p404_p9), %s453_s14, 4  ;;  %s1714_s16 = int_to_ptr.vmem [resolvable:$true] %s915_s16 }
  0x17   : > { %v1184_v27 = vpack.c.bf16 (!%p404_p9), %v564_v26, %v563_v25  ;;  %v1187_v30 = vpack.c.bf16 (!%p404_p9), %v566_v29, %v565_v28  ;;  %v567_v31 = vld [vmem:[%s1769_s4 + $0x50] sm:$0xff] (!%p404_p9)  ;;  %v568_v32 = vld [vmem:[%s1769_s4 + $0x58] sm:$0xff] (!%p404_p9)  ;;  %v569_v34 = vld [vmem:[%s1769_s4 + $0x60] sm:$0xff] (!%p404_p9)  ;;  %s1291_s26 = scalar_lea.vmem (!%p404_p9), %s1714_s16, 128 }
  0x18   : > { %1167 = vmatpush3.bf16.msra.mxu1 (!%p404_p9), %v1166_v8  ;;  %v1190_v33 = vpack.c.bf16 (!%p404_p9), %v568_v32, %v567_v31  ;;  %v570_v35 = vld [vmem:[%s1769_s4 + $0x68] sm:$0xff] (!%p404_p9)  ;;  %v571_v37 = vld [vmem:[%s1769_s4 + $0x70] sm:$0xff] (!%p404_p9)  ;;  %v572_v38 = vld [vmem:[%s1769_s4 + $0x78] sm:$0xff] (!%p404_p9)  ;;  %p1292_p11 = scmp.ne.s32.totalorder (!%p404_p9), %s1714_s16, %s1291_s26 }
  0x19   : > { %s455_s24 = scalar_select %p454_p10, %s1454_s11, 1  ;;  %1168 = vmatprep.subr.bf16.mxu1 %v1355_v4  ;;  %v1193_v36 = vpack.c.bf16 %v570_v35, %v569_v34  ;;  %v1196_v39 = vpack.c.bf16 %v572_v38, %v571_v37  ;;  %v651_v40 = vld [vmem:[%s1771_s6 + $0x8] sm:$0xff]  ;;  %v653_v41 = vld [vmem:[%s1771_s6 + $0x18] sm:$0xff]  ;;  %v650_v42 = vld [vmem:[%s1771_s6] sm:$0xff]  ;;  %v668_v34 = vlaneseq }
  0x1a   : > { %v1198_v43 = vpack.c.bf16 %v653_v41, %v651_v40  ;;  %v652_v44 = vld [vmem:[%s1771_s6 + $0x10] sm:$0xff]  ;;  %v655_v45 = vld [vmem:[%s1771_s6 + $0x28] sm:$0xff]  ;;  %v657_v46 = vld [vmem:[%s1771_s6 + $0x38] sm:$0xff]  ;;  %p1293_p12 = pnand %p1292_p11, %p1471_p5 }
  0x1b   : > { %s1513_s18 = sshll.u32 %s455_s24, 3  ;;  %v1200_v47 = vpack.c.bf16 %v652_v44, %v650_v42  ;;  %v1202_v48 = vpack.c.bf16 %v657_v46, %v655_v45  ;;  %v654_v49 = vld [vmem:[%s1771_s6 + $0x20] sm:$0xff]  ;;  %v656_v50 = vld [vmem:[%s1771_s6 + $0x30] sm:$0xff]  ;;  %v659_v51 = vld [vmem:[%s1771_s6 + $0x48] sm:$0xff]  ;;  %v669_v35 = vshrl.u32 %v668_v34, 7  ;;  %s1027_s24 = sshll.u32 %s1454_s11, 7 }
  0x1c   : > { %1170 = vmatpush3.bf16.msra.mxu1 %v1169_v11  ;;  %s457_s22 = scalar_lea.vmem %s1785_s0, %s1513_s18  ;;  %1199 = vmatprep.subr.bf16.mxu0 %v1198_v43  ;;  %v661_v52 = vld [vmem:[%s1771_s6 + $0x58] sm:$0xff]  ;;  %v1204_v53 = vpack.c.bf16 %v656_v50, %v654_v49  ;;  %v658_v55 = vld [vmem:[%s1771_s6 + $0x40] sm:$0xff]  ;;  %v660_v56 = vld [vmem:[%s1771_s6 + $0x50] sm:$0xff]  ;;  %s461_s29 = scalar_lea.vmem %s1766_s1, %s1513_s18 }
  0x1d   : > { %1171 = vmatprep.subr.bf16.mxu1 %v1355_v4  ;;  %v466_v17 = vld [vmem:[%s457_s22] sm:$0xff]  ;;  %1201 = vmatpush1.bf16.msra.mxu0 %v1200_v47  ;;  %v1206_v54 = vpack.c.bf16 %v661_v52, %v659_v51  ;;  %v663_v57 = vld [vmem:[%s1771_s6 + $0x68] sm:$0xff]  ;;  %v665_v58 = vld [vmem:[%s1771_s6 + $0x78] sm:$0xff]  ;;  %v1208_v59 = vpack.c.bf16 %v660_v56, %v658_v55  ;;  %v674_v42 = vsub.s32 1, %v669_v35  ;;  %v1358_v56 = vmov 0   ;;  %s1712_s21 = scalar_lea.hbm %s1778_s13, %s1027_s24  ;;  %s465_s23 = scalar_lea.vmem %s1777_s12, %s1513_s18 }
  0x1e   : > { %1203 = vmatprep.subr.bf16.mxu0 %v1202_v48  ;;  %v1210_v60 = vpack.c.bf16 %v665_v58, %v663_v57  ;;  %v1018_v61 = vld [vmem:[%s1768_s3] ss:$0 sm:$0xff]  ;;  %v664_v3 = vld [vmem:[%s1771_s6 + $0x70] sm:$0xff]  ;;  %v755_v8 = vld [vmem:[%s1773_s8 + $0x8] sm:$0xff]  ;;  %1281 = vset.pattern.permute.xlu1 %v1358_v56  ;;  %s899_s11 = scalar_lea.sflag [#allocation4], %s451_s25  ;;  %p1294_p13 = pneg %p1293_p12 }
  0x1f   : > { %v662_v2 = vld [vmem:[%s1771_s6 + $0x60] sm:$0xff]  ;;  %v757_v15 = vld [vmem:[%s1773_s8 + $0x18] sm:$0xff]  ;;  %v760_v20 = vld [vmem:[%s1773_s8 + $0x30] sm:$0xff]  ;;  %1282 = vset.pattern.permute.xlu0 %v1358_v56  ;;  %s1359_s24 = smov [#allocation3]  }
  0x20   : > { %1173 = vmatpush3.bf16.msra.mxu1 %v1172_v14  ;;  %v1212_v5 = vpack.c.bf16 %v664_v3, %v662_v2  ;;  %v754_v6 = vld [vmem:[%s1773_s8] sm:$0xff]  ;;  %v756_v14 = vld [vmem:[%s1773_s8 + $0x10] sm:$0xff]  ;;  %v763_v23 = vld [vmem:[%s1773_s8 + $0x48] sm:$0xff]  ;;  %s1295_s17 = sshll.u32 %s1359_s24, 4  ;;  %s1296_s17 = int_to_ptr.vmem [resolvable:$false] %s1295_s17 }
  0x21   : > { %1174 = vmatprep.subr.bf16.mxu1 %v1355_v4  ;;  %1205 = vmatpush1.bf16.msra.mxu0 %v1204_v53  ;;  %v1020_v9 = vld [vmem:[%s1770_s5] ss:$0 sm:$0xff]  ;;  %v1215_v11 = vpack.c.bf16 %v755_v8, %v754_v6  ;;  %v1218_v16 = vpack.c.bf16 %v757_v15, %v756_v14  ;;  %v764_v25 = vld [vmem:[%s1773_s8 + $0x50] sm:$0xff]  ;;  %v765_v26 = vld [vmem:[%s1773_s8 + $0x58] sm:$0xff]  ;;  %p1298_p0 = scmp.lt.s32.totalorder %s1714_s16, %s1296_s17 }
  0x22   : > { %1207 = vmatprep.subr.bf16.mxu0 %v1206_v54  ;;  %v762_v22 = vld [vmem:[%s1773_s8 + $0x40] sm:$0xff]  ;;  %v767_v29 = vld [vmem:[%s1773_s8 + $0x68] sm:$0xff]  ;;  %v768_v31 = vld [vmem:[%s1773_s8 + $0x70] sm:$0xff] }
  0x23   : > { %1090 = vmatmul.mubr.msk.f32.vlgmr.msra.gmra.mrb[0].mxu1 %vm482_vm1, %v466_v17  ;;  %v758_v17 = vld [vmem:[%s1773_s8 + $0x20] sm:$0xff]  ;;  %v769_v32 = vld [vmem:[%s1773_s8 + $0x78] sm:$0xff] }
  0x24   : > { %1176 = vmatpush3.bf16.msra.mxu1 %v1175_v18  ;;  %1124 = vmatprep.mubr.msk.f32.mxu1 %vm1356_vm0, %v1357_v7  ;;  %v759_v18 = vld [vmem:[%s1773_s8 + $0x28] sm:$0xff]  ;;  %v766_v28 = vld [vmem:[%s1773_s8 + $0x60] sm:$0xff] }
  0x25   : > { %1177 = vmatprep.subr.bf16.mxu1 %v1355_v4  ;;  %1209 = vmatpush1.bf16.msra.mxu0 %v1208_v59  ;;  %v1221_v19 = vpack.c.bf16 %v759_v18, %v758_v17  ;;  %v666_v37 = vld [vmem:[%s1772_s7] sm:$0x3] }
  0x26   : > { %1211 = vmatprep.subr.bf16.mxu0 %v1210_v60  ;;  %v675_v43 = vrot.slane %v666_v37, %v674_v42  ;;  %v1022_v44 = vld [vmem:[%s1774_s9] ss:$0 sm:$0xff] }
  0x27   : > { %v865_v46 = vld [vmem:[%s461_s29] sm:$0xff]  ;;  %s1297_s29 = scalar_lea.vmem %s1296_s17, 256 }
  0x28   : > { %1179 = vmatpush3.bf16.msra.mxu1 %v1178_v21  ;;  %v1023_v54 = vld [vmem:[%s1775_s10] ss:$0 sm:$0xff]  ;;  %p1299_p1 = scmp.lt.s32.totalorder %s1297_s29, %s1291_s26 }
  0x29   : > { %1180 = vmatprep.subr.bf16.mxu1 %v1355_v4  ;;  %1213 = vmatpush1.bf16.msra.mxu0 %v1212_v5  ;;  %v1024_v59 = vld [vmem:[#allocation2] ss:$0 sm:$0xff] }
  0x2a   : > { %1214 = vmatprep.subr.bf16.mxu0 %v1355_v4  ;;  %p1300_p2 = por %p1299_p1, %p1298_p0 }
  0x2c   : > { %1182 = vmatpush3.bf16.msra.mxu1 %v1181_v24  ;;  %v1227_v24 = vpack.c.bf16 %v763_v23, %v762_v22  ;;  %p1301_p3 = pnand %p1300_p2, %p1294_p13 }
  0x2d   : > { %1183 = vmatprep.subr.bf16.mxu1 %v1355_v4 }
  0x30   : > { %1185 = vmatpush3.bf16.msra.mxu1 %v1184_v27  ;;  %v1230_v27 = vpack.c.bf16 %v765_v26, %v764_v25 }
  0x31   : > { %1186 = vmatprep.subr.bf16.mxu1 %v1355_v4 }
  0x34   : > { %1188 = vmatpush3.bf16.msra.mxu1 %v1187_v30  ;;  %v1233_v30 = vpack.c.bf16 %v767_v29, %v766_v28 }
  0x35   : > { %1189 = vmatprep.subr.bf16.mxu1 %v1355_v4 }
  0x38   : > { %1191 = vmatpush3.bf16.msra.mxu1 %v1190_v33  ;;  %v1236_v33 = vpack.c.bf16 %v769_v32, %v768_v31 }
  0x39   : > { %1192 = vmatprep.subr.bf16.mxu1 %v1355_v4 }
  0x3c   : > { %1194 = vmatpush3.bf16.msra.mxu1 %v1193_v36  ;;  %v670_v36 = vsub.s32 0, %v669_v35 }
  0x3d   : > { %1195 = vmatprep.subr.bf16.mxu1 %v1355_v4 }
  0x3e   : > { %v671_v38 = vrot.slane %v666_v37, %v670_v36 }
  0x40   : > { %1197 = vmatpush3.bf16.msra.mxu1 %v1196_v39 }
  0xf6   : > { %v552_v62 = vpop.f32.mrb[0].mxu1 }
  0xf7   : > { %v553_v63 = vadd.f32 %v1018_v61, %v552_v62  ;;  %v1091_v0 = vpop.f32.mrb[1].mxu1 }
  0xf9   : > { %v556_v1 = vmax.f32 %v553_v63, 0.0 }
  0xfb   : > { %1125 = vmatmul.mubr.f32.vlgmr.msra.gmra.mrb[2].mxu1 %v556_v1 }
 0x1ce   : > { %v646_v10 = vpop.f32.mrb[2].mxu1 }
 0x1cf   : > { %v647_v12 = vadd.f32 %v1020_v9, %v646_v10  ;;  %v1126_v13 = vpop.f32.mrb[3].mxu1 }
 0x1d1   : > { %1021 = vmatmul.mubr.msk.f32.vlgmr.msra.gmra.mrb[0].mxu0 %vm482_vm1, %v647_v12 }
 0x1d2   : > { %1216 = vmatpush3.bf16.msra.mxu0 %v1215_v11  ;;  %1159 = vmatprep.mubr.msk.f32.mxu0 %vm1356_vm0, %v1357_v7  ;;  %v761_v7 = vld [vmem:[%s1773_s8 + $0x38] sm:$0xff] }
 0x1d3   : > { %1217 = vmatprep.subr.bf16.mxu0 %v1355_v4  ;;  %v1224_v21 = vpack.c.bf16 %v761_v7, %v760_v20 }
 0x1d6   : > { %1219 = vmatpush3.bf16.msra.mxu0 %v1218_v16 }
 0x1d7   : > { %1220 = vmatprep.subr.bf16.mxu0 %v1355_v4 }
 0x1da   : > { %1222 = vmatpush3.bf16.msra.mxu0 %v1221_v19 }
 0x1db   : > { %1223 = vmatprep.subr.bf16.mxu0 %v1355_v4 }
 0x1de   : > { %1225 = vmatpush3.bf16.msra.mxu0 %v1224_v21 }
 0x1df   : > { %1226 = vmatprep.subr.bf16.mxu0 %v1355_v4 }
 0x1e2   : > { %1228 = vmatpush3.bf16.msra.mxu0 %v1227_v24 }
 0x1e3   : > { %1229 = vmatprep.subr.bf16.mxu0 %v1355_v4 }
 0x1e6   : > { %1231 = vmatpush3.bf16.msra.mxu0 %v1230_v27 }
 0x1e7   : > { %1232 = vmatprep.subr.bf16.mxu0 %v1355_v4 }
 0x1ea   : > { %1234 = vmatpush3.bf16.msra.mxu0 %v1233_v30 }
 0x1eb   : > { %1235 = vmatprep.subr.bf16.mxu0 %v1355_v4 }
 0x1ee   : > { %1237 = vmatpush3.bf16.msra.mxu0 %v1236_v33 }
 0x2a4   : > { %v747_v4 = vpop.f32.mrb[0].mxu0 }
 0x2a5   : > { %v748_v39 = vadd.f32 %v747_v4, %v671_v38  ;;  %v749_v40 = vpop.f32.mrb[1].mxu0 }
 0x2a6   : > { %v750_v49 = vadd.f32 %v749_v40, %v675_v43 }
 0x2a7   : > { %v752_v41 = vmax.f32 %v748_v39, 0.0 }
 0x2a8   : > { %v753_v52 = vmax.f32 %v750_v49, 0.0 }
 0x2a9   : > { %1160 = vmatmul.mubr.f32.vlgmr.msra.gmra.mrb[2].mxu0 %v752_v41 }
 0x2aa   : > { %v854_v55 = vmul.f32 %v1023_v54, %v753_v52 }
 0x37c   : > { %v843_v45 = vpop.f32.mrb[2].mxu0 }
 0x37d   : > { %v844_v47 = vadd.f32 %v1022_v44, %v843_v45  ;;  %v1161_v48 = vpop.f32.mrb[3].mxu0 }
 0x37f   : > { %v866_v50 = vadd.f32 %v865_v46, %v844_v47 }
 0x381   : > { %v867_v51 = vmul.f32 2.0, %v866_v50 }
 0x383   : > { %v869_v53 = vsel %vm868_vm2, %v867_v51, -inf }
 0x384   : > { %870 = vmax.xlane.f32.xlu0 %v869_v53 }
 0x388   : > { %855 = vadd.xlane.f32.xlu0 %v854_v55 }
 0x411   : > { %v871_v57 = vpop.xlane.xlu0 %870 }
 0x412   : > { %v872_v58 = vsub.f32 %v867_v51, %v871_v57 }
 0x414   : > { %v873_v60 = vmul.f32 1.442695, %v872_v58 }
 0x415   : > { %v856_v61 = vpop.xlane.xlu0 %855 }
 0x416   : > { %1283 = vpow2.f32 %v873_v60  ;;  %v864_v62 = vadd.f32 %v1024_v59, %v856_v61 }
 0x418   : > { %v1025_v63 = vmul.f32 -1.442695, %v864_v62 }
 0x41a   : > { %1285 = vpow2.f32 %v1025_v63 }
 0x420   : > { %v1284_v0 = vpop.eup %1283 }
 0x421   : > { %v875_v1 = vsel %vm868_vm2, %v1284_v0, 0.0 }
 0x422   : > { %876 = vadd.xlane.f32.xlu1 %v875_v1 }
 0x424   : > { %v1286_v2 = vpop.eup %1285 }
 0x425   : > { %v883_v3 = vadd.f32 1.0, %v1286_v2 }
 0x427   : > { %1287 = vrcp.f32 %v883_v3 }
 0x431   : > { %v1288_v5 = vpop.eup %1287 }
 0x433   : > { %888 = vperm.xlu1 %1281, %v1288_v5  }
 0x4af   : > { %v877_v6 = vpop.xlane.xlu1 %876 }
 0x4b0   : > { %1289 = vrcp.f32 %v877_v6 }
 0x4b3   : > { %v889_v10 = vpop.permute.xlu1 %888 }
 0x4ba   : > { %v1290_v8 = vpop.eup %1289 }
 0x4bb   : > { %v879_v9 = vmul.f32 %v1290_v8, %v1284_v0 }
 0x4bd   : > { %v891_v11 = vmul.f32 %v889_v10, %v879_v9  ;;  %893 = vst.msk [vmem:[%s453_s14] sm:$0xff] %vm868_vm2, %v879_v9 }
 0x4be   : > { %1304 = shalt.err (!%p1301_p3)
}
 0x4bf   : > { %s1305_s25 = scalar_lea.hbm %s1712_s21, 128  ;;  %s1309_s0 = scalar_lea.hbm %s1778_s13, 256 }
 0x4c0   : > { %p1306_p4 = scmp.ne.s32.totalorder %s1712_s21, %s1305_s25  ;;  %p1310_p9 = scmp.lt.u32.totalorder %s1712_s21, %s1778_s13 }
 0x4c1   : > { %p1311_p10 = scmp.lt.u32.totalorder %s1309_s0, %s1305_s25  ;;  %p1313_p12 = scmp.lt.u32.totalorder %s1305_s25, %s1712_s21 }
 0x4c2   : > { %p1307_p7 = pnand %p1306_p4, %p1471_p5 }
 0x4c3   : > { %p1312_p11 = por %p1311_p10, %p1310_p9 }
 0x4c4   : > { %p1308_p8 = pneg %p1307_p7 }
 0x4c5   : > { %p1314_p13 = por %p1313_p12, %p1312_p11 }
 0x4c7   : > { %p1315_p0 = pnand %p1314_p13, %p1308_p8 }
 0x4c9   : > { %1318 = shalt.err (!%p1315_p0)
}
 0x4ca   : > { %1238 = dma.vmem_to_hbm [thread:$0]  (%p1471_p5), %s1714_s16, 128, %s1712_s21, %s899_s11   ;;  %892 = vst.msk [vmem:[%s465_s23] sm:$0xff] %vm868_vm2, %v891_v11 }
 0x4cb PF: > { %p1244_p1 = scmp.ge.s32.totalorder %s1353_s30, 2  ;;  %s934_s25 = sand.u32 1, %s1341_s27  }
 0x4cc   : > { %s935_s14 = scalar_lea.sflag [#allocation4], %s934_s25 }
 0x4cd   : > { %p1241_p2 = pnand %p1244_p1, %p1475_p6 }
 0x4cf   : > { %1336 = dma.done.wait (!%p1241_p2), %s935_s14, 128  }
 0x4d0   : > { %1338 = vsyncadd (!%p1241_p2), %s935_s14, 4294967168  ;;  %s1786_s19 = sld [smem:[#allocation6_spill]]  ;;  %s1787_s29 = sld [smem:[#allocation7_spill]] }
 0x4d1   : > { %p26_p5 = scmp.ge.s32.totalorder %s1458_s15, 4   ;;  %s1788_s27 = smov %s1345_s28 }
 0x4d2   : > { %s1790_s30 = smov %s1458_s15 }
 0x4d3   :  { %28 = sbr.rel (!%p26_p5) target bundleno = 6 (0x6), region = 118 }
 0x4d6   : > { %s1789_s28 = smov %s1786_s19 }
 0x4da   :  { %940 = vsyncpa [#allocation4], 1 }
 0x4db   :  { %942 = vsyncpa [#allocation4 + $0x1], 1 }

// kernel: ms_hgnn_hyper_forward.8
= control target key start
LH: loop header
LB: loop body
LE: loop exit
PB: predicated region body
PF: predicated region fallthrough
CT: control target
= control target key end

     0   :  { %s1913_s19 = smov 0   ;;  %s2383_s0 = inlined_call_operand.vmem [shape: f32[2,8,64], index: 0, kind: input, shape index: {}]   ;;  %s2384_s1 = inlined_call_operand.vmem [shape: f32[2,8,8], index: 1, kind: input, shape index: {}]   ;;  %s2385_s2 = inlined_call_operand.vmem [shape: f32[64,256], index: 2, kind: input, shape index: {}]   ;;  %s2386_s3 = inlined_call_operand.vmem [shape: f32[1,256], index: 3, kind: input, shape index: {}]   ;;  %s2387_s4 = inlined_call_operand.vmem [shape: f32[256,64], index: 4, kind: input, shape index: {}]   ;;  %s2388_s5 = inlined_call_operand.vmem [shape: f32[1,64], index: 5, kind: input, shape index: {}]   ;;  %s2389_s6 = inlined_call_operand.vmem [shape: f32[64,32], index: 6, kind: input, shape index: {}]   ;;  %s2390_s7 = inlined_call_operand.vmem [shape: f32[1,32], index: 7, kind: input, shape index: {}]   ;;  %s2391_s8 = inlined_call_operand.vmem [shape: f32[64,32], index: 8, kind: input, shape index: {}]   ;;  %s2392_s9 = inlined_call_operand.vmem [shape: f32[1,1,32], index: 9, kind: input, shape index: {}]   ;;  %s2393_s10 = inlined_call_operand.<no memory space> [shape: f32[1,1], index: 10, kind: input, shape index: {}]   ;;  %s2394_s11 = inlined_call_operand.vmem [shape: f32[2,8,64], index: 11, kind: output, shape index: {}]  }
   0x1   :  { %v16_v0 = vstv %s2393_s10 }
   0x2   :  { %17 = vst [vmem:[#allocation2] sm:$0x1] %v16_v0 }
   0x3 LB: > { %s1594_s20 = sadd.s32 4294967295, %s1843_s19   ;;  %p1598_p0 = scmp.ge.s32.totalorder %s1843_s19, 1  ;;  %s1843_s19 = sphi %s1913_s19, %s23_s19  }
   0x4   : > { %p347_p1 = scmp.lt.s32.totalorder %s1843_s19, 3 }
   0x6   : > { %p348_p2 = pnand %p1598_p0, %p347_p1 }
   0x7   : > { %v403_v1 = vld [vmem:[%s2385_s2 + $0x8] sm:$0xff] (!%p348_p2)  ;;  %v405_v2 = vld [vmem:[%s2385_s2 + $0x18] sm:$0xff] (!%p348_p2)  ;;  %v402_v3 = vld [vmem:[%s2385_s2] sm:$0xff] (!%p348_p2)  ;;  %v1845_v8 = vmov (!%p348_p2), 0.0   ;;  %p389_p3 = scmp.lt.s32.totalorder (!%p348_p2), %s1594_s20, 1  ;;  %vm430_vm0 = vcmask (!%p348_p2), 523264  }
   0x8   : > { %351 = sbr.rel (%p348_p2) target bundleno = 2110 (0x83e), region = 64  ;;  %v1718_v4 = vpack.c.bf16 (!%p348_p2), %v405_v2, %v403_v1  ;;  %v404_v5 = vld [vmem:[%s2385_s2 + $0x10] sm:$0xff] (!%p348_p2)  ;;  %v407_v6 = vld [vmem:[%s2385_s2 + $0x28] sm:$0xff] (!%p348_p2)  ;;  %v409_v7 = vld [vmem:[%s2385_s2 + $0x38] sm:$0xff] (!%p348_p2)  ;;  %498 = vmatprep.mubr.f32.mxu0 (!%p348_p2), %v1845_v8  ;;  %vm1846_vm1 = vmmov (!%p348_p2), 0   ;;  %vm617_vm2 = vcmask (!%p348_p2), 64512  }
   0x9   : > { %v1720_v9 = vpack.c.bf16 (!%p348_p2), %v404_v5, %v402_v3  ;;  %v1722_v10 = vpack.c.bf16 (!%p348_p2), %v409_v7, %v407_v6  ;;  %v406_v11 = vld [vmem:[%s2385_s2 + $0x20] sm:$0xff] (!%p348_p2)  ;;  %v408_v12 = vld [vmem:[%s2385_s2 + $0x30] sm:$0xff] (!%p348_p2)  ;;  %v411_v13 = vld [vmem:[%s2385_s2 + $0x48] sm:$0xff] (!%p348_p2)  ;;  %vm981_vm3 = vcmask (!%p348_p2), 261120   ;;  %vm1162_vm4 = vcmask (!%p348_p2), 1041409  }
   0xa   : > { %1719 = vmatprep.subr.bf16.mxu0 (!%p348_p2), %v1718_v4  ;;  %v413_v14 = vld [vmem:[%s2385_s2 + $0x58] sm:$0xff] (!%p348_p2)  ;;  %v1724_v15 = vpack.c.bf16 (!%p348_p2), %v408_v12, %v406_v11  ;;  %v410_v16 = vld [vmem:[%s2385_s2 + $0x40] sm:$0xff] (!%p348_p2)  ;;  %v412_v18 = vld [vmem:[%s2385_s2 + $0x50] sm:$0xff] (!%p348_p2)  ;;  %v420_v12 = vlaneseq (!%p348_p2)  ;;  %vm1164_vm5 = vcmask (!%p348_p2), 1042434   ;;  %vm1166_vm6 = vcmask (!%p348_p2), 1043459  }
   0xb   : > { %1721 = vmatpush1.bf16.msra.mxu0 (!%p348_p2), %v1720_v9  ;;  %v1726_v17 = vpack.c.bf16 (!%p348_p2), %v413_v14, %v411_v13  ;;  %v523_v19 = vld [vmem:[%s2387_s4 + $0x80] sm:$0xff] (!%p348_p2)  ;;  %v524_v20 = vld [vmem:[%s2387_s4 + $0x88] sm:$0xff] (!%p348_p2)  ;;  %v417_v22 = vld [vmem:[%s2385_s2 + $0x78] sm:$0xff] (!%p348_p2)  ;;  %v1728_v28 = vpack.c.bf16 (!%p348_p2), %v412_v18, %v410_v16  ;;  %vm1168_vm7 = vcmask (!%p348_p2), 1044484   ;;  %vm1170_vm8 = vcmask (!%p348_p2), 1045509  }
   0xc   : > { %1723 = vmatprep.subr.bf16.mxu0 (!%p348_p2), %v1722_v10  ;;  %v415_v21 = vld [vmem:[%s2385_s2 + $0x68] sm:$0xff] (!%p348_p2)  ;;  %v1734_v23 = vpack.c.bf16 (!%p348_p2), %v524_v20, %v523_v19  ;;  %v507_v24 = vld [vmem:[%s2387_s4] sm:$0xff] (!%p348_p2)  ;;  %v525_v26 = vld [vmem:[%s2387_s4 + $0x90] sm:$0xff] (!%p348_p2)  ;;  %v2079_v13 = vshrl.u32 (!%p348_p2), %v420_v12, 7  ;;  %vm1172_vm9 = vcmask (!%p348_p2), 1046534   ;;  %vm1174_vm10 = vcmask (!%p348_p2), 1047559  }
   0xd   : > { %v508_v25 = vld [vmem:[%s2387_s4 + $0x8] sm:$0xff] (!%p348_p2)  ;;  %v526_v27 = vld [vmem:[%s2387_s4 + $0x98] sm:$0xff] (!%p348_p2)  ;;  %v509_v31 = vld [vmem:[%s2387_s4 + $0x10] sm:$0xff] (!%p348_p2)  ;;  %v1730_v34 = vpack.c.bf16 (!%p348_p2), %v417_v22, %v415_v21 }
   0xe   : > { %1735 = vmatprep.subr.bf16.mxu1 (!%p348_p2), %v1734_v23  ;;  %v1736_v29 = vpack.c.bf16 (!%p348_p2), %v508_v25, %v507_v24  ;;  %v1738_v30 = vpack.c.bf16 (!%p348_p2), %v526_v27, %v525_v26  ;;  %v510_v32 = vld [vmem:[%s2387_s4 + $0x18] sm:$0xff] (!%p348_p2)  ;;  %v527_v33 = vld [vmem:[%s2387_s4 + $0xa0] sm:$0xff] (!%p348_p2)  ;;  %v416_v36 = vld [vmem:[%s2385_s2 + $0x70] sm:$0xff] (!%p348_p2)  ;;  %v2082_v14 = vsub.s32 (!%p348_p2), 0, %v2079_v13  ;;  %v2088_v16 = vsub.s32 (!%p348_p2), 1, %v2079_v13 }
   0xf   : > { %s2396_s20 = smov (!%p389_p3, %s1594_s20), 1  ;;  %1725 = vmatpush1.bf16.msra.mxu0 %v1724_v15  ;;  %v414_v35 = vld [vmem:[%s2385_s2 + $0x60] sm:$0xff]  ;;  %v528_v37 = vld [vmem:[%s2387_s4 + $0xa8] sm:$0xff]  ;;  %v1740_v38 = vpack.c.bf16 %v510_v32, %v509_v31  ;;  %v529_v43 = vld [vmem:[%s2387_s4 + $0xb0] sm:$0xff]  ;;  %v1847_v25 = vmov 0.0|0.0  }
  0x10   : > { %1727 = vmatprep.subr.bf16.mxu0 %v1726_v17  ;;  %s2004_s17 = sshll.u32 %s2396_s20, 3  ;;  %1737 = vmatpush3.bf16.msra.mxu1 %v1736_v29  ;;  %v1742_v39 = vpack.c.bf16 %v528_v37, %v527_v33  ;;  %v511_v40 = vld [vmem:[%s2387_s4 + $0x20] sm:$0xff]  ;;  %v512_v41 = vld [vmem:[%s2387_s4 + $0x28] sm:$0xff]  ;;  %v1732_v42 = vpack.c.bf16 %v416_v36, %v414_v35  ;;  %v530_v44 = vld [vmem:[%s2387_s4 + $0xb8] sm:$0xff] }
  0x11   : > { %1739 = vmatprep.subr.bf16.mxu1 %v1738_v30  ;;  %s392_s28 = scalar_lea.vmem %s2383_s0, %s2004_s17  ;;  %v1744_v45 = vpack.c.bf16 %v512_v41, %v511_v40  ;;  %v1746_v46 = vpack.c.bf16 %v530_v44, %v529_v43  ;;  %v513_v47 = vld [vmem:[%s2387_s4 + $0x30] sm:$0xff]  ;;  %v514_v48 = vld [vmem:[%s2387_s4 + $0x38] sm:$0xff]  ;;  %v531_v50 = vld [vmem:[%s2387_s4 + $0xc0] sm:$0xff]  ;;  %s396_s12 = scalar_lea.vmem %s2384_s1, %s2004_s17 }
  0x12   : > { %v401_v49 = vld [vmem:[%s392_s28] sm:$0xff]  ;;  %v532_v51 = vld [vmem:[%s2387_s4 + $0xc8] sm:$0xff]  ;;  %v1748_v52 = vpack.c.bf16 %v514_v48, %v513_v47  ;;  %v533_v56 = vld [vmem:[%s2387_s4 + $0xd0] sm:$0xff]  ;;  %s400_s22 = scalar_lea.vmem %s2394_s11, %s2004_s17 }
  0x13   : > { %1729 = vmatpush1.bf16.msra.mxu0 %v1728_v28  ;;  %v1750_v53 = vpack.c.bf16 %v532_v51, %v531_v50  ;;  %v515_v54 = vld [vmem:[%s2387_s4 + $0x40] sm:$0xff]  ;;  %v516_v55 = vld [vmem:[%s2387_s4 + $0x48] sm:$0xff]  ;;  %v534_v57 = vld [vmem:[%s2387_s4 + $0xd8] sm:$0xff] }
  0x14   : > { %1731 = vmatprep.subr.bf16.mxu0 %v1730_v34  ;;  %1741 = vmatpush3.bf16.msra.mxu1 %v1740_v38  ;;  %v1752_v58 = vpack.c.bf16 %v516_v55, %v515_v54  ;;  %v1754_v59 = vpack.c.bf16 %v534_v57, %v533_v56  ;;  %v517_v60 = vld [vmem:[%s2387_s4 + $0x50] sm:$0xff]  ;;  %v518_v61 = vld [vmem:[%s2387_s4 + $0x58] sm:$0xff]  ;;  %v535_v62 = vld [vmem:[%s2387_s4 + $0xe0] sm:$0xff] }
  0x15   : > { %1743 = vmatprep.subr.bf16.mxu1 %v1742_v39  ;;  %v536_v63 = vld [vmem:[%s2387_s4 + $0xe8] sm:$0xff]  ;;  %v1756_v0 = vpack.c.bf16 %v518_v61, %v517_v60  ;;  %v519_v2 = vld [vmem:[%s2387_s4 + $0x60] sm:$0xff]  ;;  %v537_v5 = vld [vmem:[%s2387_s4 + $0xf0] sm:$0xff]  ;;  %v1848_v60 = vmov 0   ;;  %v1849_v61 = vmov 1966171168  }
  0x16   : > { %v1758_v1 = vpack.c.bf16 %v536_v63, %v535_v62  ;;  %v520_v3 = vld [vmem:[%s2387_s4 + $0x68] sm:$0xff]  ;;  %v538_v6 = vld [vmem:[%s2387_s4 + $0xf8] sm:$0xff]  ;;  %v521_v9 = vld [vmem:[%s2387_s4 + $0x70] sm:$0xff]  ;;  %1803 = vset.pattern.permute.xlu0 %v1848_v60  ;;  %1804 = vset.pattern.permute.xlu1 %v1848_v60  ;;  %v863_v62 = vunpack.c.l.s4 %v1849_v61 }
  0x17   : > { %1733 = vmatpush1.bf16.msra.mxu0 %v1732_v42  ;;  %v1760_v4 = vpack.c.bf16 %v520_v3, %v519_v2  ;;  %v1762_v7 = vpack.c.bf16 %v538_v6, %v537_v5  ;;  %v522_v10 = vld [vmem:[%s2387_s4 + $0x78] sm:$0xff]  ;;  %v418_v15 = vld [vmem:[%s2386_s3] sm:$0x3]  ;;  %v780_v27 = vld [vmem:[%s2391_s8 + $0x8] sm:$0xff] }
  0x18   : > { %1670 = vmatprep.subr.mxu0 %v1845_v8  ;;  %1745 = vmatpush3.bf16.msra.mxu1 %v1744_v45  ;;  %v1764_v11 = vpack.c.bf16 %v522_v10, %v521_v9  ;;  %v423_v17 = vrot.slane %v418_v15, %v2082_v14  ;;  %v427_v18 = vrot.slane %v418_v15, %v2088_v16  ;;  %v779_v26 = vld [vmem:[%s2391_s8] sm:$0xff]  ;;  %v781_v28 = vld [vmem:[%s2391_s8 + $0x10] sm:$0xff]  ;;  %v782_v30 = vld [vmem:[%s2391_s8 + $0x18] sm:$0xff]  ;;  %v864_v63 = vunpack.c.0.s8 %v863_v62 }
  0x19   : > { %1747 = vmatprep.subr.bf16.mxu1 %v1746_v46  ;;  %v1779_v29 = vpack.c.bf16 %v780_v27, %v779_v26  ;;  %v1782_v31 = vpack.c.bf16 %v782_v30, %v781_v28  ;;  %v783_v32 = vld [vmem:[%s2391_s8 + $0x20] sm:$0xff]  ;;  %v784_v33 = vld [vmem:[%s2391_s8 + $0x28] sm:$0xff]  ;;  %v785_v35 = vld [vmem:[%s2391_s8 + $0x30] sm:$0xff] }
  0x1a   : > { %1602 = vmatmul.mubr.msk.f32.vlgmr.msra.gmra.mrb[0].mxu0 %vm430_vm0, %v401_v49  ;;  %v1785_v34 = vpack.c.bf16 %v784_v33, %v783_v32  ;;  %v786_v36 = vld [vmem:[%s2391_s8 + $0x38] sm:$0xff]  ;;  %v1603_v39 = vld [vmem:[%s2388_s5] ss:$0 sm:$0xff]  ;;  %v692_v42 = vld [vmem:[%s2389_s6 + $0x8] sm:$0xff] }
  0x1b   : > { %1672 = vmatprep.mubr.msk.f32.mxu0 %vm1846_vm1, %v1845_v8  ;;  %v1788_v37 = vpack.c.bf16 %v786_v36, %v785_v35  ;;  %v691_v41 = vld [vmem:[%s2389_s6] sm:$0xff]  ;;  %v693_v47 = vld [vmem:[%s2389_s6 + $0x10] sm:$0xff]  ;;  %v694_v48 = vld [vmem:[%s2389_s6 + $0x18] sm:$0xff] }
  0x1c   : > { %1749 = vmatpush3.bf16.msra.mxu1 %v1748_v52  ;;  %v2133_v44 = vld [vmem:[%s396_s12] sm:$0xff]  ;;  %v1767_v46 = vpack.c.bf16 %v692_v42, %v691_v41  ;;  %v1770_v49 = vpack.c.bf16 %v694_v48, %v693_v47  ;;  %v696_v51 = vld [vmem:[%s2389_s6 + $0x28] sm:$0xff]  ;;  %v698_v54 = vld [vmem:[%s2389_s6 + $0x38] sm:$0xff] }
  0x1d   : > { %1751 = vmatprep.subr.bf16.mxu1 %v1750_v53  ;;  %v695_v50 = vld [vmem:[%s2389_s6 + $0x20] sm:$0xff]  ;;  %v697_v53 = vld [vmem:[%s2389_s6 + $0x30] sm:$0xff] }
  0x1e   : > { %v1773_v52 = vpack.c.bf16 %v696_v51, %v695_v50  ;;  %v1776_v55 = vpack.c.bf16 %v698_v54, %v697_v53  ;;  %v1608_v26 = vld [vmem:[%s2392_s9] ss:$0 sm:$0xff] }
  0x20   : > { %1753 = vmatpush3.bf16.msra.mxu1 %v1752_v58 }
  0x21   : > { %1755 = vmatprep.subr.bf16.mxu1 %v1754_v59 }
  0x24   : > { %1757 = vmatpush3.bf16.msra.mxu1 %v1756_v0  ;;  %v867_v0 = vsub.s32 %v864_v63, %v2079_v13 }
  0x25   : > { %1759 = vmatprep.subr.bf16.mxu1 %v1758_v1 }
  0x28   : > { %1761 = vmatpush3.bf16.msra.mxu1 %v1760_v4 }
  0x29   : > { %1763 = vmatprep.subr.bf16.mxu1 %v1762_v7 }
  0x2c   : > { %1765 = vmatpush3.bf16.msra.mxu1 %v1764_v11 }
  0x2d   : > { %1778 = vmatprep.subr.bf16.mxu1 %v1847_v25 }
  0xed   : > { %v500_v19 = vpop.f32.mrb[0].mxu0 }
  0xee   : > { %v501_v20 = vadd.f32 %v500_v19, %v423_v17  ;;  %v502_v21 = vpop.f32.mrb[1].mxu0 }
  0xef   : > { %v503_v22 = vadd.f32 %v502_v21, %v427_v18 }
  0xf0   : > { %v505_v24 = vmax.f32 %v501_v20, 0.0 }
  0xf1   : > { %v506_v23 = vmax.f32 %v503_v22, 0.0 }
  0xf3   : > { %610 = vmatprep.mubr.f32.mxu1 %v506_v23 }
  0xf4   : > { %611 = vmatmul.mubr.f32.vlgmr.msra.gmra.mrb[0].mxu1 %v505_v24 }
  0xf5   : > { %1710 = vmatprep.mubr.msk.f32.mxu1 %vm1846_vm1, %v1845_v8  ;;  %1780 = vmatpush3.bf16.msra.mxu1 %v1779_v29 }
  0xf6   : > { %1781 = vmatprep.subr.bf16.mxu1 %v1847_v25 }
  0xf9   : > { %1783 = vmatpush3.bf16.msra.mxu1 %v1782_v31 }
  0xfa   : > { %1784 = vmatprep.subr.bf16.mxu1 %v1847_v25 }
  0xfd   : > { %1786 = vmatpush3.bf16.msra.mxu1 %v1785_v34 }
  0xfe   : > { %1787 = vmatprep.subr.bf16.mxu1 %v1847_v25 }
 0x101   : > { %1789 = vmatpush3.bf16.msra.mxu1 %v1788_v37 }
 0x1c7   : > { %v1645_v38 = vpop.f32.mrb[0].mxu1 }
 0x1c8   : > { %v1646_v40 = vpop.f32.mrb[1].mxu1 }
 0x1c9   : > { %v1647_v43 = vadd.f32 %v1646_v40, %v1645_v38 }
 0x1cb   : > { %v613_v45 = vadd.f32 %v1647_v43, %v1603_v39 }
 0x1cd   : > { %1671 = vmatpush3.msra.mxu0 %v613_v45 }
 0x1ce   : > { %1673 = vmatmul.mubr.msk.f32.vlgmr.msra.gmra.mrb[2].mxu0 %vm617_vm2, %v2133_v44  ;;  %1766 = vmatprep.subr.bf16.mxu0 %v1847_v25 }
 0x1cf   : > { %1768 = vmatpush3.bf16.msra.mxu0 %v1767_v46  ;;  %1691 = vmatprep.mubr.msk.f32.mxu0 %vm1846_vm1, %v1845_v8 }
 0x1d0   : > { %1769 = vmatprep.subr.bf16.mxu0 %v1847_v25 }
 0x1d3   : > { %1771 = vmatpush3.bf16.msra.mxu0 %v1770_v49 }
 0x1d4   : > { %1772 = vmatprep.subr.bf16.mxu0 %v1847_v25 }
 0x1d7   : > { %1774 = vmatpush3.bf16.msra.mxu0 %v1773_v52 }
 0x1d8   : > { %1775 = vmatprep.subr.bf16.mxu0 %v1847_v25 }
 0x1db   : > { %1777 = vmatpush3.bf16.msra.mxu0 %v1776_v55 }
 0x1dc   : > { %1713 = vmatprep.subr.mxu0 %v1845_v8 }
 0x1de   : > { %1692 = vmatmul.mubr.msk.f32.vlgmr.msra.gmra.mrb[4].mxu0 %vm430_vm0, %v613_v45 }
 0x1df   : > { %1714 = vmatpush3.msra.mxu0 %v613_v45  ;;  %1715 = vmatprep.mubr.msk.f32.mxu0 %vm1846_vm1, %v1845_v8  ;;  %v1605_v8 = vld [vmem:[%s2390_s7] ss:$0 sm:$0xff] }
 0x2a1   : > { %v687_v56 = vpop.f32.mrb[2].mxu0 }
 0x2a2   : > { %1711 = vmatmul.mubr.msk.f32.vlgmr.msra.gmra.mrb[2].mxu1 %vm430_vm0, %v687_v56  ;;  %v1674_v57 = vpop.f32.mrb[3].mxu0 }
 0x2b1   : > { %v775_v58 = vpop.f32.mrb[4].mxu0 }
 0x2b2   : > { %v1693_v59 = vpop.f32.mrb[5].mxu0  ;;  %v776_v17 = vadd.f32 %v1605_v8, %v775_v58  ;;  %v1609_v8 = vld [vmem:[#allocation2] ss:$0 sm:$0xff] }
 0x375   : > { %v856_v1 = vpop.f32.mrb[2].mxu1 }
 0x376   : > { %v861_v2 = vcombine.high %v856_v1, %v856_v1  ;;  %v868_v3 = vrot.slane %v856_v1, %v867_v0  ;;  %v1712_v4 = vpop.f32.mrb[3].mxu1  ;;  %v1034_v1 = vrot.slane %v2133_v44, %v2088_v16 }
 0x377   : > { %v2195_v4 = vsub.s32 3, %v2079_v13 }
 0x378   : > { %v875_v5 = vrot.slane %v861_v2, %v867_v0  ;;  %v876_v6 = vcombine.high %v868_v3, %v868_v3  ;;  %v884_v7 = vrot.slane %v868_v3, %v867_v0  ;;  %v2190_v2 = vsub.s32 2, %v2079_v13 }
 0x37a   : > { %v877_v9 = vcombine.high %v875_v5, %v875_v5  ;;  %v891_v10 = vrot.slane %v875_v5, %v867_v0  ;;  %v898_v11 = vrot.slane %v876_v6, %v867_v0  ;;  %v906_v15 = vcombine.high %v884_v7, %v884_v7 }
 0x37b   : > { %v913_v18 = vrot.slane %v884_v7, %v2082_v14  ;;  %v1041_v3 = vrot.slane %v2133_v44, %v2190_v2  ;;  %v1048_v5 = vrot.slane %v2133_v44, %v2195_v4  ;;  %v2200_v6 = vsub.s32 4, %v2079_v13 }
 0x37c   : > { %v905_v19 = vrot.slane %v877_v9, %v867_v0  ;;  %v907_v20 = vcombine.high %v891_v10, %v891_v10  ;;  %v908_v21 = vcombine.high %v898_v11, %v898_v11  ;;  %v921_v22 = vrot.slane %v906_v15, %v2082_v14 }
 0x37d   : > { %v950_v23 = vadd.f32 %v913_v18, %v776_v17  ;;  %v917_v24 = vrot.slane %v898_v11, %v2082_v14  ;;  %v929_v25 = vrot.slane %v891_v10, %v2082_v14  ;;  %v1027_v0 = vrot.slane %v2133_v44, %v2082_v14 }
 0x37e   : > { %v952_v27 = vadd.f32 %v921_v22, %v776_v17  ;;  %v925_v28 = vrot.slane %v908_v21, %v2082_v14  ;;  %v933_v29 = vrot.slane %v905_v19, %v2082_v14  ;;  %v937_v30 = vrot.slane %v907_v20, %v2082_v14 }
 0x37f   : > { %v958_v31 = vmax.f32 %v950_v23, 0.0  ;;  %v951_v32 = vadd.f32 %v917_v24, %v776_v17  ;;  %v954_v33 = vadd.f32 %v929_v25, %v776_v17  ;;  %v909_v34 = vcombine.high %v905_v19, %v905_v19 }
 0x380   : > { %v960_v35 = vmax.f32 %v952_v27, 0.0  ;;  %v953_v36 = vadd.f32 %v925_v28, %v776_v17  ;;  %v955_v37 = vadd.f32 %v933_v29, %v776_v17  ;;  %v956_v38 = vadd.f32 %v937_v30, %v776_v17 }
 0x381   : > { %v973_v39 = vmul.f32 %v1608_v26, %v958_v31  ;;  %v959_v40 = vmax.f32 %v951_v32, 0.0  ;;  %v941_v41 = vrot.slane %v909_v34, %v2082_v14  ;;  %v962_v47 = vmax.f32 %v954_v33, 0.0 }
 0x382   : > { %v975_v42 = vmul.f32 %v1608_v26, %v960_v35  ;;  %v961_v43 = vmax.f32 %v953_v36, 0.0  ;;  %v963_v51 = vmax.f32 %v955_v37, 0.0  ;;  %v964_v55 = vmax.f32 %v956_v38, 0.0 }
 0x383   : > { %v982_v45 = vsel %vm981_vm3, %v973_v39, 0.0  ;;  %v974_v46 = vmul.f32 %v1608_v26, %v959_v40  ;;  %v957_v48 = vadd.f32 %v941_v41, %v776_v17  ;;  %v977_v54 = vmul.f32 %v1608_v26, %v962_v47 }
 0x384   : > { %983 = vadd.xlane.f32.xlu0 %v982_v45  ;;  %v988_v49 = vsel %vm981_vm3, %v975_v42, 0.0  ;;  %v976_v50 = vmul.f32 %v1608_v26, %v961_v43  ;;  %v978_v58 = vmul.f32 %v1608_v26, %v963_v51  ;;  %v979_v61 = vmul.f32 %v1608_v26, %v964_v55 }
 0x385   : > { %989 = vadd.xlane.f32.xlu1 %v988_v49  ;;  %v965_v52 = vmax.f32 %v957_v48, 0.0  ;;  %v985_v53 = vsel %vm981_vm3, %v974_v46, 0.0  ;;  %v994_v60 = vsel %vm981_vm3, %v977_v54, 0.0  ;;  %v1055_v7 = vrot.slane %v2133_v44, %v2200_v6 }
 0x386   : > { %v991_v57 = vsel %vm981_vm3, %v976_v50, 0.0  ;;  %v997_v62 = vsel %vm981_vm3, %v978_v58, 0.0  ;;  %v1000_v63 = vsel %vm981_vm3, %v979_v61, 0.0  ;;  %v2205_v9 = vsub.s32 5, %v2079_v13 }
 0x387   : > { %v980_v56 = vmul.f32 %v1608_v26, %v965_v52  ;;  %v2210_v11 = vsub.s32 6, %v2079_v13  ;;  %v2215_v17 = vsub.s32 7, %v2079_v13 }
 0x388   : > { %986 = vadd.xlane.f32.xlu0 %v985_v53  ;;  %v1062_v10 = vrot.slane %v2133_v44, %v2205_v9  ;;  %v1129_v53 = vand.u32 127, %v420_v12 }
 0x389   : > { %992 = vadd.xlane.f32.xlu1 %v991_v57  ;;  %v1003_v59 = vsel %vm981_vm3, %v980_v56, 0.0  ;;  %v1069_v15 = vrot.slane %v2133_v44, %v2210_v11  ;;  %v1076_v18 = vrot.slane %v2133_v44, %v2215_v17 }
 0x38a   : > { %v2266_v56 = vsub.s32 %v1129_v53, %v2079_v13 }
 0x38c   : > { %995 = vadd.xlane.f32.xlu0 %v994_v60 }
 0x38d   : > { %998 = vadd.xlane.f32.xlu1 %v997_v62 }
 0x390   : > { %1001 = vadd.xlane.f32.xlu0 %v1000_v63 }
 0x39e   : > { %1029 = vbcast.lane.b32.xlu1 %v1027_v0, 256 }
 0x3a2   : > { %1036 = vbcast.lane.b32.xlu1 %v1034_v1, 256 }
 0x3a6   : > { %1013 = vperm.xlu0 %1803, %v1609_v8   ;;  %1043 = vbcast.lane.b32.xlu1 %v1041_v3, 256 }
 0x3aa   : > { %1050 = vbcast.lane.b32.xlu1 %v1048_v5, 256 }
 0x3ae   : > { %1057 = vbcast.lane.b32.xlu1 %v1055_v7, 256 }
 0x3b2   : > { %1064 = vbcast.lane.b32.xlu1 %v1062_v10, 256 }
 0x3b6   : > { %1071 = vbcast.lane.b32.xlu1 %v1069_v15, 256 }
 0x3da   : > { %1004 = vadd.xlane.f32.xlu1 %v1003_v59 }
 0x3eb   : > { %1078 = vbcast.lane.b32.xlu1 %v1076_v18, 256 }
 0x411   : > { %v984_v19 = vpop.xlane.xlu0 %983 }
 0x412   : > { %v990_v20 = vpop.xlane.xlu1 %989 }
 0x415   : > { %v987_v21 = vpop.xlane.xlu0 %986 }
 0x416   : > { %v993_v22 = vpop.xlane.xlu1 %992 }
 0x419   : > { %v996_v24 = vpop.xlane.xlu0 %995 }
 0x41a   : > { %v999_v23 = vpop.xlane.xlu1 %998 }
 0x41d   : > { %v1002_v26 = vpop.xlane.xlu0 %1001 }
 0x41e   : > { %v2219_v25 = vpop.permute.xlu1 %1029 }
 0x422   : > { %v2221_v27 = vpop.permute.xlu1 %1036 }
 0x425   : > { %v1014_v28 = vpop.permute.xlu0 %1013 }
 0x426   : > { %v2223_v29 = vpop.permute.xlu1 %1043  ;;  %v1017_v30 = vadd.f32 %v1014_v28, %v987_v21  ;;  %v1016_v31 = vadd.f32 %v1014_v28, %v984_v19  ;;  %v1018_v32 = vadd.f32 %v1014_v28, %v990_v20  ;;  %v1019_v34 = vadd.f32 %v1014_v28, %v993_v22 }
 0x427   : > { %v1020_v38 = vadd.f32 %v1014_v28, %v996_v24  ;;  %v1021_v41 = vadd.f32 %v1014_v28, %v999_v23  ;;  %v1022_v45 = vadd.f32 %v1014_v28, %v1002_v26 }
 0x428   : > { %v2226_v44 = vmul.f32 %v2221_v27, %v1017_v30  ;;  %v2229_v33 = vmul.f32 %v2219_v25, %v1016_v31  ;;  %v1090_v37 = vmul.f32 %v2223_v29, %v1018_v32 }
 0x42a   : > { %1108 = vperm.xlu1 %1804, %v2226_v44   ;;  %1105 = vperm.xlu0 %1803, %v2229_v33   ;;  %v2233_v35 = vpop.permute.xlu1 %1050 }
 0x42b   : > { %v2236_v36 = vmul.f32 %v2233_v35, %v1019_v34 }
 0x42e   : > { %1114 = vperm.xlu1 %1804, %v2236_v36   ;;  %1111 = vperm.xlu0 %1803, %v1090_v37   ;;  %v2240_v39 = vpop.permute.xlu1 %1057 }
 0x42f   : > { %v2243_v40 = vmul.f32 %v2240_v39, %v1020_v38 }
 0x432   : > { %1117 = vperm.xlu0 %1803, %v2243_v40   ;;  %v2246_v42 = vpop.permute.xlu1 %1064 }
 0x433   : > { %v2249_v43 = vmul.f32 %v2246_v42, %v1021_v41 }
 0x435   : > { %1120 = vperm.xlu1 %1804, %v2249_v43  }
 0x436   : > { %v2252_v46 = vpop.permute.xlu1 %1071 }
 0x437   : > { %v2255_v47 = vmul.f32 %v2252_v46, %v1022_v45 }
 0x439   : > { %1123 = vperm.xlu0 %1803, %v2255_v47  }
 0x467   : > { %v1005_v48 = vpop.xlane.xlu1 %1004 }
 0x468   : > { %v1023_v49 = vadd.f32 %v1014_v28, %v1005_v48 }
 0x46b   : > { %v2258_v50 = vpop.permute.xlu1 %1078 }
 0x46c   : > { %v2261_v51 = vmul.f32 %v2258_v50, %v1023_v49 }
 0x46e   : > { %1126 = vperm.xlu1 %1804, %v2261_v51  }
 0x4a9   : > { %v1106_v52 = vpop.permute.xlu0 %1105  ;;  %v1109_v54 = vpop.permute.xlu1 %1108 }
 0x4aa   : > { %v1137_v58 = vrot.slane %v1109_v54, %v2266_v56  ;;  %v1133_v59 = vrot.slane %v1106_v52, %v2266_v56 }
 0x4ac   : > { %v1163_v63 = vsel %vm1162_vm4, %v1137_v58, %v1133_v59 }
 0x4ad   : > { %v1112_v55 = vpop.permute.xlu0 %1111  ;;  %v1115_v57 = vpop.permute.xlu1 %1114 }
 0x4ae   : > { %v1141_v61 = vrot.slane %v1112_v55, %v2266_v56  ;;  %v1145_v12 = vrot.slane %v1115_v57, %v2266_v56 }
 0x4b0   : > { %v1165_v1 = vsel %vm1164_vm5, %v1141_v61, %v1163_v63 }
 0x4b1   : > { %v1118_v60 = vpop.permute.xlu0 %1117  ;;  %v1167_v5 = vsel %vm1166_vm6, %v1145_v12, %v1165_v1 }
 0x4b2   : > { %v1149_v13 = vrot.slane %v1118_v60, %v2266_v56 }
 0x4b4   : > { %v1121_v62 = vpop.permute.xlu1 %1120  ;;  %v1169_v7 = vsel %vm1168_vm7, %v1149_v13, %v1167_v5 }
 0x4b5   : > { %v1153_v3 = vrot.slane %v1121_v62, %v2266_v56 }
 0x4b7   : > { %v1171_v15 = vsel %vm1170_vm8, %v1153_v3, %v1169_v7 }
 0x4b8   : > { %v1124_v0 = vpop.permute.xlu0 %1123 }
 0x4b9   : > { %v1157_v8 = vrot.slane %v1124_v0, %v2266_v56 }
 0x4bb   : > { %v1173_v19 = vsel %vm1172_vm9, %v1157_v8, %v1171_v15 }
 0x4ed   : > { %v1127_v10 = vpop.permute.xlu1 %1126 }
 0x4ee   : > { %v1161_v18 = vrot.slane %v1127_v10, %v2266_v56 }
 0x4f0   : > { %v1175_v20 = vsel %vm1174_vm10, %v1161_v18, %v1173_v19 }
 0x4f1   : > { %v1177_v21 = vsel %vm617_vm2, %v1175_v20, -inf }
 0x4f2   : > { %1178 = vmax.xlane.f32.xlu0 %v1177_v21 }
 0x57f   : > { %v1179_v22 = vpop.xlane.xlu0 %1178 }
 0x580   : > { %v1184_v23 = vrot.slane %v1179_v22, %v2082_v14  ;;  %v1188_v24 = vrot.slane %v1179_v22, %v2088_v16  ;;  %v1192_v26 = vrot.slane %v1179_v22, %v2190_v2  ;;  %v1196_v32 = vrot.slane %v1179_v22, %v2195_v4 }
 0x581   : > { %v1200_v41 = vrot.slane %v1179_v22, %v2200_v6  ;;  %v1204_v49 = vrot.slane %v1179_v22, %v2205_v9 }
 0x582   : > { %v1221_v28 = vsub.f32 %v2229_v33, %v1184_v23  ;;  %v1222_v30 = vsub.f32 %v2226_v44, %v1188_v24  ;;  %v1223_v34 = vsub.f32 %v1090_v37, %v1192_v26  ;;  %v1224_v45 = vsub.f32 %v2236_v36, %v1196_v32 }
 0x583   : > { %v1225_v52 = vsub.f32 %v2243_v40, %v1200_v41  ;;  %v1208_v44 = vrot.slane %v1179_v22, %v2210_v11  ;;  %v1226_v37 = vsub.f32 %v2249_v43, %v1204_v49  ;;  %v1212_v36 = vrot.slane %v1179_v22, %v2215_v17 }
 0x584   : > { %v1229_v31 = vmul.f32 1.442695, %v1221_v28  ;;  %v1231_v38 = vmul.f32 1.442695, %v1222_v30  ;;  %v1233_v48 = vmul.f32 1.442695, %v1223_v34 }
 0x585   : > { %v1235_v33 = vmul.f32 1.442695, %v1224_v45  ;;  %v1237_v54 = vmul.f32 1.442695, %v1225_v52  ;;  %v1227_v40 = vsub.f32 %v2255_v47, %v1208_v44  ;;  %v1239_v57 = vmul.f32 1.442695, %v1226_v37 }
 0x586   : > { %1805 = vpow2.f32 %v1229_v31  ;;  %v1228_v59 = vsub.f32 %v2261_v51, %v1212_v36 }
 0x587   : > { %1807 = vpow2.f32 %v1231_v38  ;;  %v1241_v43 = vmul.f32 1.442695, %v1227_v40 }
 0x588   : > { %1809 = vpow2.f32 %v1233_v48  ;;  %v1243_v61 = vmul.f32 1.442695, %v1228_v59 }
 0x589   : > { %1811 = vpow2.f32 %v1235_v33 }
 0x58a   : > { %1813 = vpow2.f32 %v1237_v54 }
 0x58b   : > { %1815 = vpow2.f32 %v1239_v57 }
 0x58c   : > { %1817 = vpow2.f32 %v1241_v43 }
 0x58d   : > { %1819 = vpow2.f32 %v1243_v61 }
 0x590   : > { %v2294_v53 = vpop.eup %1805 }
 0x591   : > { %1254 = vperm.xlu1 %1804, %v2294_v53   ;;  %v2299_v55 = vpop.eup %1807 }
 0x592   : > { %v2304_v58 = vpop.eup %1809 }
 0x593   : > { %v2308_v60 = vpop.eup %1811 }
 0x594   : > { %v2311_v62 = vpop.eup %1813 }
 0x595   : > { %1257 = vperm.xlu1 %1804, %v2299_v55   ;;  %v2314_v47 = vpop.eup %1815 }
 0x596   : > { %v2317_v63 = vpop.eup %1817 }
 0x597   : > { %v1820_v51 = vpop.eup %1819 }
 0x599   : > { %1260 = vperm.xlu1 %1804, %v2304_v58  }
 0x59d   : > { %1263 = vperm.xlu1 %1804, %v2308_v60  }
 0x5a1   : > { %1266 = vperm.xlu1 %1804, %v2311_v62  }
 0x5a5   : > { %1269 = vperm.xlu1 %1804, %v2314_v47  }
 0x5a9   : > { %1272 = vperm.xlu1 %1804, %v2317_v63  }
 0x5ad   : > { %1275 = vperm.xlu1 %1804, %v1820_v51  }
 0x610   : > { %v1255_v12 = vpop.permute.xlu1 %1254 }
 0x611   : > { %v1280_v10 = vrot.slane %v1255_v12, %v2266_v56 }
 0x614   : > { %v1258_v0 = vpop.permute.xlu1 %1257 }
 0x615   : > { %v1284_v5 = vrot.slane %v1258_v0, %v2266_v56 }
 0x617   : > { %v1309_v20 = vsel %vm1162_vm4, %v1284_v5, %v1280_v10 }
 0x618   : > { %v1261_v1 = vpop.permute.xlu1 %1260 }
 0x619   : > { %v1288_v7 = vrot.slane %v1261_v1, %v2266_v56 }
 0x61b   : > { %v1310_v22 = vsel %vm1164_vm5, %v1288_v7, %v1309_v20 }
 0x61c   : > { %v1264_v13 = vpop.permute.xlu1 %1263 }
 0x61d   : > { %v1292_v15 = vrot.slane %v1264_v13, %v2266_v56 }
 0x61f   : > { %v1311_v24 = vsel %vm1166_vm6, %v1292_v15, %v1310_v22 }
 0x620   : > { %v1267_v3 = vpop.permute.xlu1 %1266 }
 0x621   : > { %v1296_v18 = vrot.slane %v1267_v3, %v2266_v56 }
 0x623   : > { %v1312_v26 = vsel %vm1168_vm7, %v1296_v18, %v1311_v24 }
 0x624   : > { %v1270_v8 = vpop.permute.xlu1 %1269 }
 0x625   : > { %v1300_v21 = vrot.slane %v1270_v8, %v2266_v56 }
 0x627   : > { %v1313_v30 = vsel %vm1170_vm8, %v1300_v21, %v1312_v26 }
 0x628   : > { %v1273_v19 = vpop.permute.xlu1 %1272 }
 0x629   : > { %v1304_v23 = vrot.slane %v1273_v19, %v2266_v56 }
 0x62b   : > { %v1314_v32 = vsel %vm1172_vm9, %v1304_v23, %v1313_v30 }
 0x62c   : > { %v1276_v28 = vpop.permute.xlu1 %1275 }
 0x62d   : > { %v1308_v31 = vrot.slane %v1276_v28, %v2266_v56 }
 0x62f   : > { %v1315_v34 = vsel %vm1174_vm10, %v1308_v31, %v1314_v32 }
 0x630   : > { %v1317_v38 = vsel %vm617_vm2, %v1315_v34, 0.0 }
 0x631   : > { %1318 = vadd.xlane.f32.xlu0 %v1317_v38 }
 0x6be   : > { %v1319_v41 = vpop.xlane.xlu0 %1318 }
 0x6bf   : > { %v1328_v45 = vrot.slane %v1319_v41, %v2088_v16  ;;  %v1324_v48 = vrot.slane %v1319_v41, %v2082_v14  ;;  %v1352_v49 = vrot.slane %v1319_v41, %v2215_v17  ;;  %v1332_v52 = vrot.slane %v1319_v41, %v2190_v2 }
 0x6c0   : > { %v1336_v33 = vrot.slane %v1319_v41, %v2195_v4  ;;  %v1340_v44 = vrot.slane %v1319_v41, %v2200_v6  ;;  %v1344_v37 = vrot.slane %v1319_v41, %v2205_v9  ;;  %v1348_v4 = vrot.slane %v1319_v41, %v2210_v11 }
 0x6c1   : > { %1821 = vrcp.f32 %v1328_v45 }
 0x6c2   : > { %1823 = vrcp.f32 %v1324_v48 }
 0x6c3   : > { %1825 = vrcp.f32 %v1352_v49 }
 0x6c4   : > { %1827 = vrcp.f32 %v1332_v52 }
 0x6c5   : > { %1829 = vrcp.f32 %v1336_v33 }
 0x6c6   : > { %1831 = vrcp.f32 %v1340_v44 }
 0x6c7   : > { %1833 = vrcp.f32 %v1344_v37 }
 0x6c8   : > { %1835 = vrcp.f32 %v1348_v4 }
 0x6cb   : > { %v1822_v54 = vpop.eup %1821 }
 0x6cc   : > { %v1824_v16 = vpop.eup %1823  ;;  %v1364_v14 = vmul.f32 %v1822_v54, %v2299_v55 }
 0x6cd   : > { %v1826_v36 = vpop.eup %1825  ;;  %v1362_v17 = vmul.f32 %v1824_v16, %v2294_v53 }
 0x6ce   : > { %v1828_v2 = vpop.eup %1827  ;;  %v1378_v40 = vmul.f32 %v1364_v14, %v2221_v27  ;;  %v1376_v57 = vmul.f32 %v1826_v36, %v1820_v51 }
 0x6cf   : > { %v1377_v59 = vmul.f32 %v1362_v17, %v2219_v25  ;;  %v1366_v6 = vmul.f32 %v1828_v2, %v2304_v58  ;;  %v1830_v43 = vpop.eup %1829 }
 0x6d0   : > { %1397 = vperm.xlu0 %1803, %v1378_v40   ;;  %v1384_v9 = vmul.f32 %v1376_v57, %v2258_v50  ;;  %v1368_v53 = vmul.f32 %v1830_v43, %v2308_v60  ;;  %v1832_v61 = vpop.eup %1831 }
 0x6d1   : > { %1394 = vperm.xlu1 %1804, %v1377_v59   ;;  %v1379_v55 = vmul.f32 %v1366_v6, %v2223_v29  ;;  %v1370_v11 = vmul.f32 %v1832_v61, %v2311_v62  ;;  %v1834_v25 = vpop.eup %1833 }
 0x6d2   : > { %v1380_v27 = vmul.f32 %v1368_v53, %v2233_v35  ;;  %v1372_v51 = vmul.f32 %v1834_v25, %v2314_v47  ;;  %v1836_v12 = vpop.eup %1835 }
 0x6d3   : > { %v1381_v58 = vmul.f32 %v1370_v11, %v2240_v39  ;;  %v1374_v29 = vmul.f32 %v1836_v12, %v2317_v63 }
 0x6d4   : > { %1415 = vperm.xlu0 %1803, %v1384_v9   ;;  %v1382_v50 = vmul.f32 %v1372_v51, %v2246_v42 }
 0x6d5   : > { %1400 = vperm.xlu1 %1804, %v1379_v55   ;;  %v1383_v60 = vmul.f32 %v1374_v29, %v2252_v46 }
 0x6d9   : > { %1403 = vperm.xlu1 %1804, %v1380_v27  }
 0x6dd   : > { %1406 = vperm.xlu1 %1804, %v1381_v58  }
 0x6e1   : > { %1409 = vperm.xlu1 %1804, %v1382_v50  }
 0x6e5   : > { %1412 = vperm.xlu1 %1804, %v1383_v60  }
 0x74f   : > { %v1398_v62 = vpop.permute.xlu0 %1397 }
 0x750   : > { %v1395_v0 = vpop.permute.xlu1 %1394  ;;  %v1424_v3 = vrot.slane %v1398_v62, %v2266_v56 }
 0x751   : > { %v1420_v39 = vrot.slane %v1395_v0, %v2266_v56 }
 0x753   : > { %v1449_v46 = vsel %vm1162_vm4, %v1424_v3, %v1420_v39  ;;  %v1416_v7 = vpop.permute.xlu0 %1415 }
 0x754   : > { %v1401_v35 = vpop.permute.xlu1 %1400  ;;  %v1448_v21 = vrot.slane %v1416_v7, %v2266_v56 }
 0x755   : > { %v1428_v47 = vrot.slane %v1401_v35, %v2266_v56 }
 0x757   : > { %v1450_v10 = vsel %vm1164_vm5, %v1428_v47, %v1449_v46 }
 0x758   : > { %v1404_v1 = vpop.permute.xlu1 %1403 }
 0x759   : > { %v1432_v8 = vrot.slane %v1404_v1, %v2266_v56 }
 0x75b   : > { %v1451_v15 = vsel %vm1166_vm6, %v1432_v8, %v1450_v10 }
 0x75c   : > { %v1407_v13 = vpop.permute.xlu1 %1406 }
 0x75d   : > { %v1436_v63 = vrot.slane %v1407_v13, %v2266_v56 }
 0x75f   : > { %v1452_v19 = vsel %vm1168_vm7, %v1436_v63, %v1451_v15 }
 0x760   : > { %v1410_v42 = vpop.permute.xlu1 %1409 }
 0x761   : > { %v1440_v5 = vrot.slane %v1410_v42, %v2266_v56 }
 0x763   : > { %v1453_v22 = vsel %vm1170_vm8, %v1440_v5, %v1452_v19 }
 0x764   : > { %v1413_v18 = vpop.permute.xlu1 %1412 }
 0x765   : > { %v1444_v20 = vrot.slane %v1413_v18, %v2266_v56 }
 0x767   : > { %v1454_v23 = vsel %vm1172_vm9, %v1444_v20, %v1453_v22 }
 0x768   : > { %v1455_v24 = vsel %vm1174_vm10, %v1448_v21, %v1454_v23 }
 0x769   : > { %1716 = vmatmul.mubr.msk.f32.vlgmr.msra.gmra.mrb[6].mxu0 %vm617_vm2, %v1455_v24 }
 0x83c   : > { %v1524_v26 = vpop.f32.mrb[6].mxu0 }
 0x83d   : > { %1528 = vst.msk [vmem:[%s400_s22] sm:$0xff] %vm430_vm0, %v1524_v26  ;;  %v1717_v28 = vpop.f32.mrb[7].mxu0 }
 0x83e PF: > { %s23_s19 = sadd.s32 1, %s1843_s19  }
 0x83f   : > { %p20_p4 = scmp.ge.s32.totalorder %s23_s19, 4  }
 0x841   :  { %22 = sbr.rel (!%p20_p4) target bundleno = 3 (0x3), region = 97 }

// kernel: ms_hgnn_hyper_forward.10
= control target key start
LH: loop header
LB: loop body
LE: loop exit
PB: predicated region body
PF: predicated region fallthrough
CT: control target
= control target key end

     0   :  { %s3827_s25 = smov 0   ;;  %s4940_s0 = inlined_call_operand.vmem [shape: f32[2,8,10], index: 0, kind: input, shape index: {}]   ;;  %s4941_s1 = inlined_call_operand.vmem [shape: f32[2,8,64], index: 1, kind: input, shape index: {}]   ;;  %s4942_s2 = inlined_call_operand.vmem [shape: f32[2,8,8], index: 2, kind: input, shape index: {}]   ;;  %s4943_s3 = inlined_call_operand.vmem [shape: f32[2,8,8], index: 3, kind: input, shape index: {}]   ;;  %s4944_s4 = inlined_call_operand.vmem [shape: f32[64,1280], index: 4, kind: input, shape index: {}]   ;;  %s4945_s5 = inlined_call_operand.vmem [shape: f32[1,1280], index: 5, kind: input, shape index: {}]   ;;  %s4946_s6 = inlined_call_operand.vmem [shape: f32[10,128,64], index: 6, kind: input, shape index: {}]   ;;  %s4947_s7 = inlined_call_operand.vmem [shape: f32[10,1,64], index: 7, kind: input, shape index: {}]   ;;  %s4948_s8 = inlined_call_operand.vmem [shape: f32[64,128], index: 8, kind: input, shape index: {}]   ;;  %s4949_s9 = inlined_call_operand.vmem [shape: f32[64,128], index: 9, kind: input, shape index: {}]   ;;  %s4950_s10 = inlined_call_operand.vmem [shape: f32[1,128], index: 10, kind: input, shape index: {}]   ;;  %s4951_s11 = inlined_call_operand.vmem [shape: f32[128,64], index: 11, kind: input, shape index: {}]   ;;  %s4952_s12 = inlined_call_operand.vmem [shape: f32[1,64], index: 12, kind: input, shape index: {}]   ;;  %s4953_s13 = inlined_call_operand.vmem [shape: f32[2,8,64], index: 13, kind: output, shape index: {}]  }
   0x1 LB: > { %s2505_s26 = sadd.s32 4294967295, %s3742_s25   ;;  %p2509_p0 = scmp.ge.s32.totalorder %s3742_s25, 1  ;;  %s3742_s25 = sphi %s3827_s25, %s23_s25  }
   0x2   : > { %p413_p1 = scmp.lt.s32.totalorder %s3742_s25, 3 }
   0x4   : > { %p414_p2 = pnand %p2509_p0, %p413_p1 }
   0x5   : > { %p467_p3 = scmp.lt.s32.totalorder (!%p414_p2), %s2505_s26, 1  ;;  %v564_v0 = vld [vmem:[%s4944_s4 + $0x8] sm:$0xff] (!%p414_p2)  ;;  %v574_v1 = vld [vmem:[%s4944_s4 + $0x58] sm:$0xff] (!%p414_p2)  ;;  %v3744_v2 = vmov (!%p414_p2), 0.0   ;;  %vm3745_vm0 = vmmov (!%p414_p2), 0   ;;  %v563_v6 = vld [vmem:[%s4944_s4] sm:$0xff] (!%p414_p2) }
   0x6   : > { %417 = sbr.rel (%p414_p2) target bundleno = 1440 (0x5a0), region = 72  ;;  %2900 = vmatprep.subr.mxu0 (!%p414_p2), %v3744_v2  ;;  %2902 = vmatprep.mubr.msk.f32.mxu0 (!%p414_p2), %vm3745_vm0, %v3744_v2  ;;  %v3333_v3 = vpack.c.bf16 (!%p414_p2), %v574_v1, %v564_v0  ;;  %v566_v4 = vld [vmem:[%s4944_s4 + $0x18] sm:$0xff] (!%p414_p2)  ;;  %v576_v5 = vld [vmem:[%s4944_s4 + $0x68] sm:$0xff] (!%p414_p2)  ;;  %v573_v7 = vld [vmem:[%s4944_s4 + $0x50] sm:$0xff] (!%p414_p2)  ;;  %vm489_vm1 = vcmask (!%p414_p2), 64512   ;;  %vm697_vm2 = vcmask (!%p414_p2), 523264  }
   0x7   : > { %v565_v8 = vld [vmem:[%s4944_s4 + $0x10] sm:$0xff] (!%p414_p2)  ;;  %v575_v9 = vld [vmem:[%s4944_s4 + $0x60] sm:$0xff] (!%p414_p2)  ;;  %765 = vmatprep.mubr.f32.mxu1 (!%p414_p2), %v3744_v2  ;;  %v3335_v10 = vpack.c.bf16 (!%p414_p2), %v573_v7, %v563_v6  ;;  %v584_v11 = vld [vmem:[%s4944_s4 + $0xa8] sm:$0xff] (!%p414_p2)  ;;  %v3349_v14 = vpack.c.bf16 (!%p414_p2), %v576_v5, %v566_v4 }
   0x8   : > { %3334 = vmatprep.subr.bf16.mxu1 (!%p414_p2), %v3333_v3  ;;  %v594_v12 = vld [vmem:[%s4944_s4 + $0xf8] sm:$0xff] (!%p414_p2)  ;;  %v596_v16 = vld [vmem:[%s4944_s4 + $0x108] sm:$0xff] (!%p414_p2)  ;;  %v583_v17 = vld [vmem:[%s4944_s4 + $0xa0] sm:$0xff] (!%p414_p2)  ;;  %v3351_v19 = vpack.c.bf16 (!%p414_p2), %v575_v9, %v565_v8 }
   0x9   : > { %v586_v13 = vld [vmem:[%s4944_s4 + $0xb8] sm:$0xff] (!%p414_p2)  ;;  %v3337_v15 = vpack.c.bf16 (!%p414_p2), %v594_v12, %v584_v11  ;;  %v593_v18 = vld [vmem:[%s4944_s4 + $0xf0] sm:$0xff] (!%p414_p2)  ;;  %3336 = vmatpush1.bf16.msra.mxu1 (!%p414_p2), %v3335_v10  ;;  %v604_v22 = vld [vmem:[%s4944_s4 + $0x148] sm:$0xff] (!%p414_p2) }
   0xa   : > { %v3339_v20 = vpack.c.bf16 (!%p414_p2), %v593_v18, %v583_v17  ;;  %v585_v21 = vld [vmem:[%s4944_s4 + $0xb0] sm:$0xff] (!%p414_p2)  ;;  %v3353_v24 = vpack.c.bf16 (!%p414_p2), %v596_v16, %v586_v13  ;;  %v595_v25 = vld [vmem:[%s4944_s4 + $0x100] sm:$0xff] (!%p414_p2)  ;;  %v614_v26 = vld [vmem:[%s4944_s4 + $0x198] sm:$0xff] (!%p414_p2) }
   0xb   : > { %3338 = vmatprep.subr.bf16.mxu1 (!%p414_p2), %v3337_v15  ;;  %v3341_v28 = vpack.c.bf16 (!%p414_p2), %v614_v26, %v604_v22  ;;  %v606_v29 = vld [vmem:[%s4944_s4 + $0x158] sm:$0xff] (!%p414_p2)  ;;  %v616_v30 = vld [vmem:[%s4944_s4 + $0x1a8] sm:$0xff] (!%p414_p2)  ;;  %v603_v31 = vld [vmem:[%s4944_s4 + $0x140] sm:$0xff] (!%p414_p2)  ;;  %v3355_v33 = vpack.c.bf16 (!%p414_p2), %v595_v25, %v585_v21 }
   0xc   : > { %v613_v32 = vld [vmem:[%s4944_s4 + $0x190] sm:$0xff] (!%p414_p2)  ;;  %v624_v35 = vld [vmem:[%s4944_s4 + $0x1e8] sm:$0xff] (!%p414_p2)  ;;  %v634_v36 = vld [vmem:[%s4944_s4 + $0x238] sm:$0xff] (!%p414_p2)  ;;  %v3357_v37 = vpack.c.bf16 (!%p414_p2), %v616_v30, %v606_v29 }
   0xd   : > { %s4955_s26 = smov (!%p467_p3, %s2505_s26), 1  ;;  %3340 = vmatpush1.bf16.msra.mxu1 %v3339_v20  ;;  %v3343_v34 = vpack.c.bf16 %v613_v32, %v603_v31  ;;  %v605_v38 = vld [vmem:[%s4944_s4 + $0x150] sm:$0xff]  ;;  %v615_v39 = vld [vmem:[%s4944_s4 + $0x1a0] sm:$0xff]  ;;  %v3345_v40 = vpack.c.bf16 %v634_v36, %v624_v35  ;;  %v626_v42 = vld [vmem:[%s4944_s4 + $0x1f8] sm:$0xff] }
   0xe   : > { %s3872_s17 = sshll.u32 %s4955_s26, 3  ;;  %3342 = vmatprep.subr.bf16.mxu1 %v3341_v28  ;;  %v623_v41 = vld [vmem:[%s4944_s4 + $0x1e0] sm:$0xff]  ;;  %v636_v43 = vld [vmem:[%s4944_s4 + $0x248] sm:$0xff]  ;;  %v633_v44 = vld [vmem:[%s4944_s4 + $0x230] sm:$0xff]  ;;  %v3359_v45 = vpack.c.bf16 %v615_v39, %v605_v38 }
   0xf   : > { %s3887_s26 = scalar_lea.vmem %s4941_s1, %s3872_s17  ;;  %s478_s18 = scalar_lea.vmem %s4942_s2, %s3872_s17  ;;  %v3347_v46 = vpack.c.bf16 %v633_v44, %v623_v41  ;;  %v3361_v47 = vpack.c.bf16 %v636_v43, %v626_v42  ;;  %v625_v48 = vld [vmem:[%s4944_s4 + $0x1f0] sm:$0xff]  ;;  %v635_v49 = vld [vmem:[%s4944_s4 + $0x240] sm:$0xff]  ;;  %v568_v51 = vld [vmem:[%s4944_s4 + $0x28] sm:$0xff] }
  0x10   : > { %v487_v23 = vld [vmem:[%s3887_s26] sm:$0xff]  ;;  %v3363_v50 = vpack.c.bf16 %v635_v49, %v625_v48  ;;  %v578_v52 = vld [vmem:[%s4944_s4 + $0x78] sm:$0xff]  ;;  %v580_v55 = vld [vmem:[%s4944_s4 + $0x88] sm:$0xff]  ;;  %s470_s16 = scalar_lea.vmem %s4940_s0, %s3872_s17  ;;  %s482_s20 = scalar_lea.vmem %s4943_s3, %s3872_s17 }
  0x11   : > { %2901 = vmatpush3.msra.mxu0 %v487_v23  ;;  %v488_v27 = vld [vmem:[%s478_s18] sm:$0xff]  ;;  %3344 = vmatpush1.bf16.msra.mxu1 %v3343_v34  ;;  %v570_v53 = vld [vmem:[%s4944_s4 + $0x38] sm:$0xff]  ;;  %v3365_v54 = vpack.c.bf16 %v578_v52, %v568_v51  ;;  %v577_v58 = vld [vmem:[%s4944_s4 + $0x70] sm:$0xff]  ;;  %v3746_v52 = vmov 0.0|0.0   ;;  %s486_s18 = scalar_lea.vmem %s4953_s13, %s3872_s17 }
  0x12   : > { %2903 = vmatmul.mubr.msk.f32.vlgmr.msra.gmra.mrb[0].mxu0 %vm489_vm1, %v488_v27  ;;  %3350 = vmatprep.subr.bf16.mxu0 %v3349_v14  ;;  %v3381_v56 = vpack.c.bf16 %v580_v55, %v570_v53  ;;  %v567_v57 = vld [vmem:[%s4944_s4 + $0x20] sm:$0xff]  ;;  %v569_v59 = vld [vmem:[%s4944_s4 + $0x30] sm:$0xff]  ;;  %v588_v61 = vld [vmem:[%s4944_s4 + $0xc8] sm:$0xff] }
  0x13   : > { %3352 = vmatpush1.bf16.msra.mxu0 %v3351_v19  ;;  %836 = vmatprep.mubr.f32.mxu0 %v3744_v2  ;;  %v579_v60 = vld [vmem:[%s4944_s4 + $0x80] sm:$0xff]  ;;  %v598_v62 = vld [vmem:[%s4944_s4 + $0x118] sm:$0xff]  ;;  %v600_v0 = vld [vmem:[%s4944_s4 + $0x128] sm:$0xff]  ;;  %v3367_v1 = vpack.c.bf16 %v577_v58, %v567_v57 }
  0x14   : > { %3354 = vmatprep.subr.bf16.mxu0 %v3353_v24  ;;  %3346 = vmatprep.subr.bf16.mxu1 %v3345_v40  ;;  %v590_v63 = vld [vmem:[%s4944_s4 + $0xd8] sm:$0xff]  ;;  %v3383_v3 = vpack.c.bf16 %v579_v60, %v569_v59  ;;  %v587_v4 = vld [vmem:[%s4944_s4 + $0xc0] sm:$0xff]  ;;  %v597_v5 = vld [vmem:[%s4944_s4 + $0x110] sm:$0xff]  ;;  %v3369_v6 = vpack.c.bf16 %v598_v62, %v588_v61 }
  0x15   : > { %3348 = vmatpush1.bf16.msra.mxu1 %v3347_v46  ;;  %v3385_v7 = vpack.c.bf16 %v600_v0, %v590_v63  ;;  %v589_v8 = vld [vmem:[%s4944_s4 + $0xd0] sm:$0xff]  ;;  %v599_v9 = vld [vmem:[%s4944_s4 + $0x120] sm:$0xff]  ;;  %v608_v10 = vld [vmem:[%s4944_s4 + $0x168] sm:$0xff]  ;;  %v3371_v16 = vpack.c.bf16 %v597_v5, %v587_v4 }
  0x16   : > { %3366 = vmatprep.subr.bf16.mxu1 %v3365_v54  ;;  %v618_v12 = vld [vmem:[%s4944_s4 + $0x1b8] sm:$0xff]  ;;  %v620_v14 = vld [vmem:[%s4944_s4 + $0x1c8] sm:$0xff]  ;;  %v3387_v17 = vpack.c.bf16 %v599_v9, %v589_v8  ;;  %v607_v18 = vld [vmem:[%s4944_s4 + $0x160] sm:$0xff] }
  0x17   : > { %3356 = vmatpush1.bf16.msra.mxu0 %v3355_v33  ;;  %v610_v13 = vld [vmem:[%s4944_s4 + $0x178] sm:$0xff]  ;;  %v617_v19 = vld [vmem:[%s4944_s4 + $0x1b0] sm:$0xff]  ;;  %v3373_v20 = vpack.c.bf16 %v618_v12, %v608_v10  ;;  %v619_v23 = vld [vmem:[%s4944_s4 + $0x1c0] sm:$0xff] }
  0x18   : > { %3358 = vmatprep.subr.bf16.mxu0 %v3357_v37  ;;  %v3389_v21 = vpack.c.bf16 %v620_v14, %v610_v13  ;;  %v609_v22 = vld [vmem:[%s4944_s4 + $0x170] sm:$0xff]  ;;  %v628_v24 = vld [vmem:[%s4944_s4 + $0x208] sm:$0xff]  ;;  %v638_v25 = vld [vmem:[%s4944_s4 + $0x258] sm:$0xff]  ;;  %v3375_v28 = vpack.c.bf16 %v617_v19, %v607_v18 }
  0x19   : > { %v630_v26 = vld [vmem:[%s4944_s4 + $0x218] sm:$0xff]  ;;  %v640_v27 = vld [vmem:[%s4944_s4 + $0x268] sm:$0xff]  ;;  %v3391_v29 = vpack.c.bf16 %v619_v23, %v609_v22  ;;  %v627_v30 = vld [vmem:[%s4944_s4 + $0x200] sm:$0xff]  ;;  %v3377_v31 = vpack.c.bf16 %v638_v25, %v628_v24 }
  0x1a   : > { %v3393_v32 = vpack.c.bf16 %v640_v27, %v630_v26  ;;  %v637_v33 = vld [vmem:[%s4944_s4 + $0x250] sm:$0xff]  ;;  %v639_v35 = vld [vmem:[%s4944_s4 + $0x260] sm:$0xff]  ;;  %v572_v36 = vld [vmem:[%s4944_s4 + $0x48] sm:$0xff] }
  0x1b   : > { %3360 = vmatpush1.bf16.msra.mxu0 %v3359_v45  ;;  %v629_v34 = vld [vmem:[%s4944_s4 + $0x210] sm:$0xff]  ;;  %v582_v37 = vld [vmem:[%s4944_s4 + $0x98] sm:$0xff]  ;;  %v3379_v38 = vpack.c.bf16 %v637_v33, %v627_v30  ;;  %v571_v41 = vld [vmem:[%s4944_s4 + $0x40] sm:$0xff] }
  0x1c   : > { %3362 = vmatprep.subr.bf16.mxu0 %v3361_v47  ;;  %v3395_v39 = vpack.c.bf16 %v639_v35, %v629_v34  ;;  %v3397_v40 = vpack.c.bf16 %v582_v37, %v572_v36  ;;  %v581_v42 = vld [vmem:[%s4944_s4 + $0x90] sm:$0xff]  ;;  %v592_v43 = vld [vmem:[%s4944_s4 + $0xe8] sm:$0xff]  ;;  %v602_v44 = vld [vmem:[%s4944_s4 + $0x138] sm:$0xff] }
  0x1d   : > { %v1066_v45 = vld [vmem:[%s4946_s6] sm:$0xff]  ;;  %v1067_v46 = vld [vmem:[%s4946_s6 + $0x8] sm:$0xff]  ;;  %v3399_v47 = vpack.c.bf16 %v581_v42, %v571_v41  ;;  %v3401_v48 = vpack.c.bf16 %v602_v44, %v592_v43  ;;  %v622_v54 = vld [vmem:[%s4944_s4 + $0x1d8] sm:$0xff] }
  0x1e   : > { %v591_v49 = vld [vmem:[%s4944_s4 + $0xe0] sm:$0xff]  ;;  %v612_v51 = vld [vmem:[%s4944_s4 + $0x188] sm:$0xff]  ;;  %v3414_v53 = vpack.c.bf16 %v1067_v46, %v1066_v45  ;;  %v1068_v55 = vld [vmem:[%s4946_s6 + $0x10] sm:$0xff] }
  0x1f   : > { %3364 = vmatpush1.bf16.msra.mxu0 %v3363_v50  ;;  %v601_v50 = vld [vmem:[%s4944_s4 + $0x130] sm:$0xff]  ;;  %v3405_v58 = vpack.c.bf16 %v622_v54, %v612_v51  ;;  %v611_v59 = vld [vmem:[%s4944_s4 + $0x180] sm:$0xff]  ;;  %v632_v61 = vld [vmem:[%s4944_s4 + $0x228] sm:$0xff]  ;;  %v647_v51 = vlaneseq }
  0x20   : > { %3382 = vmatprep.subr.bf16.mxu0 %v3381_v56  ;;  %v1069_v56 = vld [vmem:[%s4946_s6 + $0x18] sm:$0xff]  ;;  %v3403_v57 = vpack.c.bf16 %v601_v50, %v591_v49  ;;  %v621_v60 = vld [vmem:[%s4944_s4 + $0x1d0] sm:$0xff]  ;;  %v1070_v0 = vld [vmem:[%s4946_s6 + $0x20] sm:$0xff]  ;;  %v3747_v49 = vmov 0   ;;  %v3748_v50 = vmov 1  }
  0x21   : > { %v3417_v62 = vpack.c.bf16 %v1069_v56, %v1068_v55  ;;  %v642_v63 = vld [vmem:[%s4944_s4 + $0x278] sm:$0xff]  ;;  %v631_v5 = vld [vmem:[%s4944_s4 + $0x220] sm:$0xff]  ;;  %v1072_v8 = vld [vmem:[%s4946_s6 + $0x30] sm:$0xff]  ;;  %3724 = vset.pattern.permute.xlu0 %v3747_v49  ;;  %v4235_v54 = vshrl.u32 %v647_v51, 7 }
  0x22   : > { %v3409_v4 = vpack.c.bf16 %v642_v63, %v632_v61  ;;  %v1073_v9 = vld [vmem:[%s4946_s6 + $0x38] sm:$0xff]  ;;  %v2522_v12 = vld [vmem:[%s4946_s6 + $0x80] sm:$0xff]  ;;  %v2523_v13 = vld [vmem:[%s4946_s6 + $0x88] sm:$0xff] }
  0x23   : > { %v3423_v14 = vpack.c.bf16 %v1073_v9, %v1072_v8  ;;  %v2524_v18 = vld [vmem:[%s4946_s6 + $0x90] sm:$0xff]  ;;  %v2525_v19 = vld [vmem:[%s4946_s6 + $0x98] sm:$0xff]  ;;  %v2526_v24 = vld [vmem:[%s4946_s6 + $0xa0] sm:$0xff]  ;;  %v649_v55 = vsub.s32 0, %v4235_v54 }
  0x24   : > { %v1077_v22 = vld [vmem:[%s4946_s6 + $0x58] sm:$0xff]  ;;  %v3441_v23 = vpack.c.bf16 %v2525_v19, %v2524_v18  ;;  %v2527_v25 = vld [vmem:[%s4946_s6 + $0xa8] sm:$0xff]  ;;  %v2530_v33 = vld [vmem:[%s4946_s6 + $0xc0] sm:$0xff] }
  0x25   : > { %v1079_v27 = vld [vmem:[%s4946_s6 + $0x68] sm:$0xff]  ;;  %v2529_v30 = vld [vmem:[%s4946_s6 + $0xb8] sm:$0xff]  ;;  %v2532_v36 = vld [vmem:[%s4946_s6 + $0xd0] sm:$0xff] }
  0x26   : > { %v2531_v34 = vld [vmem:[%s4946_s6 + $0xc8] sm:$0xff]  ;;  %v2533_v37 = vld [vmem:[%s4946_s6 + $0xd8] sm:$0xff]  ;;  %v1080_v42 = vld [vmem:[%s4946_s6 + $0x70] sm:$0xff] }
  0x27   : > { %v3450_v35 = vpack.c.bf16 %v2531_v34, %v2530_v33  ;;  %v1081_v43 = vld [vmem:[%s4946_s6 + $0x78] sm:$0xff]  ;;  %v2536_v45 = vld [vmem:[%s4946_s6 + $0xf0] sm:$0xff]  ;;  %v4242_v56 = vld [vmem:[%s4945_s5] sm:$0xff] }
  0x28   : > { %v3435_v44 = vpack.c.bf16 %v1081_v43, %v1080_v42  ;;  %v2537_v46 = vld [vmem:[%s4946_s6 + $0xf8] sm:$0xff]  ;;  %v2540_v61 = vld [vmem:[%s4946_s6 + $0x100] sm:$0xff]  ;;  %v2549_v34 = vld [vmem:[%s4946_s6 + $0x148] sm:$0xff] }
  0x29   : > { %v2544_v19 = vld [vmem:[%s4946_s6 + $0x120] sm:$0xff]  ;;  %v2550_v43 = vld [vmem:[%s4946_s6 + $0x150] sm:$0xff] }
  0x2a   : > { %v2548_v33 = vld [vmem:[%s4946_s6 + $0x140] sm:$0xff] }
  0xe5   : > { %v4001_v11 = vpop.f32.mrb[0].mxu0 }
  0xe6   : > { %v2904_v15 = vpop.f32.mrb[1].mxu0  ;;  %2516 = vmatmul.mubr.msk.f32.vlgmr.msra.gmra.mrb[0].mxu1 %vm697_vm2, %v4001_v11  ;;  %2517 = vmatmul.mubr.msk.f32.vlgmr.msra.gmra.mrb[2].mxu0 %vm697_vm2, %v4001_v11 }
  0xe7   : > { %3368 = vmatpush1.bf16.msra.mxu1 %v3367_v1  ;;  %3384 = vmatpush1.bf16.msra.mxu0 %v3383_v3  ;;  %v1071_v1 = vld [vmem:[%s4946_s6 + $0x28] sm:$0xff]  ;;  %v3407_v3 = vpack.c.bf16 %v621_v60, %v611_v59  ;;  %v1074_v15 = vld [vmem:[%s4946_s6 + $0x40] sm:$0xff]  ;;  %v650_v59 = vrot.slane %v4242_v56, %v649_v55 }
  0xe8   : > { %3370 = vmatprep.subr.bf16.mxu1 %v3369_v6  ;;  %3386 = vmatprep.subr.bf16.mxu0 %v3385_v7  ;;  %v641_v6 = vld [vmem:[%s4944_s4 + $0x270] sm:$0xff]  ;;  %v3420_v7 = vpack.c.bf16 %v1071_v1, %v1070_v0  ;;  %v2558_v1 = vld [vmem:[%s4946_s6 + $0x180] sm:$0xff] }
  0xe9   : > { %907 = vmatprep.mubr.f32.mxu1 %v3744_v2  ;;  %978 = vmatprep.mubr.f32.mxu0 %v3744_v2  ;;  %v3411_v10 = vpack.c.bf16 %v641_v6, %v631_v5 }
  0xeb   : > { %3372 = vmatpush1.bf16.msra.mxu1 %v3371_v16  ;;  %3388 = vmatpush1.bf16.msra.mxu0 %v3387_v17  ;;  %v1075_v16 = vld [vmem:[%s4946_s6 + $0x48] sm:$0xff]  ;;  %v3438_v17 = vpack.c.bf16 %v2523_v13, %v2522_v12  ;;  %v2542_v12 = vld [vmem:[%s4946_s6 + $0x110] sm:$0xff]  ;;  %v2543_v13 = vld [vmem:[%s4946_s6 + $0x118] sm:$0xff] }
  0xec   : > { %3374 = vmatprep.subr.bf16.mxu1 %v3373_v20  ;;  %3390 = vmatprep.subr.bf16.mxu0 %v3389_v21  ;;  %v3426_v20 = vpack.c.bf16 %v1075_v16, %v1074_v15  ;;  %v1076_v21 = vld [vmem:[%s4946_s6 + $0x50] sm:$0xff]  ;;  %v2561_v16 = vld [vmem:[%s4946_s6 + $0x198] sm:$0xff] }
  0xed   : > { %v3429_v26 = vpack.c.bf16 %v1077_v22, %v1076_v21  ;;  %v2560_v15 = vld [vmem:[%s4946_s6 + $0x190] sm:$0xff]  ;;  %v2562_v21 = vld [vmem:[%s4946_s6 + $0x1a0] sm:$0xff]  ;;  %v2563_v22 = vld [vmem:[%s4946_s6 + $0x1a8] sm:$0xff] }
  0xee   : > { %v3489_v18 = vpack.c.bf16 %v2561_v16, %v2560_v15  ;;  %v2576_v15 = vld [vmem:[%s4946_s6 + $0x200] sm:$0xff]  ;;  %v2577_v16 = vld [vmem:[%s4946_s6 + $0x208] sm:$0xff] }
  0xef   : > { %3376 = vmatpush1.bf16.msra.mxu1 %v3375_v28  ;;  %3392 = vmatpush1.bf16.msra.mxu0 %v3391_v29  ;;  %v3444_v28 = vpack.c.bf16 %v2527_v25, %v2526_v24  ;;  %v2528_v29 = vld [vmem:[%s4946_s6 + $0xb0] sm:$0xff]  ;;  %v3492_v25 = vpack.c.bf16 %v2563_v22, %v2562_v21  ;;  %v3510_v21 = vpack.c.bf16 %v2577_v16, %v2576_v15 }
  0xf0   : > { %3378 = vmatprep.subr.bf16.mxu1 %v3377_v31  ;;  %3394 = vmatprep.subr.bf16.mxu0 %v3393_v32  ;;  %v3447_v32 = vpack.c.bf16 %v2529_v30, %v2528_v29  ;;  %v3752_v29 = vmov 5   ;;  %v2608_v16 = vld [vmem:[%s4946_s6 + $0x2f0] sm:$0xff] }
  0xf3   : > { %3380 = vmatpush1.bf16.msra.mxu1 %v3379_v38  ;;  %3396 = vmatpush1.bf16.msra.mxu0 %v3395_v39  ;;  %v3453_v38 = vpack.c.bf16 %v2533_v37, %v2532_v36  ;;  %v2534_v39 = vld [vmem:[%s4946_s6 + $0xe0] sm:$0xff] }
  0xf4   : > { %3398 = vmatprep.subr.bf16.mxu1 %v3397_v40  ;;  %3413 = vmatprep.subr.bf16.mxu0 %v3746_v52  ;;  %v2535_v40 = vld [vmem:[%s4946_s6 + $0xe8] sm:$0xff]  ;;  %v2566_v37 = vld [vmem:[%s4946_s6 + $0x1c0] sm:$0xff] }
  0xf5   : > { %v3456_v41 = vpack.c.bf16 %v2535_v40, %v2534_v39 }
  0xf6   : > { %2518 = vmatmul.mubr.msk.f32.vlgmr.msra.gmra.mrb[2].mxu1 %vm697_vm2, %v4001_v11  ;;  %2519 = vmatmul.mubr.msk.f32.vlgmr.msra.gmra.mrb[4].mxu0 %vm697_vm2, %v4001_v11 }
  0xf7   : > { %3400 = vmatpush1.bf16.msra.mxu1 %v3399_v47  ;;  %1049 = vmatprep.mubr.f32.mxu1 %v3744_v2  ;;  %v3459_v47 = vpack.c.bf16 %v2537_v46, %v2536_v45  ;;  %v2568_v45 = vld [vmem:[%s4946_s6 + $0x1d0] sm:$0xff]  ;;  %v2569_v46 = vld [vmem:[%s4946_s6 + $0x1d8] sm:$0xff] }
  0xf8   : > { %3402 = vmatprep.subr.bf16.mxu1 %v3401_v48  ;;  %3415 = vmatpush3.bf16.msra.mxu0 %v3414_v53  ;;  %v4231_v48 = vld [vmem:[%s470_s16] sm:$0xff]  ;;  %v3749_v53 = vmov 2   ;;  %v3501_v51 = vpack.c.bf16 %v2569_v46, %v2568_v45  ;;  %v2585_v46 = vld [vmem:[%s4946_s6 + $0x248] sm:$0xff] }
  0xf9   : > { %3416 = vmatprep.subr.bf16.mxu0 %v3746_v52  ;;  %2937 = vmatprep.mubr.msk.f32.mxu0 %vm3745_vm0, %v3744_v2  ;;  %v2584_v45 = vld [vmem:[%s4946_s6 + $0x240] sm:$0xff] }
  0xfa   : > { %1162 = vperm.xlu0 %3724, %v4231_v48   ;;  %3726 = vset.pattern.permute.xlu1 %v3749_v53  ;;  %v2552_v53 = vld [vmem:[%s4946_s6 + $0x160] sm:$0xff] }
  0xfb   : > { %3404 = vmatpush1.bf16.msra.mxu1 %v3403_v57  ;;  %1364 = vperm.xlu1 %3726, %v4231_v48   ;;  %v653_v57 = vsub.s32 1, %v4235_v54 }
  0xfc   : > { %3406 = vmatprep.subr.bf16.mxu1 %v3405_v58  ;;  %3418 = vmatpush3.bf16.msra.mxu0 %v3417_v62  ;;  %v3750_v58 = vmov 3   ;;  %v2541_v62 = vld [vmem:[%s4946_s6 + $0x108] sm:$0xff] }
  0xfd   : > { %3419 = vmatprep.subr.bf16.mxu0 %v3746_v52  ;;  %v654_v60 = vrot.slane %v4242_v56, %v653_v57  ;;  %v3462_v8 = vpack.c.bf16 %v2541_v62, %v2540_v61  ;;  %v2571_v61 = vld [vmem:[%s4946_s6 + $0x1e8] sm:$0xff] }
  0xfe   : > { %3725 = vset.pattern.permute.xlu0 %v3748_v50  ;;  %v657_v50 = vsub.s32 2, %v4235_v54 }
  0xff   : > { %3408 = vmatpush1.bf16.msra.mxu1 %v3407_v3  ;;  %1263 = vperm.xlu0 %3725, %v4231_v48   ;;  %v2559_v3 = vld [vmem:[%s4946_s6 + $0x188] sm:$0xff] }
 0x100   : > { %3410 = vmatprep.subr.bf16.mxu1 %v3409_v4  ;;  %3421 = vmatpush3.bf16.msra.mxu0 %v3420_v7 }
 0x101   : > { %3422 = vmatprep.subr.bf16.mxu0 %v3746_v52  ;;  %3727 = vset.pattern.permute.xlu1 %v3750_v58  ;;  %v2553_v58 = vld [vmem:[%s4946_s6 + $0x168] sm:$0xff] }
 0x102   : > { %1465 = vperm.xlu1 %3727, %v4231_v48   ;;  %v3480_v62 = vpack.c.bf16 %v2553_v58, %v2552_v53  ;;  %v2586_v53 = vld [vmem:[%s4946_s6 + $0x250] sm:$0xff]  ;;  %v2587_v58 = vld [vmem:[%s4946_s6 + $0x258] sm:$0xff] }
 0x103   : > { %3412 = vmatpush1.bf16.msra.mxu1 %v3411_v10  ;;  %v3486_v10 = vpack.c.bf16 %v2559_v3, %v2558_v1  ;;  %3729 = vset.pattern.permute.xlu0 %v3752_v29  ;;  %v4373_v3 = vld [vmem:[%s4945_s5 + $0x8] sm:$0x3]  ;;  %v2580_v29 = vld [vmem:[%s4946_s6 + $0x220] sm:$0xff] }
 0x104   : > { %3437 = vmatprep.subr.bf16.mxu1 %v3746_v52  ;;  %3424 = vmatpush3.bf16.msra.mxu0 %v3423_v14 }
 0x105   : > { %3425 = vmatprep.subr.bf16.mxu0 %v3746_v52  ;;  %1667 = vperm.xlu0 %3729, %v4231_v48  }
 0x106   : > { %2520 = vmatmul.mubr.msk.f32.vlgmr.msra.gmra.mrb[4].mxu1 %vm697_vm2, %v4001_v11  ;;  %v1078_v11 = vld [vmem:[%s4946_s6 + $0x60] sm:$0xff] }
 0x107   : > { %3439 = vmatpush3.bf16.msra.mxu1 %v3438_v17  ;;  %2972 = vmatprep.mubr.msk.f32.mxu1 %vm3745_vm0, %v3744_v2  ;;  %v3432_v31 = vpack.c.bf16 %v1079_v27, %v1078_v11  ;;  %v3465_v17 = vpack.c.bf16 %v2543_v13, %v2542_v12  ;;  %v2547_v11 = vld [vmem:[%s4946_s6 + $0x138] sm:$0xff]  ;;  %v2564_v27 = vld [vmem:[%s4946_s6 + $0x1b0] sm:$0xff] }
 0x108   : > { %3440 = vmatprep.subr.bf16.mxu1 %v3746_v52  ;;  %3427 = vmatpush3.bf16.msra.mxu0 %v3426_v20  ;;  %v2545_v20 = vld [vmem:[%s4946_s6 + $0x128] sm:$0xff] }
 0x109   : > { %3428 = vmatprep.subr.bf16.mxu0 %v3746_v52  ;;  %v3468_v24 = vpack.c.bf16 %v2545_v20, %v2544_v19 }
 0x10b   : > { %3442 = vmatpush3.bf16.msra.mxu1 %v3441_v23  ;;  %v3751_v23 = vmov 4  }
 0x10c   : > { %3443 = vmatprep.subr.bf16.mxu1 %v3746_v52  ;;  %3430 = vmatpush3.bf16.msra.mxu0 %v3429_v26  ;;  %v2546_v26 = vld [vmem:[%s4946_s6 + $0x130] sm:$0xff] }
 0x10d   : > { %3431 = vmatprep.subr.bf16.mxu0 %v3746_v52  ;;  %3728 = vset.pattern.permute.xlu1 %v3751_v23  ;;  %v3471_v30 = vpack.c.bf16 %v2547_v11, %v2546_v26  ;;  %v2578_v23 = vld [vmem:[%s4946_s6 + $0x210] sm:$0xff]  ;;  %v2597_v11 = vld [vmem:[%s4946_s6 + $0x298] sm:$0xff] }
 0x10e   : > { %1566 = vperm.xlu1 %3728, %v4231_v48   ;;  %v2596_v26 = vld [vmem:[%s4946_s6 + $0x290] sm:$0xff] }
 0x10f   : > { %3445 = vmatpush3.bf16.msra.mxu1 %v3444_v28  ;;  %v2565_v28 = vld [vmem:[%s4946_s6 + $0x1b8] sm:$0xff] }
 0x110   : > { %3446 = vmatprep.subr.bf16.mxu1 %v3746_v52  ;;  %3433 = vmatpush3.bf16.msra.mxu0 %v3432_v31  ;;  %v3753_v31 = vmov 6  }
 0x111   : > { %3434 = vmatprep.subr.bf16.mxu0 %v3746_v52 }
 0x112   : > { %3730 = vset.pattern.permute.xlu1 %v3753_v31  ;;  %v2598_v31 = vld [vmem:[%s4946_s6 + $0x2a0] sm:$0xff] }
 0x113   : > { %3448 = vmatpush3.bf16.msra.mxu1 %v3447_v32  ;;  %v3495_v32 = vpack.c.bf16 %v2565_v28, %v2564_v27  ;;  %1768 = vperm.xlu1 %3730, %v4231_v48   ;;  %v3537_v28 = vpack.c.bf16 %v2597_v11, %v2596_v26  ;;  %v2615_v11 = vld [vmem:[%s4946_s6 + $0x318] sm:$0xff] }
 0x114   : > { %3449 = vmatprep.subr.bf16.mxu1 %v3746_v52  ;;  %3436 = vmatpush3.bf16.msra.mxu0 %v3435_v44  ;;  %v2551_v44 = vld [vmem:[%s4946_s6 + $0x158] sm:$0xff] }
 0x115   : > { %3461 = vmatprep.subr.bf16.mxu0 %v3746_v52  ;;  %v3477_v49 = vpack.c.bf16 %v2551_v44, %v2550_v43 }
 0x117   : > { %3451 = vmatpush3.bf16.msra.mxu1 %v3450_v35 }
 0x118   : > { %3452 = vmatprep.subr.bf16.mxu1 %v3746_v52 }
 0x11b   : > { %3454 = vmatpush3.bf16.msra.mxu1 %v3453_v38  ;;  %v2567_v38 = vld [vmem:[%s4946_s6 + $0x1c8] sm:$0xff] }
 0x11c   : > { %3455 = vmatprep.subr.bf16.mxu1 %v3746_v52  ;;  %v3498_v42 = vpack.c.bf16 %v2567_v38, %v2566_v37  ;;  %v2582_v37 = vld [vmem:[%s4946_s6 + $0x230] sm:$0xff]  ;;  %v2583_v38 = vld [vmem:[%s4946_s6 + $0x238] sm:$0xff] }
 0x11d   : > { %v3519_v43 = vpack.c.bf16 %v2583_v38, %v2582_v37  ;;  %v2635_v37 = vld [vmem:[%s4946_s6 + $0x3a8] sm:$0xff] }
 0x11f   : > { %3457 = vmatpush3.bf16.msra.mxu1 %v3456_v41  ;;  %v3474_v41 = vpack.c.bf16 %v2549_v34, %v2548_v33 }
 0x120   : > { %3458 = vmatprep.subr.bf16.mxu1 %v3746_v52 }
 0x123   : > { %3460 = vmatpush3.bf16.msra.mxu1 %v3459_v47  ;;  %v3754_v47 = vmov 7  }
 0x124   : > { %3485 = vmatprep.subr.bf16.mxu1 %v3746_v52  ;;  %3731 = vset.pattern.permute.xlu1 %v3754_v47  ;;  %v2602_v47 = vld [vmem:[%s4946_s6 + $0x2c0] sm:$0xff] }
 0x125   : > { %1869 = vperm.xlu1 %3731, %v4231_v48  }
 0x1b9   : > { %v767_v63 = vpop.f32.mrb[0].mxu1  ;;  %v4258_v0 = vpop.f32.mrb[2].mxu0 }
 0x1ba   : > { %v768_v4 = vadd.f32 %v767_v63, %v650_v59  ;;  %v769_v5 = vpop.f32.mrb[1].mxu1  ;;  %v4266_v6 = vpop.f32.mrb[3].mxu0  ;;  %v661_v59 = vsub.s32 3, %v4235_v54  ;;  %v658_v63 = vrot.slane %v4242_v56, %v657_v50  ;;  %v3522_v50 = vpack.c.bf16 %v2585_v46, %v2584_v45  ;;  %v2637_v45 = vld [vmem:[%s4946_s6 + $0x3b8] sm:$0xff] }
 0x1bb   : > { %v770_v7 = vadd.f32 %v769_v5, %v654_v60  ;;  %v2570_v60 = vld [vmem:[%s4946_s6 + $0x1e0] sm:$0xff]  ;;  %v2555_v5 = vld [vmem:[%s4946_s6 + $0x178] sm:$0xff] }
 0x1bc   : > { %v1056_v9 = vmax.f32 %v768_v4, 0.0  ;;  %v3504_v1 = vpack.c.bf16 %v2571_v61, %v2570_v60  ;;  %v2554_v4 = vld [vmem:[%s4946_s6 + $0x170] sm:$0xff]  ;;  %v839_v13 = vadd.f32 %v4258_v0, %v658_v63  ;;  %v2595_v0 = vld [vmem:[%s4946_s6 + $0x288] sm:$0xff]  ;;  %v2605_v60 = vld [vmem:[%s4946_s6 + $0x2d8] sm:$0xff]  ;;  %v3525_v61 = vpack.c.bf16 %v2587_v58, %v2586_v53 }
 0x1bd   : > { %v1057_v14 = vmax.f32 %v770_v7, 0.0  ;;  %v662_v7 = vrot.slane %v4242_v56, %v661_v59  ;;  %v3483_v12 = vpack.c.bf16 %v2555_v5, %v2554_v4  ;;  %v2604_v59 = vld [vmem:[%s4946_s6 + $0x2d0] sm:$0xff]  ;;  %v2589_v4 = vld [vmem:[%s4946_s6 + $0x268] sm:$0xff]  ;;  %v669_v5 = vsub.s32 5, %v4235_v54 }
 0x1be   : > { %2938 = vmatmul.mubr.f32.vlgmr.msra.gmra.mrb[6].mxu0 %v1056_v9  ;;  %v2573_v9 = vld [vmem:[%s4946_s6 + $0x1f8] sm:$0xff]  ;;  %v1058_v22 = vmax.f32 %v839_v13, 0.0  ;;  %v3549_v63 = vpack.c.bf16 %v2605_v60, %v2604_v59  ;;  %v2590_v13 = vld [vmem:[%s4946_s6 + $0x270] sm:$0xff]  ;;  %v2639_v53 = vld [vmem:[%s4946_s6 + $0x3c8] sm:$0xff] }
 0x1bf   : > { %3463 = vmatpush3.bf16.msra.mxu0 %v3462_v8  ;;  %2973 = vmatmul.mubr.f32.vlgmr.msra.gmra.mrb[6].mxu1 %v1057_v14  ;;  %v2572_v8 = vld [vmem:[%s4946_s6 + $0x1f0] sm:$0xff]  ;;  %v670_v15 = vrot.slane %v4242_v56, %v669_v5 }
 0x1c0   : > { %3487 = vmatpush3.bf16.msra.mxu1 %v3486_v10  ;;  %3464 = vmatprep.subr.bf16.mxu0 %v3746_v52  ;;  %v686_v10 = vrot.slane %v4373_v3, %v653_v57  ;;  %v3507_v14 = vpack.c.bf16 %v2573_v9, %v2572_v8  ;;  %v2594_v57 = vld [vmem:[%s4946_s6 + $0x280] sm:$0xff]  ;;  %v2607_v8 = vld [vmem:[%s4946_s6 + $0x2e8] sm:$0xff]  ;;  %v2622_v60 = vld [vmem:[%s4946_s6 + $0x350] sm:$0xff] }
 0x1c1   : > { %3488 = vmatprep.subr.bf16.mxu1 %v3746_v52  ;;  %3007 = vmatprep.mubr.msk.f32.mxu0 %vm3745_vm0, %v3744_v2 }
 0x1c2   : > { %3042 = vmatprep.mubr.msk.f32.mxu1 %vm3745_vm0, %v3744_v2 }
 0x1c3   : > { %3466 = vmatpush3.bf16.msra.mxu0 %v3465_v17  ;;  %v841_v17 = vadd.f32 %v4266_v6, %v662_v7  ;;  %v3534_v6 = vpack.c.bf16 %v2595_v0, %v2594_v57  ;;  %v2606_v7 = vld [vmem:[%s4946_s6 + $0x2e0] sm:$0xff] }
 0x1c4   : > { %3490 = vmatpush3.bf16.msra.mxu1 %v3489_v18  ;;  %3467 = vmatprep.subr.bf16.mxu0 %v3746_v52 }
 0x1c5   : > { %3491 = vmatprep.subr.bf16.mxu1 %v3746_v52 }
 0x1c7   : > { %3469 = vmatpush3.bf16.msra.mxu0 %v3468_v24  ;;  %v2579_v24 = vld [vmem:[%s4946_s6 + $0x218] sm:$0xff] }
 0x1c8   : > { %3493 = vmatpush3.bf16.msra.mxu1 %v3492_v25  ;;  %3470 = vmatprep.subr.bf16.mxu0 %v3746_v52  ;;  %v1059_v25 = vmax.f32 %v841_v17, 0.0  ;;  %v3513_v27 = vpack.c.bf16 %v2579_v24, %v2578_v23  ;;  %v2609_v17 = vld [vmem:[%s4946_s6 + $0x2f8] sm:$0xff]  ;;  %v2631_v23 = vld [vmem:[%s4946_s6 + $0x388] sm:$0xff] }
 0x1c9   : > { %v4321_v35 = vpop.f32.mrb[2].mxu1  ;;  %v4323_v36 = vpop.f32.mrb[4].mxu0  ;;  %3494 = vmatprep.subr.bf16.mxu1 %v3746_v52 }
 0x1ca   : > { %v4333_v39 = vpop.f32.mrb[3].mxu1  ;;  %v4335_v40 = vpop.f32.mrb[5].mxu0 }
 0x1cb   : > { %3472 = vmatpush3.bf16.msra.mxu0 %v3471_v30  ;;  %v2581_v30 = vld [vmem:[%s4946_s6 + $0x228] sm:$0xff] }
 0x1cc   : > { %3496 = vmatpush3.bf16.msra.mxu1 %v3495_v32  ;;  %3473 = vmatprep.subr.bf16.mxu0 %v3746_v52  ;;  %v2599_v32 = vld [vmem:[%s4946_s6 + $0x2a8] sm:$0xff]  ;;  %v3516_v33 = vpack.c.bf16 %v2581_v30, %v2580_v29  ;;  %v2633_v29 = vld [vmem:[%s4946_s6 + $0x398] sm:$0xff] }
 0x1cd   : > { %3497 = vmatprep.subr.bf16.mxu1 %v3746_v52  ;;  %v3540_v34 = vpack.c.bf16 %v2599_v32, %v2598_v31  ;;  %v2616_v32 = vld [vmem:[%s4946_s6 + $0x320] sm:$0xff] }
 0x1cf   : > { %3475 = vmatpush3.bf16.msra.mxu0 %v3474_v41  ;;  %v2600_v41 = vld [vmem:[%s4946_s6 + $0x2b0] sm:$0xff] }
 0x1d0   : > { %3499 = vmatpush3.bf16.msra.mxu1 %v3498_v42  ;;  %3476 = vmatprep.subr.bf16.mxu0 %v3746_v52  ;;  %v2601_v42 = vld [vmem:[%s4946_s6 + $0x2b8] sm:$0xff] }
 0x1d1   : > { %3500 = vmatprep.subr.bf16.mxu1 %v3746_v52  ;;  %v3543_v44 = vpack.c.bf16 %v2601_v42, %v2600_v41  ;;  %v2618_v42 = vld [vmem:[%s4946_s6 + $0x330] sm:$0xff] }
 0x1d3   : > { %3478 = vmatpush3.bf16.msra.mxu0 %v3477_v49  ;;  %v2603_v49 = vld [vmem:[%s4946_s6 + $0x2c8] sm:$0xff] }
 0x1d4   : > { %3502 = vmatpush3.bf16.msra.mxu1 %v3501_v51  ;;  %3479 = vmatprep.subr.bf16.mxu0 %v3746_v52  ;;  %v3546_v51 = vpack.c.bf16 %v2603_v49, %v2602_v47  ;;  %v2620_v49 = vld [vmem:[%s4946_s6 + $0x340] sm:$0xff] }
 0x1d5   : > { %3503 = vmatprep.subr.bf16.mxu1 %v3746_v52 }
 0x1d7   : > { %3481 = vmatpush3.bf16.msra.mxu0 %v3480_v62  ;;  %v665_v62 = vsub.s32 4, %v4235_v54 }
 0x1d8   : > { %3505 = vmatpush3.bf16.msra.mxu1 %v3504_v1  ;;  %3482 = vmatprep.subr.bf16.mxu0 %v3746_v52  ;;  %v2588_v1 = vld [vmem:[%s4946_s6 + $0x260] sm:$0xff] }
 0x1d9   : > { %v4401_v18 = vpop.f32.mrb[4].mxu1  ;;  %3506 = vmatprep.subr.bf16.mxu1 %v3746_v52  ;;  %v3528_v9 = vpack.c.bf16 %v2589_v4, %v2588_v1  ;;  %v673_v4 = vsub.s32 6, %v4235_v54 }
 0x1da   : > { %v1053_v19 = vpop.f32.mrb[5].mxu1 }
 0x1db   : > { %v4410_v20 = vadd.f32 %v1053_v19, %v686_v10  ;;  %3484 = vmatpush3.bf16.msra.mxu0 %v3483_v12  ;;  %v666_v10 = vrot.slane %v4242_v56, %v665_v62  ;;  %v3552_v12 = vpack.c.bf16 %v2607_v8, %v2606_v7  ;;  %v3555_v19 = vpack.c.bf16 %v2609_v17, %v2608_v16  ;;  %v2640_v62 = vld [vmem:[%s4946_s6 + $0x3d0] sm:$0xff]  ;;  %v2624_v7 = vld [vmem:[%s4946_s6 + $0x360] sm:$0xff]  ;;  %v2625_v8 = vld [vmem:[%s4946_s6 + $0x368] sm:$0xff] }
 0x1dc   : > { %3508 = vmatpush3.bf16.msra.mxu1 %v3507_v14  ;;  %3509 = vmatprep.subr.bf16.mxu0 %v3746_v52  ;;  %v2591_v14 = vld [vmem:[%s4946_s6 + $0x278] sm:$0xff]  ;;  %v2626_v17 = vld [vmem:[%s4946_s6 + $0x370] sm:$0xff] }
 0x1dd   : > { %3533 = vmatprep.subr.bf16.mxu1 %v3746_v52  ;;  %v3531_v57 = vpack.c.bf16 %v2591_v14, %v2590_v13  ;;  %v910_v0 = vadd.f32 %v4321_v35, %v666_v10  ;;  %v2630_v35 = vld [vmem:[%s4946_s6 + $0x380] sm:$0xff]  ;;  %v3576_v13 = vpack.c.bf16 %v2625_v8, %v2624_v7  ;;  %v3755_v14 = vmov 8   ;;  %v2661_v8 = vld [vmem:[%s4946_s6 + $0x468] sm:$0xff] }
 0x1de   : > { %3008 = vmatmul.mubr.f32.vlgmr.msra.gmra.mrb[8].mxu0 %v1058_v22  ;;  %v2613_v22 = vld [vmem:[%s4946_s6 + $0x308] sm:$0xff]  ;;  %v3582_v26 = vpack.c.bf16 %v2631_v23, %v2630_v35  ;;  %v2642_v10 = vld [vmem:[%s4946_s6 + $0x3e0] sm:$0xff]  ;;  %3732 = vset.pattern.permute.xlu0 %v3755_v14 }
 0x1df   : > { %3043 = vmatmul.mubr.f32.vlgmr.msra.gmra.mrb[8].mxu1 %v1059_v25  ;;  %3511 = vmatpush3.bf16.msra.mxu0 %v3510_v21  ;;  %v2612_v21 = vld [vmem:[%s4946_s6 + $0x300] sm:$0xff]  ;;  %v1060_v25 = vmax.f32 %v910_v0, 0.0 }
 0x1e0   : > { %3535 = vmatpush3.bf16.msra.mxu1 %v3534_v6  ;;  %3512 = vmatprep.subr.bf16.mxu0 %v3746_v52  ;;  %v912_v6 = vadd.f32 %v4333_v39, %v670_v15  ;;  %v3558_v24 = vpack.c.bf16 %v2613_v22, %v2612_v21  ;;  %v2614_v39 = vld [vmem:[%s4946_s6 + $0x310] sm:$0xff]  ;;  %v674_v15 = vrot.slane %v4242_v56, %v673_v4  ;;  %v2645_v21 = vld [vmem:[%s4946_s6 + $0x3f8] sm:$0xff]  ;;  %v3756_v22 = vmov 9   ;;  %v2648_v23 = vld [vmem:[%s4946_s6 + $0x400] sm:$0xff] }
 0x1e1   : > { %3536 = vmatprep.subr.bf16.mxu1 %v3746_v52  ;;  %3077 = vmatprep.mubr.msk.f32.mxu0 %vm3745_vm0, %v3744_v2  ;;  %v3561_v30 = vpack.c.bf16 %v2615_v11, %v2614_v39  ;;  %v2660_v7 = vld [vmem:[%s4946_s6 + $0x460] sm:$0xff] }
 0x1e2   : > { %3112 = vmatprep.mubr.msk.f32.mxu1 %vm3745_vm0, %v3744_v2  ;;  %3733 = vset.pattern.permute.xlu1 %v3756_v22 }
 0x1e3   : > { %3514 = vmatpush3.bf16.msra.mxu0 %v3513_v27  ;;  %v1061_v27 = vmax.f32 %v912_v6, 0.0  ;;  %1970 = vperm.xlu0 %3732, %v4231_v48  }
 0x1e4   : > { %3538 = vmatpush3.bf16.msra.mxu1 %v3537_v28  ;;  %3515 = vmatprep.subr.bf16.mxu0 %v3746_v52  ;;  %v2632_v28 = vld [vmem:[%s4946_s6 + $0x390] sm:$0xff] }
 0x1e5   : > { %3539 = vmatprep.subr.bf16.mxu1 %v3746_v52  ;;  %v3585_v31 = vpack.c.bf16 %v2633_v29, %v2632_v28  ;;  %2071 = vperm.xlu1 %3733, %v4231_v48   ;;  %v2666_v48 = vld [vmem:[%s4946_s6 + $0x480] sm:$0xff]  ;;  %v2668_v29 = vld [vmem:[%s4946_s6 + $0x490] sm:$0xff] }
 0x1e7   : > { %3517 = vmatpush3.bf16.msra.mxu0 %v3516_v33  ;;  %v2617_v33 = vld [vmem:[%s4946_s6 + $0x328] sm:$0xff]  ;;  %3734 = vset.pattern.permute.xlu0 %v3756_v22  ;;  %v2539_v22 = vld [vmem:[%s4947_s7 + $0x1] ss:$0 sm:$0xff] }
 0x1e8   : > { %3541 = vmatpush3.bf16.msra.mxu1 %v3540_v34  ;;  %3518 = vmatprep.subr.bf16.mxu0 %v3746_v52  ;;  %v2634_v34 = vld [vmem:[%s4946_s6 + $0x3a0] sm:$0xff]  ;;  %v3564_v38 = vpack.c.bf16 %v2617_v33, %v2616_v32 }
 0x1e9   : > { %3542 = vmatprep.subr.bf16.mxu1 %v3746_v52  ;;  %v3588_v41 = vpack.c.bf16 %v2635_v37, %v2634_v34  ;;  %v2652_v33 = vld [vmem:[%s4946_s6 + $0x420] sm:$0xff]  ;;  %v2653_v34 = vld [vmem:[%s4946_s6 + $0x428] sm:$0xff] }
 0x1ea   : > { %v2670_v37 = vld [vmem:[%s4946_s6 + $0x4a0] sm:$0xff] }
 0x1eb   : > { %3520 = vmatpush3.bf16.msra.mxu0 %v3519_v43  ;;  %v2619_v43 = vld [vmem:[%s4946_s6 + $0x338] sm:$0xff] }
 0x1ec   : > { %3544 = vmatpush3.bf16.msra.mxu1 %v3543_v44  ;;  %3521 = vmatprep.subr.bf16.mxu0 %v3746_v52  ;;  %v2636_v44 = vld [vmem:[%s4946_s6 + $0x3b0] sm:$0xff]  ;;  %v3567_v46 = vpack.c.bf16 %v2619_v43, %v2618_v42 }
 0x1ed   : > { %3545 = vmatprep.subr.bf16.mxu1 %v3746_v52  ;;  %v3591_v47 = vpack.c.bf16 %v2637_v45, %v2636_v44  ;;  %v2654_v43 = vld [vmem:[%s4946_s6 + $0x430] sm:$0xff]  ;;  %v2655_v44 = vld [vmem:[%s4946_s6 + $0x438] sm:$0xff] }
 0x1ee   : > { %v2672_v45 = vld [vmem:[%s4946_s6 + $0x4b0] sm:$0xff] }
 0x1ef   : > { %3523 = vmatpush3.bf16.msra.mxu0 %v3522_v50  ;;  %v2621_v50 = vld [vmem:[%s4946_s6 + $0x348] sm:$0xff] }
 0x1f0   : > { %3547 = vmatpush3.bf16.msra.mxu1 %v3546_v51  ;;  %3524 = vmatprep.subr.bf16.mxu0 %v3746_v52  ;;  %v2638_v51 = vld [vmem:[%s4946_s6 + $0x3c0] sm:$0xff]  ;;  %v3570_v58 = vpack.c.bf16 %v2621_v50, %v2620_v49 }
 0x1f1   : > { %3548 = vmatprep.subr.bf16.mxu1 %v3746_v52  ;;  %v3594_v59 = vpack.c.bf16 %v2639_v53, %v2638_v51  ;;  %v2656_v50 = vld [vmem:[%s4946_s6 + $0x440] sm:$0xff]  ;;  %v2657_v51 = vld [vmem:[%s4946_s6 + $0x448] sm:$0xff] }
 0x1f2   : > { %v2674_v53 = vld [vmem:[%s4946_s6 + $0x4c0] sm:$0xff] }
 0x1f3   : > { %3526 = vmatpush3.bf16.msra.mxu0 %v3525_v61  ;;  %v2623_v61 = vld [vmem:[%s4946_s6 + $0x358] sm:$0xff] }
 0x1f4   : > { %3550 = vmatpush3.bf16.msra.mxu1 %v3549_v63  ;;  %3527 = vmatprep.subr.bf16.mxu0 %v3746_v52  ;;  %v2641_v63 = vld [vmem:[%s4946_s6 + $0x3d8] sm:$0xff]  ;;  %v3573_v1 = vpack.c.bf16 %v2623_v61, %v2622_v60  ;;  %v2658_v61 = vld [vmem:[%s4946_s6 + $0x450] sm:$0xff] }
 0x1f5   : > { %3551 = vmatprep.subr.bf16.mxu1 %v3746_v52  ;;  %v3597_v5 = vpack.c.bf16 %v2641_v63, %v2640_v62  ;;  %v2659_v62 = vld [vmem:[%s4946_s6 + $0x458] sm:$0xff]  ;;  %v2676_v63 = vld [vmem:[%s4946_s6 + $0x4d0] sm:$0xff] }
 0x1f6   : > { %v3621_v4 = vpack.c.bf16 %v2659_v62, %v2658_v61 }
 0x1f7   : > { %3529 = vmatpush3.bf16.msra.mxu0 %v3528_v9  ;;  %v677_v9 = vsub.s32 7, %v4235_v54  ;;  %v2680_v54 = vld [vmem:[%s4946_s6 + $0x4f0] sm:$0xff] }
 0x1f8   : > { %3553 = vmatpush3.bf16.msra.mxu1 %v3552_v12  ;;  %3530 = vmatprep.subr.bf16.mxu0 %v3746_v52  ;;  %v2643_v12 = vld [vmem:[%s4946_s6 + $0x3e8] sm:$0xff] }
 0x1f9   : > { %3554 = vmatprep.subr.bf16.mxu1 %v3746_v52  ;;  %v3600_v16 = vpack.c.bf16 %v2643_v12, %v2642_v10  ;;  %v678_v0 = vrot.slane %v4242_v56, %v677_v9  ;;  %v981_v56 = vadd.f32 %v4323_v36, %v674_v15  ;;  %v2667_v36 = vld [vmem:[%s4946_s6 + $0x488] sm:$0xff]  ;;  %v2678_v9 = vld [vmem:[%s4946_s6 + $0x4e0] sm:$0xff]  ;;  %v3624_v12 = vpack.c.bf16 %v2661_v8, %v2660_v7  ;;  %v2662_v15 = vld [vmem:[%s4946_s6 + $0x470] sm:$0xff] }
 0x1fa   : > { %v3630_v11 = vpack.c.bf16 %v2667_v36, %v2666_v48  ;;  %v2679_v10 = vld [vmem:[%s4946_s6 + $0x4e8] sm:$0xff] }
 0x1fb   : > { %3532 = vmatpush3.bf16.msra.mxu0 %v3531_v57  ;;  %v2627_v57 = vld [vmem:[%s4946_s6 + $0x378] sm:$0xff]  ;;  %v1062_v39 = vmax.f32 %v981_v56, 0.0  ;;  %v3648_v14 = vpack.c.bf16 %v2679_v10, %v2678_v9 }
 0x1fc   : > { %3556 = vmatpush3.bf16.msra.mxu1 %v3555_v19  ;;  %3557 = vmatprep.subr.bf16.mxu0 %v3746_v52  ;;  %v2644_v19 = vld [vmem:[%s4946_s6 + $0x3f0] sm:$0xff]  ;;  %v3579_v6 = vpack.c.bf16 %v2627_v57, %v2626_v17 }
 0x1fd   : > { %3581 = vmatprep.subr.bf16.mxu1 %v3746_v52  ;;  %v3603_v35 = vpack.c.bf16 %v2645_v21, %v2644_v19  ;;  %v1065_v19 = vmax.f32 %v4410_v20, 0.0  ;;  %v2521_v21 = vld [vmem:[%s4947_s7] ss:$0 sm:$0xff] }
 0x1fe   : > { %3078 = vmatmul.mubr.f32.vlgmr.msra.gmra.mrb[10].mxu0 %v1060_v25  ;;  %v983_v25 = vadd.f32 %v4335_v40, %v678_v0  ;;  %v2650_v40 = vld [vmem:[%s4946_s6 + $0x410] sm:$0xff] }
 0x1ff   : > { %3113 = vmatmul.mubr.f32.vlgmr.msra.gmra.mrb[10].mxu1 %v1061_v27  ;;  %3559 = vmatpush3.bf16.msra.mxu0 %v3558_v24  ;;  %v2649_v24 = vld [vmem:[%s4946_s6 + $0x408] sm:$0xff]  ;;  %v2651_v27 = vld [vmem:[%s4946_s6 + $0x418] sm:$0xff] }
 0x200   : > { %3583 = vmatpush3.bf16.msra.mxu1 %v3582_v26  ;;  %3560 = vmatprep.subr.bf16.mxu0 %v3746_v52  ;;  %v3606_v26 = vpack.c.bf16 %v2649_v24, %v2648_v23  ;;  %v1063_v28 = vmax.f32 %v983_v25, 0.0 }
 0x201   : > { %3584 = vmatprep.subr.bf16.mxu1 %v3746_v52  ;;  %3147 = vmatprep.mubr.msk.f32.mxu0 %vm3745_vm0, %v3744_v2 }
 0x202   : > { %3182 = vmatprep.mubr.msk.f32.mxu1 %vm3745_vm0, %v3744_v2 }
 0x203   : > { %3562 = vmatpush3.bf16.msra.mxu0 %v3561_v30  ;;  %v2669_v30 = vld [vmem:[%s4946_s6 + $0x498] sm:$0xff] }
 0x204   : > { %3586 = vmatpush3.bf16.msra.mxu1 %v3585_v31  ;;  %3563 = vmatprep.subr.bf16.mxu0 %v3746_v52  ;;  %v3609_v31 = vpack.c.bf16 %v2651_v27, %v2650_v40  ;;  %v3633_v32 = vpack.c.bf16 %v2669_v30, %v2668_v29  ;;  %v2575_v40 = vld [vmem:[%s4947_s7 + $0x3] ss:$0 sm:$0xff] }
 0x205   : > { %3587 = vmatprep.subr.bf16.mxu1 %v3746_v52 }
 0x207   : > { %3565 = vmatpush3.bf16.msra.mxu0 %v3564_v38  ;;  %v2671_v38 = vld [vmem:[%s4946_s6 + $0x4a8] sm:$0xff] }
 0x208   : > { %3589 = vmatpush3.bf16.msra.mxu1 %v3588_v41  ;;  %3566 = vmatprep.subr.bf16.mxu0 %v3746_v52  ;;  %v3612_v41 = vpack.c.bf16 %v2653_v34, %v2652_v33  ;;  %v3636_v42 = vpack.c.bf16 %v2671_v38, %v2670_v37 }
 0x209   : > { %3590 = vmatprep.subr.bf16.mxu1 %v3746_v52 }
 0x20b   : > { %3568 = vmatpush3.bf16.msra.mxu0 %v3567_v46  ;;  %v2673_v46 = vld [vmem:[%s4946_s6 + $0x4b8] sm:$0xff] }
 0x20c   : > { %3592 = vmatpush3.bf16.msra.mxu1 %v3591_v47  ;;  %3569 = vmatprep.subr.bf16.mxu0 %v3746_v52  ;;  %v3615_v47 = vpack.c.bf16 %v2655_v44, %v2654_v43  ;;  %v3639_v49 = vpack.c.bf16 %v2673_v46, %v2672_v45  ;;  %v2611_v43 = vld [vmem:[%s4947_s7 + $0x5] ss:$0 sm:$0xff] }
 0x20d   : > { %3593 = vmatprep.subr.bf16.mxu1 %v3746_v52 }
 0x20f   : > { %3571 = vmatpush3.bf16.msra.mxu0 %v3570_v58  ;;  %v2675_v58 = vld [vmem:[%s4946_s6 + $0x4c8] sm:$0xff] }
 0x210   : > { %3595 = vmatpush3.bf16.msra.mxu1 %v3594_v59  ;;  %3572 = vmatprep.subr.bf16.mxu0 %v3746_v52  ;;  %v3618_v59 = vpack.c.bf16 %v2657_v51, %v2656_v50  ;;  %v3642_v60 = vpack.c.bf16 %v2675_v58, %v2674_v53 }
 0x211   : > { %3596 = vmatprep.subr.bf16.mxu1 %v3746_v52 }
 0x213   : > { %3574 = vmatpush3.bf16.msra.mxu0 %v3573_v1  ;;  %v2677_v1 = vld [vmem:[%s4946_s6 + $0x4d8] sm:$0xff] }
 0x214   : > { %3598 = vmatpush3.bf16.msra.mxu1 %v3597_v5  ;;  %3575 = vmatprep.subr.bf16.mxu0 %v3746_v52  ;;  %v3645_v5 = vpack.c.bf16 %v2677_v1, %v2676_v63  ;;  %v2629_v63 = vld [vmem:[%s4947_s7 + $0x6] ss:$0 sm:$0xff]  ;;  %v2647_v1 = vld [vmem:[%s4947_s7 + $0x7] ss:$0 sm:$0xff] }
 0x215   : > { %3599 = vmatprep.subr.bf16.mxu1 %v3746_v52 }
 0x217   : > { %3577 = vmatpush3.bf16.msra.mxu0 %v3576_v13  ;;  %v682_v13 = vrot.slane %v4373_v3, %v649_v55  ;;  %v2681_v55 = vld [vmem:[%s4946_s6 + $0x4f8] sm:$0xff] }
 0x218   : > { %3601 = vmatpush3.bf16.msra.mxu1 %v3600_v16  ;;  %3578 = vmatprep.subr.bf16.mxu0 %v3746_v52  ;;  %v2663_v16 = vld [vmem:[%s4946_s6 + $0x478] sm:$0xff]  ;;  %v3651_v57 = vpack.c.bf16 %v2681_v55, %v2680_v54  ;;  %v2665_v54 = vld [vmem:[%s4947_s7 + $0x8] ss:$0 sm:$0xff]  ;;  %v2683_v55 = vld [vmem:[%s4947_s7 + $0x9] ss:$0 sm:$0xff] }
 0x219   : > { %3602 = vmatprep.subr.bf16.mxu1 %v3746_v52  ;;  %v3627_v3 = vpack.c.bf16 %v2663_v16, %v2662_v15  ;;  %v1052_v17 = vadd.f32 %v4401_v18, %v682_v13  ;;  %v1163_v18 = vpop.permute.xlu0 %1162 }
 0x21b   : > { %3580 = vmatpush3.bf16.msra.mxu0 %v3579_v6  ;;  %v1064_v0 = vmax.f32 %v1052_v17, 0.0 }
 0x21c   : > { %3604 = vmatpush3.bf16.msra.mxu1 %v3603_v35  ;;  %3605 = vmatprep.subr.bf16.mxu0 %v3746_v52 }
 0x21d   : > { %3629 = vmatprep.subr.bf16.mxu1 %v3746_v52  ;;  %v1264_v6 = vpop.permute.xlu0 %1263 }
 0x21e   : > { %3148 = vmatmul.mubr.f32.vlgmr.msra.gmra.mrb[12].mxu0 %v1062_v39  ;;  %v1365_v39 = vpop.permute.xlu1 %1364 }
 0x21f   : > { %3183 = vmatmul.mubr.f32.vlgmr.msra.gmra.mrb[12].mxu1 %v1063_v28  ;;  %3607 = vmatpush3.bf16.msra.mxu0 %v3606_v26 }
 0x220   : > { %3631 = vmatpush3.bf16.msra.mxu1 %v3630_v11  ;;  %3608 = vmatprep.subr.bf16.mxu0 %v3746_v52  ;;  %v2557_v11 = vld [vmem:[%s4947_s7 + $0x2] ss:$0 sm:$0xff] }
 0x221   : > { %3632 = vmatprep.subr.bf16.mxu1 %v3746_v52  ;;  %3217 = vmatprep.mubr.msk.f32.mxu0 %vm3745_vm0, %v3744_v2  ;;  %v1668_v46 = vpop.permute.xlu0 %1667 }
 0x222   : > { %3252 = vmatprep.mubr.msk.f32.mxu1 %vm3745_vm0, %v3744_v2  ;;  %v1466_v28 = vpop.permute.xlu1 %1465 }
 0x223   : > { %3610 = vmatpush3.bf16.msra.mxu0 %v3609_v31 }
 0x224   : > { %3634 = vmatpush3.bf16.msra.mxu1 %v3633_v32  ;;  %3611 = vmatprep.subr.bf16.mxu0 %v3746_v52 }
 0x225   : > { %3635 = vmatprep.subr.bf16.mxu1 %v3746_v52 }
 0x226   : > { %v1567_v44 = vpop.permute.xlu1 %1566 }
 0x227   : > { %3613 = vmatpush3.bf16.msra.mxu0 %v3612_v41 }
 0x228   : > { %3637 = vmatpush3.bf16.msra.mxu1 %v3636_v42  ;;  %3614 = vmatprep.subr.bf16.mxu0 %v3746_v52  ;;  %v2593_v42 = vld [vmem:[%s4947_s7 + $0x4] ss:$0 sm:$0xff] }
 0x229   : > { %3638 = vmatprep.subr.bf16.mxu1 %v3746_v52 }
 0x22a   : > { %v1769_v62 = vpop.permute.xlu1 %1768 }
 0x22b   : > { %3616 = vmatpush3.bf16.msra.mxu0 %v3615_v47 }
 0x22c   : > { %3640 = vmatpush3.bf16.msra.mxu1 %v3639_v49  ;;  %3617 = vmatprep.subr.bf16.mxu0 %v3746_v52 }
 0x22d   : > { %3641 = vmatprep.subr.bf16.mxu1 %v3746_v52 }
 0x22f   : > { %3619 = vmatpush3.bf16.msra.mxu0 %v3618_v59 }
 0x230   : > { %3643 = vmatpush3.bf16.msra.mxu1 %v3642_v60  ;;  %3620 = vmatprep.subr.bf16.mxu0 %v3746_v52 }
 0x231   : > { %3644 = vmatprep.subr.bf16.mxu1 %v3746_v52 }
 0x233   : > { %3622 = vmatpush3.bf16.msra.mxu0 %v3621_v4 }
 0x234   : > { %3646 = vmatpush3.bf16.msra.mxu1 %v3645_v5  ;;  %3623 = vmatprep.subr.bf16.mxu0 %v3746_v52  ;;  %v1870_v5 = vpop.permute.xlu1 %1869 }
 0x235   : > { %3647 = vmatprep.subr.bf16.mxu1 %v3746_v52 }
 0x237   : > { %3625 = vmatpush3.bf16.msra.mxu0 %v3624_v12 }
 0x238   : > { %3649 = vmatpush3.bf16.msra.mxu1 %v3648_v14  ;;  %3626 = vmatprep.subr.bf16.mxu0 %v3746_v52 }
 0x239   : > { %3650 = vmatprep.subr.bf16.mxu1 %v3746_v52 }
 0x23b   : > { %3628 = vmatpush3.bf16.msra.mxu0 %v3627_v3 }
 0x23c   : > { %3652 = vmatpush3.bf16.msra.mxu1 %v3651_v57  ;;  %3255 = vmatprep.subr.mxu0 %v3744_v2 }
 0x23d   : > { %3677 = vmatprep.subr.bf16.mxu1 %v3746_v52 }
 0x23e   : > { %3218 = vmatmul.mubr.f32.vlgmr.msra.gmra.mrb[14].mxu0 %v1064_v0 }
 0x23f   : > { %3253 = vmatmul.mubr.f32.vlgmr.msra.gmra.mrb[14].mxu1 %v1065_v19  ;;  %3257 = vmatprep.mubr.msk.f32.mxu0 %vm3745_vm0, %v3744_v2 }
 0x240   : > { %3330 = vmatprep.mubr.msk.f32.mxu1 %vm3745_vm0, %v3744_v2 }
 0x262   : > { %v1971_v3 = vpop.permute.xlu0 %1970 }
 0x264   : > { %v2072_v57 = vpop.permute.xlu1 %2071 }
 0x291   : > { %v1155_v20 = vpop.f32.mrb[6].mxu0 }
 0x292   : > { %v1156_v56 = vadd.f32 %v2521_v21, %v1155_v20  ;;  %v2939_v35 = vpop.f32.mrb[7].mxu0  ;;  %v1258_v23 = vpop.f32.mrb[6].mxu1 }
 0x293   : > { %v1259_v24 = vadd.f32 %v2539_v22, %v1258_v23  ;;  %v2974_v25 = vpop.f32.mrb[7].mxu1  ;;  %v2159_v35 = vld [vmem:[%s4949_s9 + $0x8] sm:$0xff] }
 0x294   : > { %v1165_v48 = vmul.f32 %v1163_v18, %v1156_v56  ;;  %v2158_v56 = vld [vmem:[%s4949_s9] sm:$0xff] }
 0x295   : > { %v1266_v36 = vmul.f32 %v1264_v6, %v1259_v24  ;;  %v2076_v25 = vld [vmem:[%s482_s20] sm:$0xff] }
 0x297   : > { %v1267_v26 = vadd.f32 %v1266_v36, %v1165_v48  ;;  %v3654_v48 = vpack.c.bf16 %v2159_v35, %v2158_v56  ;;  %v2160_v36 = vld [vmem:[%s4949_s9 + $0x10] sm:$0xff] }
 0x2b1   : > { %v1359_v27 = vpop.f32.mrb[8].mxu0 }
 0x2b2   : > { %v1360_v29 = vadd.f32 %v2557_v11, %v1359_v27  ;;  %v3009_v30 = vpop.f32.mrb[9].mxu0  ;;  %v1460_v31 = vpop.f32.mrb[8].mxu1  ;;  %v2162_v11 = vld [vmem:[%s4949_s9 + $0x20] sm:$0xff] }
 0x2b3   : > { %v1461_v32 = vadd.f32 %v2575_v40, %v1460_v31  ;;  %v3044_v33 = vpop.f32.mrb[9].mxu1  ;;  %v2163_v40 = vld [vmem:[%s4949_s9 + $0x28] sm:$0xff]  ;;  %v2150_v31 = vld [vmem:[%s4948_s8] sm:$0xff] }
 0x2b4   : > { %v1367_v34 = vmul.f32 %v1365_v39, %v1360_v29  ;;  %v3660_v27 = vpack.c.bf16 %v2163_v40, %v2162_v11  ;;  %v2165_v29 = vld [vmem:[%s4949_s9 + $0x38] sm:$0xff] }
 0x2b5   : > { %v1468_v37 = vmul.f32 %v1466_v28, %v1461_v32  ;;  %v2164_v28 = vld [vmem:[%s4949_s9 + $0x30] sm:$0xff]  ;;  %v2151_v32 = vld [vmem:[%s4948_s8 + $0x8] sm:$0xff] }
 0x2b6   : > { %v1368_v38 = vadd.f32 %v1367_v34, %v1267_v26  ;;  %v2161_v26 = vld [vmem:[%s4949_s9 + $0x18] sm:$0xff]  ;;  %v3663_v30 = vpack.c.bf16 %v2165_v29, %v2164_v28  ;;  %v3666_v33 = vpack.c.bf16 %v2151_v32, %v2150_v31  ;;  %v2152_v34 = vld [vmem:[%s4948_s8 + $0x10] sm:$0xff] }
 0x2b7   : > { %v3657_v39 = vpack.c.bf16 %v2161_v26, %v2160_v36 }
 0x2b8   : > { %v1469_v41 = vadd.f32 %v1468_v37, %v1368_v38  ;;  %v2153_v37 = vld [vmem:[%s4948_s8 + $0x18] sm:$0xff]  ;;  %v3735_v38 = vld [vmem:[%s3887_s26] sm:$0xff] }
 0x2d1   : > { %v1561_v45 = vpop.f32.mrb[10].mxu0 }
 0x2d2   : > { %v1562_v47 = vadd.f32 %v2593_v42, %v1561_v45  ;;  %v3079_v49 = vpop.f32.mrb[11].mxu0  ;;  %v1662_v50 = vpop.f32.mrb[10].mxu1  ;;  %v2154_v42 = vld [vmem:[%s4948_s8 + $0x20] sm:$0xff]  ;;  %v2156_v45 = vld [vmem:[%s4948_s8 + $0x30] sm:$0xff] }
 0x2d3   : > { %v1663_v51 = vadd.f32 %v2611_v43, %v1662_v50  ;;  %v3114_v53 = vpop.f32.mrb[11].mxu1  ;;  %v2155_v43 = vld [vmem:[%s4948_s8 + $0x28] sm:$0xff]  ;;  %v2324_v50 = vld [vmem:[%s4951_s11 + $0x10] sm:$0xff] }
 0x2d4   : > { %v1569_v58 = vmul.f32 %v1567_v44, %v1562_v47  ;;  %v3672_v44 = vpack.c.bf16 %v2155_v43, %v2154_v42  ;;  %v2322_v47 = vld [vmem:[%s4951_s11] sm:$0xff]  ;;  %v2323_v49 = vld [vmem:[%s4951_s11 + $0x8] sm:$0xff]  ;;  %v2325_v53 = vld [vmem:[%s4951_s11 + $0x18] sm:$0xff] }
 0x2d5   : > { %v1670_v59 = vmul.f32 %v1668_v46, %v1663_v51  ;;  %v3678_v51 = vpack.c.bf16 %v2323_v49, %v2322_v47 }
 0x2d6   : > { %v1570_v60 = vadd.f32 %v1569_v58, %v1469_v41  ;;  %v3669_v41 = vpack.c.bf16 %v2153_v37, %v2152_v34  ;;  %v3681_v58 = vpack.c.bf16 %v2325_v53, %v2324_v50 }
 0x2d7   : > { %3679 = vmatpush3.bf16.msra.mxu1 %v3678_v51 }
 0x2d8   : > { %v1671_v61 = vadd.f32 %v1670_v59, %v1570_v60  ;;  %3680 = vmatprep.subr.bf16.mxu1 %v3746_v52  ;;  %v2326_v59 = vld [vmem:[%s4951_s11 + $0x20] sm:$0xff]  ;;  %v2327_v60 = vld [vmem:[%s4951_s11 + $0x28] sm:$0xff] }
 0x2db   : > { %3682 = vmatpush3.bf16.msra.mxu1 %v3681_v58 }
 0x2dc   : > { %3683 = vmatprep.subr.bf16.mxu1 %v3746_v52 }
 0x2f1   : > { %v1763_v4 = vpop.f32.mrb[12].mxu0 }
 0x2f2   : > { %v1764_v7 = vadd.f32 %v2629_v63, %v1763_v4  ;;  %v3149_v8 = vpop.f32.mrb[13].mxu0  ;;  %v1864_v9 = vpop.f32.mrb[12].mxu1  ;;  %v2329_v63 = vld [vmem:[%s4951_s11 + $0x38] sm:$0xff]  ;;  %v2330_v4 = vld [vmem:[%s4951_s11 + $0x40] sm:$0xff] }
 0x2f3   : > { %v1865_v10 = vadd.f32 %v2647_v1, %v1864_v9  ;;  %v3184_v12 = vpop.f32.mrb[13].mxu1  ;;  %v2332_v8 = vld [vmem:[%s4951_s11 + $0x50] sm:$0xff]  ;;  %v2333_v9 = vld [vmem:[%s4951_s11 + $0x58] sm:$0xff] }
 0x2f4   : > { %v1771_v13 = vmul.f32 %v1769_v62, %v1764_v7  ;;  %v2328_v62 = vld [vmem:[%s4951_s11 + $0x30] sm:$0xff] }
 0x2f5   : > { %v1872_v14 = vmul.f32 %v1870_v5, %v1865_v10  ;;  %v3687_v1 = vpack.c.bf16 %v2329_v63, %v2328_v62  ;;  %v2331_v5 = vld [vmem:[%s4951_s11 + $0x48] sm:$0xff]  ;;  %v3693_v10 = vpack.c.bf16 %v2333_v9, %v2332_v8 }
 0x2f6   : > { %v1772_v15 = vadd.f32 %v1771_v13, %v1671_v61  ;;  %v3684_v61 = vpack.c.bf16 %v2327_v60, %v2326_v59  ;;  %v3690_v7 = vpack.c.bf16 %v2331_v5, %v2330_v4 }
 0x2f8   : > { %v1873_v16 = vadd.f32 %v1872_v14, %v1772_v15  ;;  %3685 = vmatpush3.bf16.msra.mxu1 %v3684_v61  ;;  %v2334_v14 = vld [vmem:[%s4951_s11 + $0x60] sm:$0xff]  ;;  %v2335_v15 = vld [vmem:[%s4951_s11 + $0x68] sm:$0xff] }
 0x2f9   : > { %3686 = vmatprep.subr.bf16.mxu1 %v3746_v52 }
 0x2fc   : > { %3688 = vmatpush3.bf16.msra.mxu1 %v3687_v1 }
 0x2fd   : > { %3689 = vmatprep.subr.bf16.mxu1 %v3746_v52 }
 0x300   : > { %3691 = vmatpush3.bf16.msra.mxu1 %v3690_v7 }
 0x301   : > { %3692 = vmatprep.subr.bf16.mxu1 %v3746_v52 }
 0x304   : > { %3694 = vmatpush3.bf16.msra.mxu1 %v3693_v10 }
 0x305   : > { %3695 = vmatprep.subr.bf16.mxu1 %v3746_v52 }
 0x311   : > { %v1965_v17 = vpop.f32.mrb[14].mxu0 }
 0x312   : > { %v1966_v0 = vadd.f32 %v2665_v54, %v1965_v17  ;;  %v3219_v19 = vpop.f32.mrb[15].mxu0  ;;  %v2066_v18 = vpop.f32.mrb[14].mxu1  ;;  %v2336_v54 = vld [vmem:[%s4951_s11 + $0x70] sm:$0xff] }
 0x313   : > { %v2067_v21 = vadd.f32 %v2683_v55, %v2066_v18  ;;  %v3254_v22 = vpop.f32.mrb[15].mxu1  ;;  %v2337_v55 = vld [vmem:[%s4951_s11 + $0x78] sm:$0xff] }
 0x314   : > { %v1973_v20 = vmul.f32 %v1971_v3, %v1966_v0  ;;  %v3699_v3 = vpack.c.bf16 %v2337_v55, %v2336_v54 }
 0x315   : > { %v2074_v6 = vmul.f32 %v2072_v57, %v2067_v21  ;;  %v2687_v57 = vld [vmem:[%s4950_s10] ss:$0 sm:$0xff] }
 0x316   : > { %v1974_v23 = vadd.f32 %v1973_v20, %v1873_v16  ;;  %v3696_v16 = vpack.c.bf16 %v2335_v15, %v2334_v14 }
 0x318   : > { %v2075_v24 = vadd.f32 %v2074_v6, %v1974_v23  ;;  %3697 = vmatpush3.bf16.msra.mxu1 %v3696_v16 }
 0x319   : > { %3698 = vmatprep.subr.bf16.mxu1 %v3746_v52 }
 0x31a   : > { %3256 = vmatpush3.msra.mxu0 %v2075_v24 }
 0x31b   : > { %3258 = vmatmul.mubr.msk.f32.vlgmr.msra.gmra.mrb[16].mxu0 %vm489_vm1, %v2076_v25  ;;  %3653 = vmatprep.subr.bf16.mxu0 %v3746_v52 }
 0x31c   : > { %3655 = vmatpush3.bf16.msra.mxu0 %v3654_v48  ;;  %3276 = vmatprep.mubr.msk.f32.mxu0 %vm3745_vm0, %v3744_v2 }
 0x31d   : > { %3656 = vmatprep.subr.bf16.mxu0 %v3746_v52  ;;  %3700 = vmatpush3.bf16.msra.mxu1 %v3699_v3 }
 0x320   : > { %3658 = vmatpush3.bf16.msra.mxu0 %v3657_v39 }
 0x321   : > { %3659 = vmatprep.subr.bf16.mxu0 %v3746_v52 }
 0x324   : > { %3661 = vmatpush3.bf16.msra.mxu0 %v3660_v27 }
 0x325   : > { %3662 = vmatprep.subr.bf16.mxu0 %v3746_v52 }
 0x328   : > { %3664 = vmatpush3.bf16.msra.mxu0 %v3663_v30 }
 0x329   : > { %3665 = vmatprep.subr.bf16.mxu0 %v3746_v52 }
 0x32b   : > { %3277 = vmatmul.mubr.msk.f32.vlgmr.msra.gmra.mrb[18].mxu0 %vm697_vm2, %v3735_v38 }
 0x32c   : > { %3667 = vmatpush3.bf16.msra.mxu0 %v3666_v33  ;;  %3295 = vmatprep.mubr.msk.f32.mxu0 %vm3745_vm0, %v3744_v2  ;;  %v2157_v2 = vld [vmem:[%s4948_s8 + $0x38] sm:$0xff] }
 0x32d   : > { %3668 = vmatprep.subr.bf16.mxu0 %v3746_v52  ;;  %v3675_v46 = vpack.c.bf16 %v2157_v2, %v2156_v45 }
 0x330   : > { %3670 = vmatpush3.bf16.msra.mxu0 %v3669_v41 }
 0x331   : > { %3671 = vmatprep.subr.bf16.mxu0 %v3746_v52 }
 0x334   : > { %3673 = vmatpush3.bf16.msra.mxu0 %v3672_v44 }
 0x335   : > { %3674 = vmatprep.subr.bf16.mxu0 %v3746_v52  ;;  %v2688_v52 = vld [vmem:[%s4952_s12] ss:$0 sm:$0xff] }
 0x338   : > { %3676 = vmatpush3.bf16.msra.mxu0 %v3675_v46 }
 0x3ee   : > { %v2146_v12 = vpop.f32.mrb[16].mxu0 }
 0x3ef   : > { %3296 = vmatmul.mubr.msk.f32.vlgmr.msra.gmra.mrb[18].mxu0 %vm697_vm2, %v2146_v12  ;;  %v3259_v13 = vpop.f32.mrb[17].mxu0 }
 0x4c2   : > { %v2308_v17 = vpop.f32.mrb[18].mxu0 }
 0x4c3   : > { %v2312_v0 = vmul.f32 0.125, %v2308_v17  ;;  %v3297_v19 = vpop.f32.mrb[19].mxu0 }
 0x4c5   : > { %v2320_v18 = vadd.f32 %v2687_v57, %v2312_v0 }
 0x4c7   : > { %v2321_v21 = vmax.f32 %v2320_v18, 0.0 }
 0x4c9   : > { %3331 = vmatmul.mubr.f32.vlgmr.msra.gmra.mrb[16].mxu1 %v2321_v21 }
 0x59c   : > { %v2411_v22 = vpop.f32.mrb[16].mxu1 }
 0x59d   : > { %v2412_v20 = vadd.f32 %v2688_v52, %v2411_v22  ;;  %v3332_v6 = vpop.f32.mrb[17].mxu1 }
 0x59f   : > { %2415 = vst.msk [vmem:[%s486_s18] sm:$0xff] %vm697_vm2, %v2412_v20 }
 0x5a0 PF: > { %s23_s25 = sadd.s32 1, %s3742_s25  }
 0x5a1   : > { %p20_p4 = scmp.ge.s32.totalorder %s23_s25, 4  }
 0x5a3   :  { %22 = sbr.rel (!%p20_p4) target bundleno = 1 (0x1), region = 129 }

// kernel: ms_hgnn_hyper_forward.13
= control target key start
LH: loop header
LB: loop body
LE: loop exit
PB: predicated region body
PF: predicated region fallthrough
CT: control target
= control target key end

     0   :  { %s5131_s0 = inlined_call_operand.vmem [shape: f32[2,8,10], index: 0, kind: input, shape index: {}]   ;;  %s5132_s1 = inlined_call_operand.vmem [shape: f32[2,8,64], index: 1, kind: input, shape index: {}]   ;;  %s5133_s2 = inlined_call_operand.vmem [shape: f32[2,8,8], index: 2, kind: input, shape index: {}]   ;;  %s5134_s3 = inlined_call_operand.vmem [shape: f32[2,8,8], index: 3, kind: input, shape index: {}]   ;;  %s5135_s4 = inlined_call_operand.vmem [shape: f32[64,1280], index: 4, kind: input, shape index: {}]   ;;  %s5136_s5 = inlined_call_operand.vmem [shape: f32[1,1280], index: 5, kind: input, shape index: {}]   ;;  %s5137_s6 = inlined_call_operand.vmem [shape: f32[10,128,64], index: 6, kind: input, shape index: {}]   ;;  %s5138_s7 = inlined_call_operand.vmem [shape: f32[10,1,64], index: 7, kind: input, shape index: {}]   ;;  %s5139_s8 = inlined_call_operand.vmem [shape: f32[64,128], index: 8, kind: input, shape index: {}]   ;;  %s5140_s9 = inlined_call_operand.vmem [shape: f32[64,128], index: 9, kind: input, shape index: {}]   ;;  %s5141_s10 = inlined_call_operand.vmem [shape: f32[1,128], index: 10, kind: input, shape index: {}]   ;;  %s5142_s11 = inlined_call_operand.vmem [shape: f32[128,64], index: 11, kind: input, shape index: {}]   ;;  %s5143_s12 = inlined_call_operand.vmem [shape: f32[1,64], index: 12, kind: input, shape index: {}]   ;;  %s5144_s13 = inlined_call_operand.hbm [shape: f32[2,8,64], index: 13, kind: output, shape index: {}]  }
   0x1   :  { %5149 = sst [smem:[#allocation9_spill]] %s5132_s1 }
   0x2   :  { %5150 = sst [smem:[#allocation10_spill]] %s5133_s2 }
   0x3   :  { %18 = vsyncpa [#allocation3], 0 }
   0x4   :  { %20 = vsyncpa [#allocation3 + $0x1], 0  ;;  %s3936_s25 = smov 0   ;;  %s3938_s26 = smov 0  }
   0x5   :  { %s3940_s27 = smov 0   ;;  %s3942_s28 = smov 0  }
   0x6 LB: > { %5151 = sst [smem:[#allocation5_spill]] %s3846_s27  ;;  %s3957_s29 = sadd.s32 4294967295, %s3850_s28   ;;  %s3850_s28 = sphi %s3942_s28, %s5160_s28   ;;  %s3846_s27 = sphi %s3940_s27, %s5162_s27   ;;  %s3842_s26 = sphi %s3938_s26, %s5164_s26   ;;  %s3838_s25 = sphi %s3936_s25, %s5163_s25  }
   0x7   : > { %s2525_s30 = sadd.s32 4294967294, %s3850_s28   ;;  %s3961_s14 = sadd.s32 1, %s3850_s28  }
   0x8   : > { %5152 = sst [smem:[#allocation6_spill]] %s3961_s14  ;;  %s326_s15 = sadd.s32 1, %s3846_s27 }
   0x9   : > { %s323_s16 = ssub.s32 %s3850_s28, %s3961_s14  ;;  %p336_p0 = scmp.ne.s32.totalorder %s3846_s27, %s3842_s26 }
   0xa   : > { %p324_p1 = scmp.eq.s32.totalorder %s323_s16, 0  ;;  %p337_p2 = scmp.eq.s32.totalorder %s3957_s29, 1 }
   0xb   : > { %p342_p3 = scmp.ne.s32.totalorder %s3842_s26, %s3838_s25  ;;  %p343_p4 = scmp.eq.s32.totalorder %s2525_s30, 1 }
   0xc   : > { %s3972_s17 = scalar_select %p324_p1, %s3846_s27, %s326_s15  }
   0xd   : > { %p3974_p5 = por %p337_p2, %p336_p0  ;;  %p3978_p6 = por %p343_p4, %p342_p3 }
   0xe   : > { %5153 = sst [smem:[#allocation7_spill]] %s3972_s17  ;;  %p2528_p7 = scmp.ge.s32.totalorder %s3850_s28, 1 }
   0xf   : > { %s5155_s19 = scalar_select %p3978_p6, 1, 0 }
  0x10   : > { %p416_p8 = scmp.lt.s32.totalorder %s3850_s28, 3 }
  0x11   : > { %5156 = sst [smem:[#allocation8_spill]] %s5155_s19 }
  0x12   : > { %p417_p9 = pnand %p2528_p7, %p416_p8 }
  0x13   : > { %p471_p10 = scmp.lt.s32.totalorder (!%p417_p9), %s3957_s29, 1  ;;  %v564_v0 = vld [vmem:[%s5135_s4 + $0x8] sm:$0xff] (!%p417_p9)  ;;  %v574_v1 = vld [vmem:[%s5135_s4 + $0x58] sm:$0xff] (!%p417_p9)  ;;  %v3852_v2 = vmov (!%p417_p9), 0.0   ;;  %vm3853_vm0 = vmmov (!%p417_p9), 0   ;;  %v563_v6 = vld [vmem:[%s5135_s4] sm:$0xff] (!%p417_p9) }
  0x14   : > { %420 = sbr.rel (%p417_p9) target bundleno = 1468 (0x5bc), region = 72  ;;  %2921 = vmatprep.subr.mxu0 (!%p417_p9), %v3852_v2  ;;  %2923 = vmatprep.mubr.msk.f32.mxu0 (!%p417_p9), %vm3853_vm0, %v3852_v2  ;;  %v3354_v3 = vpack.c.bf16 (!%p417_p9), %v574_v1, %v564_v0  ;;  %v566_v4 = vld [vmem:[%s5135_s4 + $0x18] sm:$0xff] (!%p417_p9)  ;;  %v576_v5 = vld [vmem:[%s5135_s4 + $0x68] sm:$0xff] (!%p417_p9)  ;;  %v573_v7 = vld [vmem:[%s5135_s4 + $0x50] sm:$0xff] (!%p417_p9)  ;;  %s5157_s1 = sld [smem:[#allocation9_spill]] (!%p417_p9)  ;;  %vm489_vm1 = vcmask (!%p417_p9), 64512  }
  0x15   : > { %v565_v8 = vld [vmem:[%s5135_s4 + $0x10] sm:$0xff] (!%p417_p9)  ;;  %v575_v9 = vld [vmem:[%s5135_s4 + $0x60] sm:$0xff] (!%p417_p9)  ;;  %765 = vmatprep.mubr.f32.mxu1 (!%p417_p9), %v3852_v2  ;;  %v3356_v10 = vpack.c.bf16 (!%p417_p9), %v573_v7, %v563_v6  ;;  %v584_v11 = vld [vmem:[%s5135_s4 + $0xa8] sm:$0xff] (!%p417_p9)  ;;  %v3370_v14 = vpack.c.bf16 (!%p417_p9), %v576_v5, %v566_v4  ;;  %s5158_s2 = sld [smem:[#allocation10_spill]] (!%p417_p9)  ;;  %vm697_vm2 = vcmask (!%p417_p9), 523264   ;;  %s468_s15 = sand.u32 (!%p417_p9), 1, %s3842_s26  }
  0x16   : > { %3355 = vmatprep.subr.bf16.mxu1 (!%p417_p9), %v3354_v3  ;;  %v594_v12 = vld [vmem:[%s5135_s4 + $0xf8] sm:$0xff] (!%p417_p9)  ;;  %v596_v16 = vld [vmem:[%s5135_s4 + $0x108] sm:$0xff] (!%p417_p9)  ;;  %v583_v17 = vld [vmem:[%s5135_s4 + $0xa0] sm:$0xff] (!%p417_p9)  ;;  %v3372_v19 = vpack.c.bf16 (!%p417_p9), %v575_v9, %v565_v8  ;;  %s2417_s23 = scalar_lea.sflag (!%p417_p9), [#allocation3], %s468_s15 }
  0x17   : > { %v586_v13 = vld [vmem:[%s5135_s4 + $0xb8] sm:$0xff] (!%p417_p9)  ;;  %v3358_v15 = vpack.c.bf16 (!%p417_p9), %v594_v12, %v584_v11  ;;  %v593_v18 = vld [vmem:[%s5135_s4 + $0xf0] sm:$0xff] (!%p417_p9)  ;;  %3357 = vmatpush1.bf16.msra.mxu1 (!%p417_p9), %v3356_v10  ;;  %v604_v22 = vld [vmem:[%s5135_s4 + $0x148] sm:$0xff] (!%p417_p9) }
  0x18   : > { %v3360_v20 = vpack.c.bf16 (!%p417_p9), %v593_v18, %v583_v17  ;;  %v585_v21 = vld [vmem:[%s5135_s4 + $0xb0] sm:$0xff] (!%p417_p9)  ;;  %v3374_v24 = vpack.c.bf16 (!%p417_p9), %v596_v16, %v586_v13  ;;  %v595_v25 = vld [vmem:[%s5135_s4 + $0x100] sm:$0xff] (!%p417_p9)  ;;  %v614_v26 = vld [vmem:[%s5135_s4 + $0x198] sm:$0xff] (!%p417_p9) }
  0x19   : > { %3359 = vmatprep.subr.bf16.mxu1 (!%p417_p9), %v3358_v15  ;;  %v3362_v28 = vpack.c.bf16 (!%p417_p9), %v614_v26, %v604_v22  ;;  %v606_v29 = vld [vmem:[%s5135_s4 + $0x158] sm:$0xff] (!%p417_p9)  ;;  %v616_v30 = vld [vmem:[%s5135_s4 + $0x1a8] sm:$0xff] (!%p417_p9)  ;;  %v603_v31 = vld [vmem:[%s5135_s4 + $0x140] sm:$0xff] (!%p417_p9)  ;;  %v3376_v33 = vpack.c.bf16 (!%p417_p9), %v595_v25, %v585_v21 }
  0x1a   : > { %v613_v32 = vld [vmem:[%s5135_s4 + $0x190] sm:$0xff] (!%p417_p9)  ;;  %v624_v35 = vld [vmem:[%s5135_s4 + $0x1e8] sm:$0xff] (!%p417_p9)  ;;  %v634_v36 = vld [vmem:[%s5135_s4 + $0x238] sm:$0xff] (!%p417_p9)  ;;  %v3378_v37 = vpack.c.bf16 (!%p417_p9), %v616_v30, %v606_v29 }
  0x1b   : > { %s472_s22 = scalar_select %p471_p10, %s3957_s29, 1  ;;  %3361 = vmatpush1.bf16.msra.mxu1 %v3360_v20  ;;  %v3364_v34 = vpack.c.bf16 %v613_v32, %v603_v31  ;;  %v605_v38 = vld [vmem:[%s5135_s4 + $0x150] sm:$0xff]  ;;  %v615_v39 = vld [vmem:[%s5135_s4 + $0x1a0] sm:$0xff]  ;;  %v3366_v40 = vpack.c.bf16 %v634_v36, %v624_v35  ;;  %v626_v42 = vld [vmem:[%s5135_s4 + $0x1f8] sm:$0xff] }
  0x1c   : > { %3363 = vmatprep.subr.bf16.mxu1 %v3362_v28  ;;  %v623_v41 = vld [vmem:[%s5135_s4 + $0x1e0] sm:$0xff]  ;;  %v636_v43 = vld [vmem:[%s5135_s4 + $0x248] sm:$0xff]  ;;  %v633_v44 = vld [vmem:[%s5135_s4 + $0x230] sm:$0xff]  ;;  %v3380_v45 = vpack.c.bf16 %v615_v39, %v605_v38 }
  0x1d   : > { %s4023_s27 = sshll.u32 %s472_s22, 3  ;;  %v3368_v46 = vpack.c.bf16 %v633_v44, %v623_v41  ;;  %v3382_v47 = vpack.c.bf16 %v636_v43, %v626_v42  ;;  %v625_v48 = vld [vmem:[%s5135_s4 + $0x1f0] sm:$0xff]  ;;  %v635_v49 = vld [vmem:[%s5135_s4 + $0x240] sm:$0xff]  ;;  %v568_v51 = vld [vmem:[%s5135_s4 + $0x28] sm:$0xff] }
  0x1e   : > { %s4038_s22 = scalar_lea.vmem %s5157_s1, %s4023_s27  ;;  %s482_s30 = scalar_lea.vmem %s5158_s2, %s4023_s27  ;;  %v3384_v50 = vpack.c.bf16 %v635_v49, %v625_v48  ;;  %v578_v52 = vld [vmem:[%s5135_s4 + $0x78] sm:$0xff]  ;;  %v580_v55 = vld [vmem:[%s5135_s4 + $0x88] sm:$0xff]  ;;  %v567_v57 = vld [vmem:[%s5135_s4 + $0x20] sm:$0xff] }
  0x1f   : > { %v487_v23 = vld [vmem:[%s4038_s22] sm:$0xff]  ;;  %3365 = vmatpush1.bf16.msra.mxu1 %v3364_v34  ;;  %v570_v53 = vld [vmem:[%s5135_s4 + $0x38] sm:$0xff]  ;;  %v3386_v54 = vpack.c.bf16 %v578_v52, %v568_v51  ;;  %v577_v58 = vld [vmem:[%s5135_s4 + $0x70] sm:$0xff]  ;;  %v3854_v52 = vmov 0.0|0.0   ;;  %s474_s21 = scalar_lea.vmem %s5131_s0, %s4023_s27 }
  0x20   : > { %2922 = vmatpush3.msra.mxu0 %v487_v23  ;;  %v488_v27 = vld [vmem:[%s482_s30] sm:$0xff]  ;;  %3367 = vmatprep.subr.bf16.mxu1 %v3366_v40  ;;  %v3402_v56 = vpack.c.bf16 %v580_v55, %v570_v53  ;;  %v569_v59 = vld [vmem:[%s5135_s4 + $0x30] sm:$0xff]  ;;  %v588_v61 = vld [vmem:[%s5135_s4 + $0xc8] sm:$0xff]  ;;  %v3388_v1 = vpack.c.bf16 %v577_v58, %v567_v57  ;;  %s486_s30 = scalar_lea.vmem %s5134_s3, %s4023_s27 }
  0x21   : > { %2924 = vmatmul.mubr.msk.f32.vlgmr.msra.gmra.mrb[0].mxu0 %vm489_vm1, %v488_v27  ;;  %3371 = vmatprep.subr.bf16.mxu0 %v3370_v14  ;;  %v579_v60 = vld [vmem:[%s5135_s4 + $0x80] sm:$0xff]  ;;  %v598_v62 = vld [vmem:[%s5135_s4 + $0x118] sm:$0xff]  ;;  %v600_v0 = vld [vmem:[%s5135_s4 + $0x128] sm:$0xff] }
  0x22   : > { %3373 = vmatpush1.bf16.msra.mxu0 %v3372_v19  ;;  %836 = vmatprep.mubr.f32.mxu0 %v3852_v2  ;;  %v590_v63 = vld [vmem:[%s5135_s4 + $0xd8] sm:$0xff]  ;;  %v3404_v3 = vpack.c.bf16 %v579_v60, %v569_v59  ;;  %v587_v4 = vld [vmem:[%s5135_s4 + $0xc0] sm:$0xff]  ;;  %v597_v5 = vld [vmem:[%s5135_s4 + $0x110] sm:$0xff]  ;;  %v3390_v6 = vpack.c.bf16 %v598_v62, %v588_v61 }
  0x23   : > { %3375 = vmatprep.subr.bf16.mxu0 %v3374_v24  ;;  %3369 = vmatpush1.bf16.msra.mxu1 %v3368_v46  ;;  %v3406_v7 = vpack.c.bf16 %v600_v0, %v590_v63  ;;  %v589_v8 = vld [vmem:[%s5135_s4 + $0xd0] sm:$0xff]  ;;  %v599_v9 = vld [vmem:[%s5135_s4 + $0x120] sm:$0xff]  ;;  %v608_v10 = vld [vmem:[%s5135_s4 + $0x168] sm:$0xff]  ;;  %v3392_v16 = vpack.c.bf16 %v597_v5, %v587_v4 }
  0x24   : > { %3387 = vmatprep.subr.bf16.mxu1 %v3386_v54  ;;  %v618_v12 = vld [vmem:[%s5135_s4 + $0x1b8] sm:$0xff]  ;;  %v620_v14 = vld [vmem:[%s5135_s4 + $0x1c8] sm:$0xff]  ;;  %v3408_v17 = vpack.c.bf16 %v599_v9, %v589_v8  ;;  %v607_v18 = vld [vmem:[%s5135_s4 + $0x160] sm:$0xff] }
  0x25   : > { %v610_v13 = vld [vmem:[%s5135_s4 + $0x178] sm:$0xff]  ;;  %v617_v19 = vld [vmem:[%s5135_s4 + $0x1b0] sm:$0xff]  ;;  %v3394_v20 = vpack.c.bf16 %v618_v12, %v608_v10  ;;  %v619_v23 = vld [vmem:[%s5135_s4 + $0x1c0] sm:$0xff] }
  0x26   : > { %3377 = vmatpush1.bf16.msra.mxu0 %v3376_v33  ;;  %v3410_v21 = vpack.c.bf16 %v620_v14, %v610_v13  ;;  %v609_v22 = vld [vmem:[%s5135_s4 + $0x170] sm:$0xff]  ;;  %v628_v24 = vld [vmem:[%s5135_s4 + $0x208] sm:$0xff]  ;;  %v638_v25 = vld [vmem:[%s5135_s4 + $0x258] sm:$0xff]  ;;  %v3396_v28 = vpack.c.bf16 %v617_v19, %v607_v18 }
  0x27   : > { %3379 = vmatprep.subr.bf16.mxu0 %v3378_v37  ;;  %v630_v26 = vld [vmem:[%s5135_s4 + $0x218] sm:$0xff]  ;;  %v640_v27 = vld [vmem:[%s5135_s4 + $0x268] sm:$0xff]  ;;  %v3412_v29 = vpack.c.bf16 %v619_v23, %v609_v22  ;;  %v627_v30 = vld [vmem:[%s5135_s4 + $0x200] sm:$0xff]  ;;  %v3398_v31 = vpack.c.bf16 %v638_v25, %v628_v24 }
  0x28   : > { %v3414_v32 = vpack.c.bf16 %v640_v27, %v630_v26  ;;  %v637_v33 = vld [vmem:[%s5135_s4 + $0x250] sm:$0xff]  ;;  %v639_v35 = vld [vmem:[%s5135_s4 + $0x260] sm:$0xff]  ;;  %v572_v36 = vld [vmem:[%s5135_s4 + $0x48] sm:$0xff] }
  0x29   : > { %v629_v34 = vld [vmem:[%s5135_s4 + $0x210] sm:$0xff]  ;;  %v582_v37 = vld [vmem:[%s5135_s4 + $0x98] sm:$0xff]  ;;  %v3400_v38 = vpack.c.bf16 %v637_v33, %v627_v30  ;;  %v571_v41 = vld [vmem:[%s5135_s4 + $0x40] sm:$0xff] }
  0x2a   : > { %3381 = vmatpush1.bf16.msra.mxu0 %v3380_v45  ;;  %v3416_v39 = vpack.c.bf16 %v639_v35, %v629_v34  ;;  %v3418_v40 = vpack.c.bf16 %v582_v37, %v572_v36  ;;  %v581_v42 = vld [vmem:[%s5135_s4 + $0x90] sm:$0xff]  ;;  %v592_v43 = vld [vmem:[%s5135_s4 + $0xe8] sm:$0xff]  ;;  %v602_v44 = vld [vmem:[%s5135_s4 + $0x138] sm:$0xff] }
  0x2b   : > { %3383 = vmatprep.subr.bf16.mxu0 %v3382_v47  ;;  %v1066_v45 = vld [vmem:[%s5137_s6] sm:$0xff]  ;;  %v1067_v46 = vld [vmem:[%s5137_s6 + $0x8] sm:$0xff]  ;;  %v3420_v47 = vpack.c.bf16 %v581_v42, %v571_v41  ;;  %v3422_v48 = vpack.c.bf16 %v602_v44, %v592_v43  ;;  %v622_v54 = vld [vmem:[%s5135_s4 + $0x1d8] sm:$0xff] }
  0x2c   : > { %v591_v49 = vld [vmem:[%s5135_s4 + $0xe0] sm:$0xff]  ;;  %v612_v51 = vld [vmem:[%s5135_s4 + $0x188] sm:$0xff]  ;;  %v3435_v53 = vpack.c.bf16 %v1067_v46, %v1066_v45  ;;  %v1068_v55 = vld [vmem:[%s5137_s6 + $0x10] sm:$0xff] }
  0x2d   : > { %v3426_v58 = vpack.c.bf16 %v622_v54, %v612_v51  ;;  %v611_v59 = vld [vmem:[%s5135_s4 + $0x180] sm:$0xff]  ;;  %v621_v60 = vld [vmem:[%s5135_s4 + $0x1d0] sm:$0xff]  ;;  %v632_v61 = vld [vmem:[%s5135_s4 + $0x228] sm:$0xff]  ;;  %v647_v51 = vlaneseq }
  0x2e   : > { %3385 = vmatpush1.bf16.msra.mxu0 %v3384_v50  ;;  %v601_v50 = vld [vmem:[%s5135_s4 + $0x130] sm:$0xff]  ;;  %v642_v63 = vld [vmem:[%s5135_s4 + $0x278] sm:$0xff]  ;;  %v1070_v0 = vld [vmem:[%s5137_s6 + $0x20] sm:$0xff] }
  0x2f   : > { %3403 = vmatprep.subr.bf16.mxu0 %v3402_v56  ;;  %v1069_v56 = vld [vmem:[%s5137_s6 + $0x18] sm:$0xff]  ;;  %v3424_v57 = vpack.c.bf16 %v601_v50, %v591_v49  ;;  %v3430_v4 = vpack.c.bf16 %v642_v63, %v632_v61  ;;  %v631_v5 = vld [vmem:[%s5135_s4 + $0x220] sm:$0xff]  ;;  %v1072_v8 = vld [vmem:[%s5137_s6 + $0x30] sm:$0xff]  ;;  %v3855_v49 = vmov 0   ;;  %v3856_v50 = vmov 1  }
  0x30   : > { %v3438_v62 = vpack.c.bf16 %v1069_v56, %v1068_v55  ;;  %v1073_v9 = vld [vmem:[%s5137_s6 + $0x38] sm:$0xff]  ;;  %v2541_v12 = vld [vmem:[%s5137_s6 + $0x80] sm:$0xff]  ;;  %v2542_v13 = vld [vmem:[%s5137_s6 + $0x88] sm:$0xff]  ;;  %3776 = vset.pattern.permute.xlu0 %v3855_v49  ;;  %v4386_v54 = vshrl.u32 %v647_v51, 7 }
  0x31   : > { %v3444_v14 = vpack.c.bf16 %v1073_v9, %v1072_v8  ;;  %v2543_v18 = vld [vmem:[%s5137_s6 + $0x90] sm:$0xff]  ;;  %v2544_v19 = vld [vmem:[%s5137_s6 + $0x98] sm:$0xff]  ;;  %v2545_v24 = vld [vmem:[%s5137_s6 + $0xa0] sm:$0xff] }
  0x32   : > { %v1077_v22 = vld [vmem:[%s5137_s6 + $0x58] sm:$0xff]  ;;  %v3462_v23 = vpack.c.bf16 %v2544_v19, %v2543_v18  ;;  %v2546_v25 = vld [vmem:[%s5137_s6 + $0xa8] sm:$0xff]  ;;  %v2549_v33 = vld [vmem:[%s5137_s6 + $0xc0] sm:$0xff]  ;;  %v649_v55 = vsub.s32 0, %v4386_v54 }
  0x33   : > { %v1079_v27 = vld [vmem:[%s5137_s6 + $0x68] sm:$0xff]  ;;  %v2548_v30 = vld [vmem:[%s5137_s6 + $0xb8] sm:$0xff]  ;;  %v2551_v36 = vld [vmem:[%s5137_s6 + $0xd0] sm:$0xff] }
  0x34   : > { %v2550_v34 = vld [vmem:[%s5137_s6 + $0xc8] sm:$0xff]  ;;  %v2552_v37 = vld [vmem:[%s5137_s6 + $0xd8] sm:$0xff]  ;;  %v1080_v42 = vld [vmem:[%s5137_s6 + $0x70] sm:$0xff] }
  0x35   : > { %v3471_v35 = vpack.c.bf16 %v2550_v34, %v2549_v33  ;;  %v1081_v43 = vld [vmem:[%s5137_s6 + $0x78] sm:$0xff]  ;;  %v2555_v45 = vld [vmem:[%s5137_s6 + $0xf0] sm:$0xff]  ;;  %v4393_v56 = vld [vmem:[%s5136_s5] sm:$0xff] }
  0x36   : > { %v3456_v44 = vpack.c.bf16 %v1081_v43, %v1080_v42  ;;  %v2556_v46 = vld [vmem:[%s5137_s6 + $0xf8] sm:$0xff]  ;;  %v2559_v61 = vld [vmem:[%s5137_s6 + $0x100] sm:$0xff]  ;;  %v2568_v34 = vld [vmem:[%s5137_s6 + $0x148] sm:$0xff] }
  0x37   : > { %v2563_v19 = vld [vmem:[%s5137_s6 + $0x120] sm:$0xff]  ;;  %v2569_v43 = vld [vmem:[%s5137_s6 + $0x150] sm:$0xff] }
  0x38   : > { %v2567_v33 = vld [vmem:[%s5137_s6 + $0x140] sm:$0xff] }
  0xf4   : > { %v4152_v11 = vpop.f32.mrb[0].mxu0 }
  0xf5   : > { %v2925_v15 = vpop.f32.mrb[1].mxu0  ;;  %2535 = vmatmul.mubr.msk.f32.vlgmr.msra.gmra.mrb[0].mxu1 %vm697_vm2, %v4152_v11  ;;  %2536 = vmatmul.mubr.msk.f32.vlgmr.msra.gmra.mrb[2].mxu0 %vm697_vm2, %v4152_v11 }
  0xf6   : > { %3389 = vmatpush1.bf16.msra.mxu1 %v3388_v1  ;;  %3405 = vmatpush1.bf16.msra.mxu0 %v3404_v3  ;;  %v1071_v1 = vld [vmem:[%s5137_s6 + $0x28] sm:$0xff]  ;;  %v3428_v3 = vpack.c.bf16 %v621_v60, %v611_v59  ;;  %v1074_v15 = vld [vmem:[%s5137_s6 + $0x40] sm:$0xff]  ;;  %v650_v59 = vrot.slane %v4393_v56, %v649_v55 }
  0xf7   : > { %3391 = vmatprep.subr.bf16.mxu1 %v3390_v6  ;;  %3407 = vmatprep.subr.bf16.mxu0 %v3406_v7  ;;  %v641_v6 = vld [vmem:[%s5135_s4 + $0x270] sm:$0xff]  ;;  %v3441_v7 = vpack.c.bf16 %v1071_v1, %v1070_v0  ;;  %v2577_v1 = vld [vmem:[%s5137_s6 + $0x180] sm:$0xff] }
  0xf8   : > { %907 = vmatprep.mubr.f32.mxu1 %v3852_v2  ;;  %978 = vmatprep.mubr.f32.mxu0 %v3852_v2  ;;  %v3432_v10 = vpack.c.bf16 %v641_v6, %v631_v5 }
  0xfa   : > { %3393 = vmatpush1.bf16.msra.mxu1 %v3392_v16  ;;  %3409 = vmatpush1.bf16.msra.mxu0 %v3408_v17  ;;  %v1075_v16 = vld [vmem:[%s5137_s6 + $0x48] sm:$0xff]  ;;  %v3459_v17 = vpack.c.bf16 %v2542_v13, %v2541_v12  ;;  %v2561_v12 = vld [vmem:[%s5137_s6 + $0x110] sm:$0xff]  ;;  %v2562_v13 = vld [vmem:[%s5137_s6 + $0x118] sm:$0xff] }
  0xfb   : > { %3395 = vmatprep.subr.bf16.mxu1 %v3394_v20  ;;  %3411 = vmatprep.subr.bf16.mxu0 %v3410_v21  ;;  %v3447_v20 = vpack.c.bf16 %v1075_v16, %v1074_v15  ;;  %v1076_v21 = vld [vmem:[%s5137_s6 + $0x50] sm:$0xff]  ;;  %v2580_v16 = vld [vmem:[%s5137_s6 + $0x198] sm:$0xff] }
  0xfc   : > { %v3450_v26 = vpack.c.bf16 %v1077_v22, %v1076_v21  ;;  %v2579_v15 = vld [vmem:[%s5137_s6 + $0x190] sm:$0xff]  ;;  %v2581_v21 = vld [vmem:[%s5137_s6 + $0x1a0] sm:$0xff]  ;;  %v2582_v22 = vld [vmem:[%s5137_s6 + $0x1a8] sm:$0xff] }
  0xfd   : > { %v3510_v18 = vpack.c.bf16 %v2580_v16, %v2579_v15  ;;  %v2595_v15 = vld [vmem:[%s5137_s6 + $0x200] sm:$0xff]  ;;  %v2596_v16 = vld [vmem:[%s5137_s6 + $0x208] sm:$0xff] }
  0xfe   : > { %3397 = vmatpush1.bf16.msra.mxu1 %v3396_v28  ;;  %3413 = vmatpush1.bf16.msra.mxu0 %v3412_v29  ;;  %v3465_v28 = vpack.c.bf16 %v2546_v25, %v2545_v24  ;;  %v2547_v29 = vld [vmem:[%s5137_s6 + $0xb0] sm:$0xff]  ;;  %v3513_v25 = vpack.c.bf16 %v2582_v22, %v2581_v21  ;;  %v3531_v21 = vpack.c.bf16 %v2596_v16, %v2595_v15 }
  0xff   : > { %3399 = vmatprep.subr.bf16.mxu1 %v3398_v31  ;;  %3415 = vmatprep.subr.bf16.mxu0 %v3414_v32  ;;  %v3468_v32 = vpack.c.bf16 %v2548_v30, %v2547_v29  ;;  %v3860_v29 = vmov 5   ;;  %v2627_v16 = vld [vmem:[%s5137_s6 + $0x2f0] sm:$0xff] }
 0x102   : > { %3401 = vmatpush1.bf16.msra.mxu1 %v3400_v38  ;;  %3417 = vmatpush1.bf16.msra.mxu0 %v3416_v39  ;;  %v3474_v38 = vpack.c.bf16 %v2552_v37, %v2551_v36  ;;  %v2553_v39 = vld [vmem:[%s5137_s6 + $0xe0] sm:$0xff] }
 0x103   : > { %3419 = vmatprep.subr.bf16.mxu1 %v3418_v40  ;;  %3434 = vmatprep.subr.bf16.mxu0 %v3854_v52  ;;  %v2554_v40 = vld [vmem:[%s5137_s6 + $0xe8] sm:$0xff]  ;;  %v2585_v37 = vld [vmem:[%s5137_s6 + $0x1c0] sm:$0xff] }
 0x104   : > { %v3477_v41 = vpack.c.bf16 %v2554_v40, %v2553_v39 }
 0x105   : > { %2537 = vmatmul.mubr.msk.f32.vlgmr.msra.gmra.mrb[2].mxu1 %vm697_vm2, %v4152_v11  ;;  %2538 = vmatmul.mubr.msk.f32.vlgmr.msra.gmra.mrb[4].mxu0 %vm697_vm2, %v4152_v11 }
 0x106   : > { %3421 = vmatpush1.bf16.msra.mxu1 %v3420_v47  ;;  %1049 = vmatprep.mubr.f32.mxu1 %v3852_v2  ;;  %v3480_v47 = vpack.c.bf16 %v2556_v46, %v2555_v45  ;;  %v2587_v45 = vld [vmem:[%s5137_s6 + $0x1d0] sm:$0xff]  ;;  %v2588_v46 = vld [vmem:[%s5137_s6 + $0x1d8] sm:$0xff] }
 0x107   : > { %3423 = vmatprep.subr.bf16.mxu1 %v3422_v48  ;;  %3436 = vmatpush3.bf16.msra.mxu0 %v3435_v53  ;;  %v4382_v48 = vld [vmem:[%s474_s21] sm:$0xff]  ;;  %v3857_v53 = vmov 2   ;;  %v3522_v51 = vpack.c.bf16 %v2588_v46, %v2587_v45  ;;  %v2604_v46 = vld [vmem:[%s5137_s6 + $0x248] sm:$0xff] }
 0x108   : > { %3437 = vmatprep.subr.bf16.mxu0 %v3854_v52  ;;  %2958 = vmatprep.mubr.msk.f32.mxu0 %vm3853_vm0, %v3852_v2  ;;  %v2603_v45 = vld [vmem:[%s5137_s6 + $0x240] sm:$0xff] }
 0x109   : > { %1162 = vperm.xlu0 %3776, %v4382_v48   ;;  %3778 = vset.pattern.permute.xlu1 %v3857_v53  ;;  %v2571_v53 = vld [vmem:[%s5137_s6 + $0x160] sm:$0xff] }
 0x10a   : > { %3425 = vmatpush1.bf16.msra.mxu1 %v3424_v57  ;;  %1364 = vperm.xlu1 %3778, %v4382_v48   ;;  %v653_v57 = vsub.s32 1, %v4386_v54 }
 0x10b   : > { %3427 = vmatprep.subr.bf16.mxu1 %v3426_v58  ;;  %3439 = vmatpush3.bf16.msra.mxu0 %v3438_v62  ;;  %v3858_v58 = vmov 3   ;;  %v2560_v62 = vld [vmem:[%s5137_s6 + $0x108] sm:$0xff] }
 0x10c   : > { %3440 = vmatprep.subr.bf16.mxu0 %v3854_v52  ;;  %v654_v60 = vrot.slane %v4393_v56, %v653_v57  ;;  %v3483_v8 = vpack.c.bf16 %v2560_v62, %v2559_v61  ;;  %v2590_v61 = vld [vmem:[%s5137_s6 + $0x1e8] sm:$0xff] }
 0x10d   : > { %3777 = vset.pattern.permute.xlu0 %v3856_v50  ;;  %v657_v50 = vsub.s32 2, %v4386_v54 }
 0x10e   : > { %3429 = vmatpush1.bf16.msra.mxu1 %v3428_v3  ;;  %1263 = vperm.xlu0 %3777, %v4382_v48   ;;  %v2578_v3 = vld [vmem:[%s5137_s6 + $0x188] sm:$0xff] }
 0x10f   : > { %3431 = vmatprep.subr.bf16.mxu1 %v3430_v4  ;;  %3442 = vmatpush3.bf16.msra.mxu0 %v3441_v7 }
 0x110   : > { %3443 = vmatprep.subr.bf16.mxu0 %v3854_v52  ;;  %3779 = vset.pattern.permute.xlu1 %v3858_v58  ;;  %v2572_v58 = vld [vmem:[%s5137_s6 + $0x168] sm:$0xff] }
 0x111   : > { %1465 = vperm.xlu1 %3779, %v4382_v48   ;;  %v3501_v62 = vpack.c.bf16 %v2572_v58, %v2571_v53  ;;  %v2605_v53 = vld [vmem:[%s5137_s6 + $0x250] sm:$0xff]  ;;  %v2606_v58 = vld [vmem:[%s5137_s6 + $0x258] sm:$0xff] }
 0x112   : > { %3433 = vmatpush1.bf16.msra.mxu1 %v3432_v10  ;;  %v3507_v10 = vpack.c.bf16 %v2578_v3, %v2577_v1  ;;  %3781 = vset.pattern.permute.xlu0 %v3860_v29  ;;  %v4524_v3 = vld [vmem:[%s5136_s5 + $0x8] sm:$0x3]  ;;  %v2599_v29 = vld [vmem:[%s5137_s6 + $0x220] sm:$0xff] }
 0x113   : > { %3458 = vmatprep.subr.bf16.mxu1 %v3854_v52  ;;  %3445 = vmatpush3.bf16.msra.mxu0 %v3444_v14 }
 0x114   : > { %3446 = vmatprep.subr.bf16.mxu0 %v3854_v52  ;;  %1667 = vperm.xlu0 %3781, %v4382_v48  }
 0x115   : > { %2539 = vmatmul.mubr.msk.f32.vlgmr.msra.gmra.mrb[4].mxu1 %vm697_vm2, %v4152_v11  ;;  %v1078_v11 = vld [vmem:[%s5137_s6 + $0x60] sm:$0xff] }
 0x116   : > { %3460 = vmatpush3.bf16.msra.mxu1 %v3459_v17  ;;  %2993 = vmatprep.mubr.msk.f32.mxu1 %vm3853_vm0, %v3852_v2  ;;  %v3453_v31 = vpack.c.bf16 %v1079_v27, %v1078_v11  ;;  %v3486_v17 = vpack.c.bf16 %v2562_v13, %v2561_v12  ;;  %v2566_v11 = vld [vmem:[%s5137_s6 + $0x138] sm:$0xff]  ;;  %v2583_v27 = vld [vmem:[%s5137_s6 + $0x1b0] sm:$0xff] }
 0x117   : > { %3461 = vmatprep.subr.bf16.mxu1 %v3854_v52  ;;  %3448 = vmatpush3.bf16.msra.mxu0 %v3447_v20  ;;  %v2564_v20 = vld [vmem:[%s5137_s6 + $0x128] sm:$0xff] }
 0x118   : > { %3449 = vmatprep.subr.bf16.mxu0 %v3854_v52  ;;  %v3489_v24 = vpack.c.bf16 %v2564_v20, %v2563_v19 }
 0x11a   : > { %3463 = vmatpush3.bf16.msra.mxu1 %v3462_v23  ;;  %v3859_v23 = vmov 4  }
 0x11b   : > { %3464 = vmatprep.subr.bf16.mxu1 %v3854_v52  ;;  %3451 = vmatpush3.bf16.msra.mxu0 %v3450_v26  ;;  %v2565_v26 = vld [vmem:[%s5137_s6 + $0x130] sm:$0xff] }
 0x11c   : > { %3452 = vmatprep.subr.bf16.mxu0 %v3854_v52  ;;  %3780 = vset.pattern.permute.xlu1 %v3859_v23  ;;  %v3492_v30 = vpack.c.bf16 %v2566_v11, %v2565_v26  ;;  %v2597_v23 = vld [vmem:[%s5137_s6 + $0x210] sm:$0xff]  ;;  %v2616_v11 = vld [vmem:[%s5137_s6 + $0x298] sm:$0xff] }
 0x11d   : > { %1566 = vperm.xlu1 %3780, %v4382_v48   ;;  %v2615_v26 = vld [vmem:[%s5137_s6 + $0x290] sm:$0xff] }
 0x11e   : > { %3466 = vmatpush3.bf16.msra.mxu1 %v3465_v28  ;;  %v2584_v28 = vld [vmem:[%s5137_s6 + $0x1b8] sm:$0xff] }
 0x11f   : > { %3467 = vmatprep.subr.bf16.mxu1 %v3854_v52  ;;  %3454 = vmatpush3.bf16.msra.mxu0 %v3453_v31  ;;  %v3861_v31 = vmov 6  }
 0x120   : > { %3455 = vmatprep.subr.bf16.mxu0 %v3854_v52 }
 0x121   : > { %3782 = vset.pattern.permute.xlu1 %v3861_v31  ;;  %v2617_v31 = vld [vmem:[%s5137_s6 + $0x2a0] sm:$0xff] }
 0x122   : > { %3469 = vmatpush3.bf16.msra.mxu1 %v3468_v32  ;;  %v3516_v32 = vpack.c.bf16 %v2584_v28, %v2583_v27  ;;  %1768 = vperm.xlu1 %3782, %v4382_v48   ;;  %v3558_v28 = vpack.c.bf16 %v2616_v11, %v2615_v26  ;;  %v2634_v11 = vld [vmem:[%s5137_s6 + $0x318] sm:$0xff] }
 0x123   : > { %3470 = vmatprep.subr.bf16.mxu1 %v3854_v52  ;;  %3457 = vmatpush3.bf16.msra.mxu0 %v3456_v44  ;;  %v2570_v44 = vld [vmem:[%s5137_s6 + $0x158] sm:$0xff] }
 0x124   : > { %3482 = vmatprep.subr.bf16.mxu0 %v3854_v52  ;;  %v3498_v49 = vpack.c.bf16 %v2570_v44, %v2569_v43 }
 0x126   : > { %3472 = vmatpush3.bf16.msra.mxu1 %v3471_v35 }
 0x127   : > { %3473 = vmatprep.subr.bf16.mxu1 %v3854_v52 }
 0x12a   : > { %3475 = vmatpush3.bf16.msra.mxu1 %v3474_v38  ;;  %v2586_v38 = vld [vmem:[%s5137_s6 + $0x1c8] sm:$0xff] }
 0x12b   : > { %3476 = vmatprep.subr.bf16.mxu1 %v3854_v52  ;;  %v3519_v42 = vpack.c.bf16 %v2586_v38, %v2585_v37  ;;  %v2601_v37 = vld [vmem:[%s5137_s6 + $0x230] sm:$0xff]  ;;  %v2602_v38 = vld [vmem:[%s5137_s6 + $0x238] sm:$0xff] }
 0x12c   : > { %v3540_v43 = vpack.c.bf16 %v2602_v38, %v2601_v37  ;;  %v2654_v37 = vld [vmem:[%s5137_s6 + $0x3a8] sm:$0xff] }
 0x12e   : > { %3478 = vmatpush3.bf16.msra.mxu1 %v3477_v41  ;;  %v3495_v41 = vpack.c.bf16 %v2568_v34, %v2567_v33 }
 0x12f   : > { %3479 = vmatprep.subr.bf16.mxu1 %v3854_v52 }
 0x132   : > { %3481 = vmatpush3.bf16.msra.mxu1 %v3480_v47  ;;  %v3862_v47 = vmov 7  }
 0x133   : > { %3506 = vmatprep.subr.bf16.mxu1 %v3854_v52  ;;  %3783 = vset.pattern.permute.xlu1 %v3862_v47  ;;  %v2621_v47 = vld [vmem:[%s5137_s6 + $0x2c0] sm:$0xff] }
 0x134   : > { %1869 = vperm.xlu1 %3783, %v4382_v48  }
 0x1c8   : > { %v767_v63 = vpop.f32.mrb[0].mxu1  ;;  %v4409_v0 = vpop.f32.mrb[2].mxu0 }
 0x1c9   : > { %v768_v4 = vadd.f32 %v767_v63, %v650_v59  ;;  %v769_v5 = vpop.f32.mrb[1].mxu1  ;;  %v4417_v6 = vpop.f32.mrb[3].mxu0  ;;  %v661_v59 = vsub.s32 3, %v4386_v54  ;;  %v658_v63 = vrot.slane %v4393_v56, %v657_v50  ;;  %v3543_v50 = vpack.c.bf16 %v2604_v46, %v2603_v45  ;;  %v2656_v45 = vld [vmem:[%s5137_s6 + $0x3b8] sm:$0xff] }
 0x1ca   : > { %v770_v7 = vadd.f32 %v769_v5, %v654_v60  ;;  %v2589_v60 = vld [vmem:[%s5137_s6 + $0x1e0] sm:$0xff]  ;;  %v2574_v5 = vld [vmem:[%s5137_s6 + $0x178] sm:$0xff] }
 0x1cb   : > { %v1056_v9 = vmax.f32 %v768_v4, 0.0  ;;  %v3525_v1 = vpack.c.bf16 %v2590_v61, %v2589_v60  ;;  %v2573_v4 = vld [vmem:[%s5137_s6 + $0x170] sm:$0xff]  ;;  %v839_v13 = vadd.f32 %v4409_v0, %v658_v63  ;;  %v2614_v0 = vld [vmem:[%s5137_s6 + $0x288] sm:$0xff]  ;;  %v2624_v60 = vld [vmem:[%s5137_s6 + $0x2d8] sm:$0xff]  ;;  %v3546_v61 = vpack.c.bf16 %v2606_v58, %v2605_v53 }
 0x1cc   : > { %v1057_v14 = vmax.f32 %v770_v7, 0.0  ;;  %v662_v7 = vrot.slane %v4393_v56, %v661_v59  ;;  %v3504_v12 = vpack.c.bf16 %v2574_v5, %v2573_v4  ;;  %v2623_v59 = vld [vmem:[%s5137_s6 + $0x2d0] sm:$0xff]  ;;  %v2608_v4 = vld [vmem:[%s5137_s6 + $0x268] sm:$0xff]  ;;  %v669_v5 = vsub.s32 5, %v4386_v54 }
 0x1cd   : > { %2959 = vmatmul.mubr.f32.vlgmr.msra.gmra.mrb[6].mxu0 %v1056_v9  ;;  %v2592_v9 = vld [vmem:[%s5137_s6 + $0x1f8] sm:$0xff]  ;;  %v1058_v22 = vmax.f32 %v839_v13, 0.0  ;;  %v3570_v63 = vpack.c.bf16 %v2624_v60, %v2623_v59  ;;  %v2609_v13 = vld [vmem:[%s5137_s6 + $0x270] sm:$0xff]  ;;  %v2658_v53 = vld [vmem:[%s5137_s6 + $0x3c8] sm:$0xff] }
 0x1ce   : > { %3484 = vmatpush3.bf16.msra.mxu0 %v3483_v8  ;;  %2994 = vmatmul.mubr.f32.vlgmr.msra.gmra.mrb[6].mxu1 %v1057_v14  ;;  %v2591_v8 = vld [vmem:[%s5137_s6 + $0x1f0] sm:$0xff]  ;;  %v670_v15 = vrot.slane %v4393_v56, %v669_v5 }
 0x1cf   : > { %3508 = vmatpush3.bf16.msra.mxu1 %v3507_v10  ;;  %3485 = vmatprep.subr.bf16.mxu0 %v3854_v52  ;;  %v686_v10 = vrot.slane %v4524_v3, %v653_v57  ;;  %v3528_v14 = vpack.c.bf16 %v2592_v9, %v2591_v8  ;;  %v2613_v57 = vld [vmem:[%s5137_s6 + $0x280] sm:$0xff]  ;;  %v2626_v8 = vld [vmem:[%s5137_s6 + $0x2e8] sm:$0xff]  ;;  %v2641_v60 = vld [vmem:[%s5137_s6 + $0x350] sm:$0xff] }
 0x1d0   : > { %3509 = vmatprep.subr.bf16.mxu1 %v3854_v52  ;;  %3028 = vmatprep.mubr.msk.f32.mxu0 %vm3853_vm0, %v3852_v2 }
 0x1d1   : > { %3063 = vmatprep.mubr.msk.f32.mxu1 %vm3853_vm0, %v3852_v2 }
 0x1d2   : > { %3487 = vmatpush3.bf16.msra.mxu0 %v3486_v17  ;;  %v841_v17 = vadd.f32 %v4417_v6, %v662_v7  ;;  %v3555_v6 = vpack.c.bf16 %v2614_v0, %v2613_v57  ;;  %v2625_v7 = vld [vmem:[%s5137_s6 + $0x2e0] sm:$0xff] }
 0x1d3   : > { %3511 = vmatpush3.bf16.msra.mxu1 %v3510_v18  ;;  %3488 = vmatprep.subr.bf16.mxu0 %v3854_v52 }
 0x1d4   : > { %3512 = vmatprep.subr.bf16.mxu1 %v3854_v52 }
 0x1d6   : > { %3490 = vmatpush3.bf16.msra.mxu0 %v3489_v24  ;;  %v2598_v24 = vld [vmem:[%s5137_s6 + $0x218] sm:$0xff] }
 0x1d7   : > { %3514 = vmatpush3.bf16.msra.mxu1 %v3513_v25  ;;  %3491 = vmatprep.subr.bf16.mxu0 %v3854_v52  ;;  %v1059_v25 = vmax.f32 %v841_v17, 0.0  ;;  %v3534_v27 = vpack.c.bf16 %v2598_v24, %v2597_v23  ;;  %v2628_v17 = vld [vmem:[%s5137_s6 + $0x2f8] sm:$0xff]  ;;  %v2650_v23 = vld [vmem:[%s5137_s6 + $0x388] sm:$0xff] }
 0x1d8   : > { %v4472_v35 = vpop.f32.mrb[2].mxu1  ;;  %v4474_v36 = vpop.f32.mrb[4].mxu0  ;;  %3515 = vmatprep.subr.bf16.mxu1 %v3854_v52 }
 0x1d9   : > { %v4484_v39 = vpop.f32.mrb[3].mxu1  ;;  %v4486_v40 = vpop.f32.mrb[5].mxu0 }
 0x1da   : > { %3493 = vmatpush3.bf16.msra.mxu0 %v3492_v30  ;;  %v2600_v30 = vld [vmem:[%s5137_s6 + $0x228] sm:$0xff] }
 0x1db   : > { %3517 = vmatpush3.bf16.msra.mxu1 %v3516_v32  ;;  %3494 = vmatprep.subr.bf16.mxu0 %v3854_v52  ;;  %v2618_v32 = vld [vmem:[%s5137_s6 + $0x2a8] sm:$0xff]  ;;  %v3537_v33 = vpack.c.bf16 %v2600_v30, %v2599_v29  ;;  %v2652_v29 = vld [vmem:[%s5137_s6 + $0x398] sm:$0xff] }
 0x1dc   : > { %3518 = vmatprep.subr.bf16.mxu1 %v3854_v52  ;;  %v3561_v34 = vpack.c.bf16 %v2618_v32, %v2617_v31  ;;  %v2635_v32 = vld [vmem:[%s5137_s6 + $0x320] sm:$0xff] }
 0x1de   : > { %3496 = vmatpush3.bf16.msra.mxu0 %v3495_v41  ;;  %v2619_v41 = vld [vmem:[%s5137_s6 + $0x2b0] sm:$0xff] }
 0x1df   : > { %3520 = vmatpush3.bf16.msra.mxu1 %v3519_v42  ;;  %3497 = vmatprep.subr.bf16.mxu0 %v3854_v52  ;;  %v2620_v42 = vld [vmem:[%s5137_s6 + $0x2b8] sm:$0xff] }
 0x1e0   : > { %3521 = vmatprep.subr.bf16.mxu1 %v3854_v52  ;;  %v3564_v44 = vpack.c.bf16 %v2620_v42, %v2619_v41  ;;  %v2637_v42 = vld [vmem:[%s5137_s6 + $0x330] sm:$0xff] }
 0x1e2   : > { %3499 = vmatpush3.bf16.msra.mxu0 %v3498_v49  ;;  %v2622_v49 = vld [vmem:[%s5137_s6 + $0x2c8] sm:$0xff] }
 0x1e3   : > { %3523 = vmatpush3.bf16.msra.mxu1 %v3522_v51  ;;  %3500 = vmatprep.subr.bf16.mxu0 %v3854_v52  ;;  %v3567_v51 = vpack.c.bf16 %v2622_v49, %v2621_v47  ;;  %v2639_v49 = vld [vmem:[%s5137_s6 + $0x340] sm:$0xff] }
 0x1e4   : > { %3524 = vmatprep.subr.bf16.mxu1 %v3854_v52 }
 0x1e6   : > { %3502 = vmatpush3.bf16.msra.mxu0 %v3501_v62  ;;  %v665_v62 = vsub.s32 4, %v4386_v54 }
 0x1e7   : > { %3526 = vmatpush3.bf16.msra.mxu1 %v3525_v1  ;;  %3503 = vmatprep.subr.bf16.mxu0 %v3854_v52  ;;  %v2607_v1 = vld [vmem:[%s5137_s6 + $0x260] sm:$0xff] }
 0x1e8   : > { %v4552_v18 = vpop.f32.mrb[4].mxu1  ;;  %3527 = vmatprep.subr.bf16.mxu1 %v3854_v52  ;;  %v3549_v9 = vpack.c.bf16 %v2608_v4, %v2607_v1  ;;  %v673_v4 = vsub.s32 6, %v4386_v54 }
 0x1e9   : > { %v1053_v19 = vpop.f32.mrb[5].mxu1 }
 0x1ea   : > { %v4561_v20 = vadd.f32 %v1053_v19, %v686_v10  ;;  %3505 = vmatpush3.bf16.msra.mxu0 %v3504_v12  ;;  %v666_v10 = vrot.slane %v4393_v56, %v665_v62  ;;  %v3573_v12 = vpack.c.bf16 %v2626_v8, %v2625_v7  ;;  %v3576_v19 = vpack.c.bf16 %v2628_v17, %v2627_v16  ;;  %v2659_v62 = vld [vmem:[%s5137_s6 + $0x3d0] sm:$0xff]  ;;  %v2643_v7 = vld [vmem:[%s5137_s6 + $0x360] sm:$0xff]  ;;  %v2644_v8 = vld [vmem:[%s5137_s6 + $0x368] sm:$0xff] }
 0x1eb   : > { %3529 = vmatpush3.bf16.msra.mxu1 %v3528_v14  ;;  %3530 = vmatprep.subr.bf16.mxu0 %v3854_v52  ;;  %v2610_v14 = vld [vmem:[%s5137_s6 + $0x278] sm:$0xff]  ;;  %v2645_v17 = vld [vmem:[%s5137_s6 + $0x370] sm:$0xff] }
 0x1ec   : > { %3554 = vmatprep.subr.bf16.mxu1 %v3854_v52  ;;  %v3552_v57 = vpack.c.bf16 %v2610_v14, %v2609_v13  ;;  %v910_v0 = vadd.f32 %v4472_v35, %v666_v10  ;;  %v2649_v35 = vld [vmem:[%s5137_s6 + $0x380] sm:$0xff]  ;;  %v3597_v13 = vpack.c.bf16 %v2644_v8, %v2643_v7  ;;  %v3863_v14 = vmov 8   ;;  %v2680_v8 = vld [vmem:[%s5137_s6 + $0x468] sm:$0xff] }
 0x1ed   : > { %3029 = vmatmul.mubr.f32.vlgmr.msra.gmra.mrb[8].mxu0 %v1058_v22  ;;  %v2632_v22 = vld [vmem:[%s5137_s6 + $0x308] sm:$0xff]  ;;  %v3603_v26 = vpack.c.bf16 %v2650_v23, %v2649_v35  ;;  %v2661_v10 = vld [vmem:[%s5137_s6 + $0x3e0] sm:$0xff]  ;;  %3784 = vset.pattern.permute.xlu0 %v3863_v14 }
 0x1ee   : > { %3064 = vmatmul.mubr.f32.vlgmr.msra.gmra.mrb[8].mxu1 %v1059_v25  ;;  %3532 = vmatpush3.bf16.msra.mxu0 %v3531_v21  ;;  %v2631_v21 = vld [vmem:[%s5137_s6 + $0x300] sm:$0xff]  ;;  %v1060_v25 = vmax.f32 %v910_v0, 0.0 }
 0x1ef   : > { %3556 = vmatpush3.bf16.msra.mxu1 %v3555_v6  ;;  %3533 = vmatprep.subr.bf16.mxu0 %v3854_v52  ;;  %v912_v6 = vadd.f32 %v4484_v39, %v670_v15  ;;  %v3579_v24 = vpack.c.bf16 %v2632_v22, %v2631_v21  ;;  %v2633_v39 = vld [vmem:[%s5137_s6 + $0x310] sm:$0xff]  ;;  %v674_v15 = vrot.slane %v4393_v56, %v673_v4  ;;  %v2664_v21 = vld [vmem:[%s5137_s6 + $0x3f8] sm:$0xff]  ;;  %v3864_v22 = vmov 9   ;;  %v2667_v23 = vld [vmem:[%s5137_s6 + $0x400] sm:$0xff] }
 0x1f0   : > { %3557 = vmatprep.subr.bf16.mxu1 %v3854_v52  ;;  %3098 = vmatprep.mubr.msk.f32.mxu0 %vm3853_vm0, %v3852_v2  ;;  %v3582_v30 = vpack.c.bf16 %v2634_v11, %v2633_v39  ;;  %v2679_v7 = vld [vmem:[%s5137_s6 + $0x460] sm:$0xff] }
 0x1f1   : > { %3133 = vmatprep.mubr.msk.f32.mxu1 %vm3853_vm0, %v3852_v2  ;;  %3785 = vset.pattern.permute.xlu1 %v3864_v22 }
 0x1f2   : > { %3535 = vmatpush3.bf16.msra.mxu0 %v3534_v27  ;;  %v1061_v27 = vmax.f32 %v912_v6, 0.0  ;;  %1970 = vperm.xlu0 %3784, %v4382_v48  }
 0x1f3   : > { %3559 = vmatpush3.bf16.msra.mxu1 %v3558_v28  ;;  %3536 = vmatprep.subr.bf16.mxu0 %v3854_v52  ;;  %v2651_v28 = vld [vmem:[%s5137_s6 + $0x390] sm:$0xff] }
 0x1f4   : > { %3560 = vmatprep.subr.bf16.mxu1 %v3854_v52  ;;  %v3606_v31 = vpack.c.bf16 %v2652_v29, %v2651_v28  ;;  %2071 = vperm.xlu1 %3785, %v4382_v48   ;;  %v2685_v48 = vld [vmem:[%s5137_s6 + $0x480] sm:$0xff]  ;;  %v2687_v29 = vld [vmem:[%s5137_s6 + $0x490] sm:$0xff] }
 0x1f6   : > { %3538 = vmatpush3.bf16.msra.mxu0 %v3537_v33  ;;  %v2636_v33 = vld [vmem:[%s5137_s6 + $0x328] sm:$0xff]  ;;  %3786 = vset.pattern.permute.xlu0 %v3864_v22  ;;  %v2558_v22 = vld [vmem:[%s5138_s7 + $0x1] ss:$0 sm:$0xff] }
 0x1f7   : > { %3562 = vmatpush3.bf16.msra.mxu1 %v3561_v34  ;;  %3539 = vmatprep.subr.bf16.mxu0 %v3854_v52  ;;  %v2653_v34 = vld [vmem:[%s5137_s6 + $0x3a0] sm:$0xff]  ;;  %v3585_v38 = vpack.c.bf16 %v2636_v33, %v2635_v32 }
 0x1f8   : > { %3563 = vmatprep.subr.bf16.mxu1 %v3854_v52  ;;  %v3609_v41 = vpack.c.bf16 %v2654_v37, %v2653_v34  ;;  %v2671_v33 = vld [vmem:[%s5137_s6 + $0x420] sm:$0xff]  ;;  %v2672_v34 = vld [vmem:[%s5137_s6 + $0x428] sm:$0xff] }
 0x1f9   : > { %v2689_v37 = vld [vmem:[%s5137_s6 + $0x4a0] sm:$0xff] }
 0x1fa   : > { %3541 = vmatpush3.bf16.msra.mxu0 %v3540_v43  ;;  %v2638_v43 = vld [vmem:[%s5137_s6 + $0x338] sm:$0xff] }
 0x1fb   : > { %3565 = vmatpush3.bf16.msra.mxu1 %v3564_v44  ;;  %3542 = vmatprep.subr.bf16.mxu0 %v3854_v52  ;;  %v2655_v44 = vld [vmem:[%s5137_s6 + $0x3b0] sm:$0xff]  ;;  %v3588_v46 = vpack.c.bf16 %v2638_v43, %v2637_v42 }
 0x1fc   : > { %3566 = vmatprep.subr.bf16.mxu1 %v3854_v52  ;;  %v3612_v47 = vpack.c.bf16 %v2656_v45, %v2655_v44  ;;  %v2673_v43 = vld [vmem:[%s5137_s6 + $0x430] sm:$0xff]  ;;  %v2674_v44 = vld [vmem:[%s5137_s6 + $0x438] sm:$0xff] }
 0x1fd   : > { %v2691_v45 = vld [vmem:[%s5137_s6 + $0x4b0] sm:$0xff] }
 0x1fe   : > { %3544 = vmatpush3.bf16.msra.mxu0 %v3543_v50  ;;  %v2640_v50 = vld [vmem:[%s5137_s6 + $0x348] sm:$0xff] }
 0x1ff   : > { %3568 = vmatpush3.bf16.msra.mxu1 %v3567_v51  ;;  %3545 = vmatprep.subr.bf16.mxu0 %v3854_v52  ;;  %v2657_v51 = vld [vmem:[%s5137_s6 + $0x3c0] sm:$0xff]  ;;  %v3591_v58 = vpack.c.bf16 %v2640_v50, %v2639_v49 }
 0x200   : > { %3569 = vmatprep.subr.bf16.mxu1 %v3854_v52  ;;  %v3615_v59 = vpack.c.bf16 %v2658_v53, %v2657_v51  ;;  %v2675_v50 = vld [vmem:[%s5137_s6 + $0x440] sm:$0xff]  ;;  %v2676_v51 = vld [vmem:[%s5137_s6 + $0x448] sm:$0xff] }
 0x201   : > { %v2693_v53 = vld [vmem:[%s5137_s6 + $0x4c0] sm:$0xff] }
 0x202   : > { %3547 = vmatpush3.bf16.msra.mxu0 %v3546_v61  ;;  %v2642_v61 = vld [vmem:[%s5137_s6 + $0x358] sm:$0xff] }
 0x203   : > { %3571 = vmatpush3.bf16.msra.mxu1 %v3570_v63  ;;  %3548 = vmatprep.subr.bf16.mxu0 %v3854_v52  ;;  %v2660_v63 = vld [vmem:[%s5137_s6 + $0x3d8] sm:$0xff]  ;;  %v3594_v1 = vpack.c.bf16 %v2642_v61, %v2641_v60  ;;  %v2677_v61 = vld [vmem:[%s5137_s6 + $0x450] sm:$0xff] }
 0x204   : > { %3572 = vmatprep.subr.bf16.mxu1 %v3854_v52  ;;  %v3618_v5 = vpack.c.bf16 %v2660_v63, %v2659_v62  ;;  %v2678_v62 = vld [vmem:[%s5137_s6 + $0x458] sm:$0xff]  ;;  %v2695_v63 = vld [vmem:[%s5137_s6 + $0x4d0] sm:$0xff] }
 0x205   : > { %v3642_v4 = vpack.c.bf16 %v2678_v62, %v2677_v61 }
 0x206   : > { %3550 = vmatpush3.bf16.msra.mxu0 %v3549_v9  ;;  %v677_v9 = vsub.s32 7, %v4386_v54  ;;  %v2699_v54 = vld [vmem:[%s5137_s6 + $0x4f0] sm:$0xff] }
 0x207   : > { %3574 = vmatpush3.bf16.msra.mxu1 %v3573_v12  ;;  %3551 = vmatprep.subr.bf16.mxu0 %v3854_v52  ;;  %v2662_v12 = vld [vmem:[%s5137_s6 + $0x3e8] sm:$0xff] }
 0x208   : > { %3575 = vmatprep.subr.bf16.mxu1 %v3854_v52  ;;  %v3621_v16 = vpack.c.bf16 %v2662_v12, %v2661_v10  ;;  %v678_v0 = vrot.slane %v4393_v56, %v677_v9  ;;  %v981_v56 = vadd.f32 %v4474_v36, %v674_v15  ;;  %v2686_v36 = vld [vmem:[%s5137_s6 + $0x488] sm:$0xff]  ;;  %v2697_v9 = vld [vmem:[%s5137_s6 + $0x4e0] sm:$0xff]  ;;  %v3645_v12 = vpack.c.bf16 %v2680_v8, %v2679_v7  ;;  %v2681_v15 = vld [vmem:[%s5137_s6 + $0x470] sm:$0xff] }
 0x209   : > { %v3651_v11 = vpack.c.bf16 %v2686_v36, %v2685_v48  ;;  %v2698_v10 = vld [vmem:[%s5137_s6 + $0x4e8] sm:$0xff] }
 0x20a   : > { %3553 = vmatpush3.bf16.msra.mxu0 %v3552_v57  ;;  %v2646_v57 = vld [vmem:[%s5137_s6 + $0x378] sm:$0xff]  ;;  %v1062_v39 = vmax.f32 %v981_v56, 0.0  ;;  %v3669_v14 = vpack.c.bf16 %v2698_v10, %v2697_v9 }
 0x20b   : > { %3577 = vmatpush3.bf16.msra.mxu1 %v3576_v19  ;;  %3578 = vmatprep.subr.bf16.mxu0 %v3854_v52  ;;  %v2663_v19 = vld [vmem:[%s5137_s6 + $0x3f0] sm:$0xff]  ;;  %v3600_v6 = vpack.c.bf16 %v2646_v57, %v2645_v17 }
 0x20c   : > { %3602 = vmatprep.subr.bf16.mxu1 %v3854_v52  ;;  %v3624_v35 = vpack.c.bf16 %v2664_v21, %v2663_v19  ;;  %v1065_v19 = vmax.f32 %v4561_v20, 0.0  ;;  %v2540_v21 = vld [vmem:[%s5138_s7] ss:$0 sm:$0xff] }
 0x20d   : > { %3099 = vmatmul.mubr.f32.vlgmr.msra.gmra.mrb[10].mxu0 %v1060_v25  ;;  %v983_v25 = vadd.f32 %v4486_v40, %v678_v0  ;;  %v2669_v40 = vld [vmem:[%s5137_s6 + $0x410] sm:$0xff] }
 0x20e   : > { %3134 = vmatmul.mubr.f32.vlgmr.msra.gmra.mrb[10].mxu1 %v1061_v27  ;;  %3580 = vmatpush3.bf16.msra.mxu0 %v3579_v24  ;;  %v2668_v24 = vld [vmem:[%s5137_s6 + $0x408] sm:$0xff]  ;;  %v2670_v27 = vld [vmem:[%s5137_s6 + $0x418] sm:$0xff] }
 0x20f   : > { %3604 = vmatpush3.bf16.msra.mxu1 %v3603_v26  ;;  %3581 = vmatprep.subr.bf16.mxu0 %v3854_v52  ;;  %v3627_v26 = vpack.c.bf16 %v2668_v24, %v2667_v23  ;;  %v1063_v28 = vmax.f32 %v983_v25, 0.0 }
 0x210   : > { %3605 = vmatprep.subr.bf16.mxu1 %v3854_v52  ;;  %3168 = vmatprep.mubr.msk.f32.mxu0 %vm3853_vm0, %v3852_v2 }
 0x211   : > { %3203 = vmatprep.mubr.msk.f32.mxu1 %vm3853_vm0, %v3852_v2 }
 0x212   : > { %3583 = vmatpush3.bf16.msra.mxu0 %v3582_v30  ;;  %v2688_v30 = vld [vmem:[%s5137_s6 + $0x498] sm:$0xff] }
 0x213   : > { %3607 = vmatpush3.bf16.msra.mxu1 %v3606_v31  ;;  %3584 = vmatprep.subr.bf16.mxu0 %v3854_v52  ;;  %v3630_v31 = vpack.c.bf16 %v2670_v27, %v2669_v40  ;;  %v3654_v32 = vpack.c.bf16 %v2688_v30, %v2687_v29  ;;  %v2594_v40 = vld [vmem:[%s5138_s7 + $0x3] ss:$0 sm:$0xff] }
 0x214   : > { %3608 = vmatprep.subr.bf16.mxu1 %v3854_v52 }
 0x216   : > { %3586 = vmatpush3.bf16.msra.mxu0 %v3585_v38  ;;  %v2690_v38 = vld [vmem:[%s5137_s6 + $0x4a8] sm:$0xff] }
 0x217   : > { %3610 = vmatpush3.bf16.msra.mxu1 %v3609_v41  ;;  %3587 = vmatprep.subr.bf16.mxu0 %v3854_v52  ;;  %v3633_v41 = vpack.c.bf16 %v2672_v34, %v2671_v33  ;;  %v3657_v42 = vpack.c.bf16 %v2690_v38, %v2689_v37 }
 0x218   : > { %3611 = vmatprep.subr.bf16.mxu1 %v3854_v52 }
 0x21a   : > { %3589 = vmatpush3.bf16.msra.mxu0 %v3588_v46  ;;  %v2692_v46 = vld [vmem:[%s5137_s6 + $0x4b8] sm:$0xff] }
 0x21b   : > { %3613 = vmatpush3.bf16.msra.mxu1 %v3612_v47  ;;  %3590 = vmatprep.subr.bf16.mxu0 %v3854_v52  ;;  %v3636_v47 = vpack.c.bf16 %v2674_v44, %v2673_v43  ;;  %v3660_v49 = vpack.c.bf16 %v2692_v46, %v2691_v45  ;;  %v2630_v43 = vld [vmem:[%s5138_s7 + $0x5] ss:$0 sm:$0xff] }
 0x21c   : > { %3614 = vmatprep.subr.bf16.mxu1 %v3854_v52 }
 0x21e   : > { %3592 = vmatpush3.bf16.msra.mxu0 %v3591_v58  ;;  %v2694_v58 = vld [vmem:[%s5137_s6 + $0x4c8] sm:$0xff] }
 0x21f   : > { %3616 = vmatpush3.bf16.msra.mxu1 %v3615_v59  ;;  %3593 = vmatprep.subr.bf16.mxu0 %v3854_v52  ;;  %v3639_v59 = vpack.c.bf16 %v2676_v51, %v2675_v50  ;;  %v3663_v60 = vpack.c.bf16 %v2694_v58, %v2693_v53 }
 0x220   : > { %3617 = vmatprep.subr.bf16.mxu1 %v3854_v52 }
 0x222   : > { %3595 = vmatpush3.bf16.msra.mxu0 %v3594_v1  ;;  %v2696_v1 = vld [vmem:[%s5137_s6 + $0x4d8] sm:$0xff] }
 0x223   : > { %3619 = vmatpush3.bf16.msra.mxu1 %v3618_v5  ;;  %3596 = vmatprep.subr.bf16.mxu0 %v3854_v52  ;;  %v3666_v5 = vpack.c.bf16 %v2696_v1, %v2695_v63  ;;  %v2648_v63 = vld [vmem:[%s5138_s7 + $0x6] ss:$0 sm:$0xff]  ;;  %v2666_v1 = vld [vmem:[%s5138_s7 + $0x7] ss:$0 sm:$0xff] }
 0x224   : > { %3620 = vmatprep.subr.bf16.mxu1 %v3854_v52 }
 0x226   : > { %3598 = vmatpush3.bf16.msra.mxu0 %v3597_v13  ;;  %v682_v13 = vrot.slane %v4524_v3, %v649_v55  ;;  %v2700_v55 = vld [vmem:[%s5137_s6 + $0x4f8] sm:$0xff] }
 0x227   : > { %3622 = vmatpush3.bf16.msra.mxu1 %v3621_v16  ;;  %3599 = vmatprep.subr.bf16.mxu0 %v3854_v52  ;;  %v2682_v16 = vld [vmem:[%s5137_s6 + $0x478] sm:$0xff]  ;;  %v3672_v57 = vpack.c.bf16 %v2700_v55, %v2699_v54  ;;  %v2684_v54 = vld [vmem:[%s5138_s7 + $0x8] ss:$0 sm:$0xff]  ;;  %v2702_v55 = vld [vmem:[%s5138_s7 + $0x9] ss:$0 sm:$0xff] }
 0x228   : > { %3623 = vmatprep.subr.bf16.mxu1 %v3854_v52  ;;  %v3648_v3 = vpack.c.bf16 %v2682_v16, %v2681_v15  ;;  %v1052_v17 = vadd.f32 %v4552_v18, %v682_v13  ;;  %v1163_v18 = vpop.permute.xlu0 %1162 }
 0x22a   : > { %3601 = vmatpush3.bf16.msra.mxu0 %v3600_v6  ;;  %v1064_v0 = vmax.f32 %v1052_v17, 0.0 }
 0x22b   : > { %3625 = vmatpush3.bf16.msra.mxu1 %v3624_v35  ;;  %3626 = vmatprep.subr.bf16.mxu0 %v3854_v52 }
 0x22c   : > { %3650 = vmatprep.subr.bf16.mxu1 %v3854_v52  ;;  %v1264_v6 = vpop.permute.xlu0 %1263 }
 0x22d   : > { %3169 = vmatmul.mubr.f32.vlgmr.msra.gmra.mrb[12].mxu0 %v1062_v39  ;;  %v1365_v39 = vpop.permute.xlu1 %1364 }
 0x22e   : > { %3204 = vmatmul.mubr.f32.vlgmr.msra.gmra.mrb[12].mxu1 %v1063_v28  ;;  %3628 = vmatpush3.bf16.msra.mxu0 %v3627_v26 }
 0x22f   : > { %3652 = vmatpush3.bf16.msra.mxu1 %v3651_v11  ;;  %3629 = vmatprep.subr.bf16.mxu0 %v3854_v52  ;;  %v2576_v11 = vld [vmem:[%s5138_s7 + $0x2] ss:$0 sm:$0xff] }
 0x230   : > { %3653 = vmatprep.subr.bf16.mxu1 %v3854_v52  ;;  %3238 = vmatprep.mubr.msk.f32.mxu0 %vm3853_vm0, %v3852_v2  ;;  %v1668_v46 = vpop.permute.xlu0 %1667 }
 0x231   : > { %3273 = vmatprep.mubr.msk.f32.mxu1 %vm3853_vm0, %v3852_v2  ;;  %v1466_v28 = vpop.permute.xlu1 %1465 }
 0x232   : > { %3631 = vmatpush3.bf16.msra.mxu0 %v3630_v31 }
 0x233   : > { %3655 = vmatpush3.bf16.msra.mxu1 %v3654_v32  ;;  %3632 = vmatprep.subr.bf16.mxu0 %v3854_v52 }
 0x234   : > { %3656 = vmatprep.subr.bf16.mxu1 %v3854_v52 }
 0x235   : > { %v1567_v44 = vpop.permute.xlu1 %1566 }
 0x236   : > { %3634 = vmatpush3.bf16.msra.mxu0 %v3633_v41 }
 0x237   : > { %3658 = vmatpush3.bf16.msra.mxu1 %v3657_v42  ;;  %3635 = vmatprep.subr.bf16.mxu0 %v3854_v52  ;;  %v2612_v42 = vld [vmem:[%s5138_s7 + $0x4] ss:$0 sm:$0xff] }
 0x238   : > { %3659 = vmatprep.subr.bf16.mxu1 %v3854_v52 }
 0x239   : > { %v1769_v62 = vpop.permute.xlu1 %1768 }
 0x23a   : > { %3637 = vmatpush3.bf16.msra.mxu0 %v3636_v47 }
 0x23b   : > { %3661 = vmatpush3.bf16.msra.mxu1 %v3660_v49  ;;  %3638 = vmatprep.subr.bf16.mxu0 %v3854_v52 }
 0x23c   : > { %3662 = vmatprep.subr.bf16.mxu1 %v3854_v52 }
 0x23e   : > { %3640 = vmatpush3.bf16.msra.mxu0 %v3639_v59 }
 0x23f   : > { %3664 = vmatpush3.bf16.msra.mxu1 %v3663_v60  ;;  %3641 = vmatprep.subr.bf16.mxu0 %v3854_v52 }
 0x240   : > { %3665 = vmatprep.subr.bf16.mxu1 %v3854_v52 }
 0x242   : > { %3643 = vmatpush3.bf16.msra.mxu0 %v3642_v4 }
 0x243   : > { %3667 = vmatpush3.bf16.msra.mxu1 %v3666_v5  ;;  %3644 = vmatprep.subr.bf16.mxu0 %v3854_v52  ;;  %v1870_v5 = vpop.permute.xlu1 %1869 }
 0x244   : > { %3668 = vmatprep.subr.bf16.mxu1 %v3854_v52 }
 0x246   : > { %3646 = vmatpush3.bf16.msra.mxu0 %v3645_v12 }
 0x247   : > { %3670 = vmatpush3.bf16.msra.mxu1 %v3669_v14  ;;  %3647 = vmatprep.subr.bf16.mxu0 %v3854_v52 }
 0x248   : > { %3671 = vmatprep.subr.bf16.mxu1 %v3854_v52 }
 0x24a   : > { %3649 = vmatpush3.bf16.msra.mxu0 %v3648_v3 }
 0x24b   : > { %3673 = vmatpush3.bf16.msra.mxu1 %v3672_v57  ;;  %3276 = vmatprep.subr.mxu0 %v3852_v2 }
 0x24c   : > { %3698 = vmatprep.subr.bf16.mxu1 %v3854_v52 }
 0x24d   : > { %3239 = vmatmul.mubr.f32.vlgmr.msra.gmra.mrb[14].mxu0 %v1064_v0 }
 0x24e   : > { %3274 = vmatmul.mubr.f32.vlgmr.msra.gmra.mrb[14].mxu1 %v1065_v19  ;;  %3278 = vmatprep.mubr.msk.f32.mxu0 %vm3853_vm0, %v3852_v2 }
 0x24f   : > { %3351 = vmatprep.mubr.msk.f32.mxu1 %vm3853_vm0, %v3852_v2 }
 0x271   : > { %v1971_v3 = vpop.permute.xlu0 %1970 }
 0x273   : > { %v2072_v57 = vpop.permute.xlu1 %2071 }
 0x2a0   : > { %v1155_v20 = vpop.f32.mrb[6].mxu0 }
 0x2a1   : > { %v1156_v56 = vadd.f32 %v2540_v21, %v1155_v20  ;;  %v2960_v35 = vpop.f32.mrb[7].mxu0  ;;  %v1258_v23 = vpop.f32.mrb[6].mxu1 }
 0x2a2   : > { %v1259_v24 = vadd.f32 %v2558_v22, %v1258_v23  ;;  %v2995_v25 = vpop.f32.mrb[7].mxu1  ;;  %v2159_v35 = vld [vmem:[%s5140_s9 + $0x8] sm:$0xff] }
 0x2a3   : > { %v1165_v48 = vmul.f32 %v1163_v18, %v1156_v56  ;;  %v2158_v56 = vld [vmem:[%s5140_s9] sm:$0xff] }
 0x2a4   : > { %v1266_v36 = vmul.f32 %v1264_v6, %v1259_v24  ;;  %v2076_v25 = vld [vmem:[%s486_s30] sm:$0xff]  ;;  %s2529_s30 = sshll.u32 %s468_s15, 3 }
 0x2a5   : > { %s470_s2 = scalar_lea.vmem [#allocation2], %s2529_s30 }
 0x2a6   : > { %v1267_v26 = vadd.f32 %v1266_v36, %v1165_v48  ;;  %v3675_v48 = vpack.c.bf16 %v2159_v35, %v2158_v56  ;;  %v2160_v36 = vld [vmem:[%s5140_s9 + $0x10] sm:$0xff]  ;;  %s2430_s17 = sshll.u32 %s470_s2, 4  ;;  %s5090_s17 = int_to_ptr.vmem [resolvable:$true] %s2430_s17 }
 0x2a7   : > { %s3788_s27 = scalar_lea.vmem %s5090_s17, 128 }
 0x2a8   : > { %p3789_p11 = scmp.ne.s32.totalorder %s5090_s17, %s3788_s27 }
 0x2aa   : > { %p3790_p12 = pnand %p3789_p11, %p3974_p5 }
 0x2ac   : > { %p3791_p13 = pneg %p3790_p12 }
 0x2c0   : > { %v1359_v27 = vpop.f32.mrb[8].mxu0 }
 0x2c1   : > { %v1360_v29 = vadd.f32 %v2576_v11, %v1359_v27  ;;  %v3030_v30 = vpop.f32.mrb[9].mxu0  ;;  %v1460_v31 = vpop.f32.mrb[8].mxu1  ;;  %v2162_v11 = vld [vmem:[%s5140_s9 + $0x20] sm:$0xff] }
 0x2c2   : > { %v1461_v32 = vadd.f32 %v2594_v40, %v1460_v31  ;;  %v3065_v33 = vpop.f32.mrb[9].mxu1  ;;  %v2163_v40 = vld [vmem:[%s5140_s9 + $0x28] sm:$0xff]  ;;  %v2150_v31 = vld [vmem:[%s5139_s8] sm:$0xff] }
 0x2c3   : > { %v1367_v34 = vmul.f32 %v1365_v39, %v1360_v29  ;;  %v3681_v27 = vpack.c.bf16 %v2163_v40, %v2162_v11  ;;  %v2165_v29 = vld [vmem:[%s5140_s9 + $0x38] sm:$0xff] }
 0x2c4   : > { %v1468_v37 = vmul.f32 %v1466_v28, %v1461_v32  ;;  %v2164_v28 = vld [vmem:[%s5140_s9 + $0x30] sm:$0xff]  ;;  %v2151_v32 = vld [vmem:[%s5139_s8 + $0x8] sm:$0xff] }
 0x2c5   : > { %v1368_v38 = vadd.f32 %v1367_v34, %v1267_v26  ;;  %v2161_v26 = vld [vmem:[%s5140_s9 + $0x18] sm:$0xff]  ;;  %v3684_v30 = vpack.c.bf16 %v2165_v29, %v2164_v28  ;;  %v3687_v33 = vpack.c.bf16 %v2151_v32, %v2150_v31  ;;  %v2152_v34 = vld [vmem:[%s5139_s8 + $0x10] sm:$0xff] }
 0x2c6   : > { %v3678_v39 = vpack.c.bf16 %v2161_v26, %v2160_v36 }
 0x2c7   : > { %v1469_v41 = vadd.f32 %v1468_v37, %v1368_v38  ;;  %v2153_v37 = vld [vmem:[%s5139_s8 + $0x18] sm:$0xff]  ;;  %v3787_v38 = vld [vmem:[%s4038_s22] sm:$0xff]  ;;  %s2709_s22 = sshll.u32 %s3957_s29, 7  ;;  %s3865_s29 = smov [#allocation2]  }
 0x2c8   : > { %s5088_s19 = scalar_lea.hbm %s5144_s13, %s2709_s22  ;;  %s3792_s24 = sshll.u32 %s3865_s29, 4  ;;  %s3793_s24 = int_to_ptr.vmem [resolvable:$false] %s3792_s24 }
 0x2c9   : > { %s3794_s1 = scalar_lea.vmem %s3793_s24, 256  ;;  %p3795_p0 = scmp.lt.s32.totalorder %s5090_s17, %s3793_s24 }
 0x2ca   : > { %p3796_p1 = scmp.lt.s32.totalorder %s3794_s1, %s3788_s27 }
 0x2cc   : > { %p3797_p2 = por %p3796_p1, %p3795_p0 }
 0x2ce   : > { %p3798_p3 = pnand %p3797_p2, %p3791_p13 }
 0x2e0   : > { %v1561_v45 = vpop.f32.mrb[10].mxu0 }
 0x2e1   : > { %v1562_v47 = vadd.f32 %v2612_v42, %v1561_v45  ;;  %v3100_v49 = vpop.f32.mrb[11].mxu0  ;;  %v1662_v50 = vpop.f32.mrb[10].mxu1  ;;  %v2154_v42 = vld [vmem:[%s5139_s8 + $0x20] sm:$0xff]  ;;  %v2156_v45 = vld [vmem:[%s5139_s8 + $0x30] sm:$0xff] }
 0x2e2   : > { %v1663_v51 = vadd.f32 %v2630_v43, %v1662_v50  ;;  %v3135_v53 = vpop.f32.mrb[11].mxu1  ;;  %v2155_v43 = vld [vmem:[%s5139_s8 + $0x28] sm:$0xff]  ;;  %v2324_v50 = vld [vmem:[%s5142_s11 + $0x10] sm:$0xff] }
 0x2e3   : > { %v1569_v58 = vmul.f32 %v1567_v44, %v1562_v47  ;;  %v3693_v44 = vpack.c.bf16 %v2155_v43, %v2154_v42  ;;  %v2322_v47 = vld [vmem:[%s5142_s11] sm:$0xff]  ;;  %v2323_v49 = vld [vmem:[%s5142_s11 + $0x8] sm:$0xff]  ;;  %v2325_v53 = vld [vmem:[%s5142_s11 + $0x18] sm:$0xff] }
 0x2e4   : > { %v1670_v59 = vmul.f32 %v1668_v46, %v1663_v51  ;;  %v3699_v51 = vpack.c.bf16 %v2323_v49, %v2322_v47 }
 0x2e5   : > { %v1570_v60 = vadd.f32 %v1569_v58, %v1469_v41  ;;  %v3690_v41 = vpack.c.bf16 %v2153_v37, %v2152_v34  ;;  %v3702_v58 = vpack.c.bf16 %v2325_v53, %v2324_v50 }
 0x2e6   : > { %3700 = vmatpush3.bf16.msra.mxu1 %v3699_v51 }
 0x2e7   : > { %v1671_v61 = vadd.f32 %v1670_v59, %v1570_v60  ;;  %3701 = vmatprep.subr.bf16.mxu1 %v3854_v52  ;;  %v2326_v59 = vld [vmem:[%s5142_s11 + $0x20] sm:$0xff]  ;;  %v2327_v60 = vld [vmem:[%s5142_s11 + $0x28] sm:$0xff] }
 0x2ea   : > { %3703 = vmatpush3.bf16.msra.mxu1 %v3702_v58 }
 0x2eb   : > { %3704 = vmatprep.subr.bf16.mxu1 %v3854_v52 }
 0x300   : > { %v1763_v4 = vpop.f32.mrb[12].mxu0 }
 0x301   : > { %v1764_v7 = vadd.f32 %v2648_v63, %v1763_v4  ;;  %v3170_v8 = vpop.f32.mrb[13].mxu0  ;;  %v1864_v9 = vpop.f32.mrb[12].mxu1  ;;  %v2329_v63 = vld [vmem:[%s5142_s11 + $0x38] sm:$0xff]  ;;  %v2330_v4 = vld [vmem:[%s5142_s11 + $0x40] sm:$0xff] }
 0x302   : > { %v1865_v10 = vadd.f32 %v2666_v1, %v1864_v9  ;;  %v3205_v12 = vpop.f32.mrb[13].mxu1  ;;  %v2332_v8 = vld [vmem:[%s5142_s11 + $0x50] sm:$0xff]  ;;  %v2333_v9 = vld [vmem:[%s5142_s11 + $0x58] sm:$0xff] }
 0x303   : > { %v1771_v13 = vmul.f32 %v1769_v62, %v1764_v7  ;;  %v2328_v62 = vld [vmem:[%s5142_s11 + $0x30] sm:$0xff] }
 0x304   : > { %v1872_v14 = vmul.f32 %v1870_v5, %v1865_v10  ;;  %v3708_v1 = vpack.c.bf16 %v2329_v63, %v2328_v62  ;;  %v2331_v5 = vld [vmem:[%s5142_s11 + $0x48] sm:$0xff]  ;;  %v3714_v10 = vpack.c.bf16 %v2333_v9, %v2332_v8 }
 0x305   : > { %v1772_v15 = vadd.f32 %v1771_v13, %v1671_v61  ;;  %v3705_v61 = vpack.c.bf16 %v2327_v60, %v2326_v59  ;;  %v3711_v7 = vpack.c.bf16 %v2331_v5, %v2330_v4 }
 0x307   : > { %v1873_v16 = vadd.f32 %v1872_v14, %v1772_v15  ;;  %3706 = vmatpush3.bf16.msra.mxu1 %v3705_v61  ;;  %v2334_v14 = vld [vmem:[%s5142_s11 + $0x60] sm:$0xff]  ;;  %v2335_v15 = vld [vmem:[%s5142_s11 + $0x68] sm:$0xff] }
 0x308   : > { %3707 = vmatprep.subr.bf16.mxu1 %v3854_v52 }
 0x30b   : > { %3709 = vmatpush3.bf16.msra.mxu1 %v3708_v1 }
 0x30c   : > { %3710 = vmatprep.subr.bf16.mxu1 %v3854_v52 }
 0x30f   : > { %3712 = vmatpush3.bf16.msra.mxu1 %v3711_v7 }
 0x310   : > { %3713 = vmatprep.subr.bf16.mxu1 %v3854_v52 }
 0x313   : > { %3715 = vmatpush3.bf16.msra.mxu1 %v3714_v10 }
 0x314   : > { %3716 = vmatprep.subr.bf16.mxu1 %v3854_v52 }
 0x320   : > { %v1965_v17 = vpop.f32.mrb[14].mxu0 }
 0x321   : > { %v1966_v0 = vadd.f32 %v2684_v54, %v1965_v17  ;;  %v3240_v19 = vpop.f32.mrb[15].mxu0  ;;  %v2066_v18 = vpop.f32.mrb[14].mxu1  ;;  %v2336_v54 = vld [vmem:[%s5142_s11 + $0x70] sm:$0xff] }
 0x322   : > { %v2067_v21 = vadd.f32 %v2702_v55, %v2066_v18  ;;  %v3275_v22 = vpop.f32.mrb[15].mxu1  ;;  %v2337_v55 = vld [vmem:[%s5142_s11 + $0x78] sm:$0xff] }
 0x323   : > { %v1973_v20 = vmul.f32 %v1971_v3, %v1966_v0  ;;  %v3720_v3 = vpack.c.bf16 %v2337_v55, %v2336_v54 }
 0x324   : > { %v2074_v6 = vmul.f32 %v2072_v57, %v2067_v21  ;;  %v2706_v57 = vld [vmem:[%s5141_s10] ss:$0 sm:$0xff] }
 0x325   : > { %v1974_v23 = vadd.f32 %v1973_v20, %v1873_v16  ;;  %v3717_v16 = vpack.c.bf16 %v2335_v15, %v2334_v14 }
 0x327   : > { %v2075_v24 = vadd.f32 %v2074_v6, %v1974_v23  ;;  %3718 = vmatpush3.bf16.msra.mxu1 %v3717_v16 }
 0x328   : > { %3719 = vmatprep.subr.bf16.mxu1 %v3854_v52 }
 0x329   : > { %3277 = vmatpush3.msra.mxu0 %v2075_v24 }
 0x32a   : > { %3279 = vmatmul.mubr.msk.f32.vlgmr.msra.gmra.mrb[16].mxu0 %vm489_vm1, %v2076_v25  ;;  %3674 = vmatprep.subr.bf16.mxu0 %v3854_v52 }
 0x32b   : > { %3676 = vmatpush3.bf16.msra.mxu0 %v3675_v48  ;;  %3297 = vmatprep.mubr.msk.f32.mxu0 %vm3853_vm0, %v3852_v2 }
 0x32c   : > { %3677 = vmatprep.subr.bf16.mxu0 %v3854_v52  ;;  %3721 = vmatpush3.bf16.msra.mxu1 %v3720_v3 }
 0x32f   : > { %3679 = vmatpush3.bf16.msra.mxu0 %v3678_v39 }
 0x330   : > { %3680 = vmatprep.subr.bf16.mxu0 %v3854_v52 }
 0x333   : > { %3682 = vmatpush3.bf16.msra.mxu0 %v3681_v27 }
 0x334   : > { %3683 = vmatprep.subr.bf16.mxu0 %v3854_v52 }
 0x337   : > { %3685 = vmatpush3.bf16.msra.mxu0 %v3684_v30 }
 0x338   : > { %3686 = vmatprep.subr.bf16.mxu0 %v3854_v52 }
 0x33a   : > { %3298 = vmatmul.mubr.msk.f32.vlgmr.msra.gmra.mrb[18].mxu0 %vm697_vm2, %v3787_v38 }
 0x33b   : > { %3688 = vmatpush3.bf16.msra.mxu0 %v3687_v33  ;;  %3316 = vmatprep.mubr.msk.f32.mxu0 %vm3853_vm0, %v3852_v2  ;;  %v2157_v2 = vld [vmem:[%s5139_s8 + $0x38] sm:$0xff] }
 0x33c   : > { %3689 = vmatprep.subr.bf16.mxu0 %v3854_v52  ;;  %v3696_v46 = vpack.c.bf16 %v2157_v2, %v2156_v45 }
 0x33f   : > { %3691 = vmatpush3.bf16.msra.mxu0 %v3690_v41 }
 0x340   : > { %3692 = vmatprep.subr.bf16.mxu0 %v3854_v52 }
 0x343   : > { %3694 = vmatpush3.bf16.msra.mxu0 %v3693_v44 }
 0x344   : > { %3695 = vmatprep.subr.bf16.mxu0 %v3854_v52  ;;  %v2707_v52 = vld [vmem:[%s5143_s12] ss:$0 sm:$0xff] }
 0x347   : > { %3697 = vmatpush3.bf16.msra.mxu0 %v3696_v46 }
 0x3fd   : > { %v2146_v12 = vpop.f32.mrb[16].mxu0 }
 0x3fe   : > { %3317 = vmatmul.mubr.msk.f32.vlgmr.msra.gmra.mrb[18].mxu0 %vm697_vm2, %v2146_v12  ;;  %v3280_v13 = vpop.f32.mrb[17].mxu0 }
 0x4d1   : > { %v2308_v17 = vpop.f32.mrb[18].mxu0 }
 0x4d2   : > { %v2312_v0 = vmul.f32 0.125, %v2308_v17  ;;  %v3318_v19 = vpop.f32.mrb[19].mxu0 }
 0x4d4   : > { %v2320_v18 = vadd.f32 %v2706_v57, %v2312_v0 }
 0x4d6   : > { %v2321_v21 = vmax.f32 %v2320_v18, 0.0 }
 0x4d8   : > { %3352 = vmatmul.mubr.f32.vlgmr.msra.gmra.mrb[16].mxu1 %v2321_v21 }
 0x5ab   : > { %v2411_v22 = vpop.f32.mrb[16].mxu1 }
 0x5ac   : > { %v2412_v20 = vadd.f32 %v2707_v52, %v2411_v22  ;;  %v3353_v6 = vpop.f32.mrb[17].mxu1 }
 0x5ae   : > { %2415 = vst.msk [vmem:[%s470_s2] sm:$0xff] %vm697_vm2, %v2412_v20 }
 0x5af   : > { %3801 = shalt.err (!%p3798_p3)
}
 0x5b0   : > { %s3802_s15 = scalar_lea.hbm %s5088_s19, 128  ;;  %s3806_s20 = scalar_lea.hbm %s5144_s13, 256 }
 0x5b1   : > { %p3803_p4 = scmp.ne.s32.totalorder %s5088_s19, %s3802_s15  ;;  %p3807_p9 = scmp.lt.u32.totalorder %s5088_s19, %s5144_s13 }
 0x5b2   : > { %p3808_p10 = scmp.lt.u32.totalorder %s3806_s20, %s3802_s15  ;;  %p3810_p12 = scmp.lt.u32.totalorder %s3802_s15, %s5088_s19 }
 0x5b3   : > { %p3804_p7 = pnand %p3803_p4, %p3974_p5 }
 0x5b4   : > { %p3809_p11 = por %p3808_p10, %p3807_p9 }
 0x5b5   : > { %p3805_p8 = pneg %p3804_p7 }
 0x5b6   : > { %p3811_p13 = por %p3810_p12, %p3809_p11 }
 0x5b8   : > { %p3812_p0 = pnand %p3811_p13, %p3805_p8 }
 0x5ba   : > { %3815 = shalt.err (!%p3812_p0)
}
 0x5bb   : > { %3724 = dma.vmem_to_hbm [thread:$0]  (%p3974_p5), %s5090_s17, 128, %s5088_s19, %s2417_s23  }
 0x5bc PF: > { %p3730_p1 = scmp.ge.s32.totalorder %s3850_s28, 2  ;;  %s2442_s14 = sand.u32 1, %s3838_s25  }
 0x5bd   : > { %s2443_s27 = scalar_lea.sflag [#allocation3], %s2442_s14 }
 0x5be   : > { %p3727_p2 = pnand %p3730_p1, %p3978_p6 }
 0x5c0   : > { %3833 = dma.done.wait (!%p3727_p2), %s2443_s27, 128  }
 0x5c1   : > { %3835 = vsyncadd (!%p3727_p2), %s2443_s27, 4294967168  ;;  %s5160_s28 = sld [smem:[#allocation6_spill]]  ;;  %s5161_s29 = sld [smem:[#allocation5_spill]] }
 0x5c2   : > { %s5162_s27 = sld [smem:[#allocation7_spill]]  ;;  %s5163_s25 = smov %s3842_s26 }
 0x5c7   : > { %p23_p3 = scmp.ge.s32.totalorder %s5160_s28, 4   ;;  %s5164_s26 = smov %s5161_s29 }
 0x5c9   :  { %25 = sbr.rel (!%p23_p3) target bundleno = 6 (0x6), region = 134 }
 0x5d0   :  { %2448 = vsyncpa [#allocation3], 1 }
 0x5d1   :  { %2450 = vsyncpa [#allocation3 + $0x1], 1 }

</bundles_post_ra>
